<compile_context>
chip_gen: v6e
topology: v6e:2x2x1
jax: 0.10.0
libtpu: 0.0.40
codegen_flags: <defaults>
</compile_context>

<pallas_src>
import functools

import jax
import jax.numpy as jnp
from jax import lax
from jax.experimental import pallas as pl
from jax.experimental.pallas import tpu as pltpu


# Weight ordering shared by the kernel and the wrapper.
DEC_KEYS = ("wqkv", "bqkv", "wo_s", "bo_s", "ln1_g", "ln1_b",
            "wq_c", "bq_c", "wkv_c", "bkv_c", "wo_c", "bo_c", "ln2_g", "ln2_b",
            "w1", "b1", "w2", "b2", "ln3_g", "ln3_b")
PRED_KEYS = DEC_KEYS[:-2]          # pred head: same layer minus LN3
OUT_PAD = 128                      # lane-dense padding of the 1-wide rating output


# ----------------------------------------------------------------------------
# Feature probe: single-buffered (Buffered(1)) constant weight blocks.
# ----------------------------------------------------------------------------
def _probe_single_buffering():
    """pl.Buffered(1) support differs across Pallas versions; probe once, eagerly."""
    try:
        def _k(x_ref, o_ref):
            o_ref[...] = x_ref[...] + 1.0

        fn = pl.pallas_call(
            _k,
            out_shape=jax.ShapeDtypeStruct((8, 128), jnp.float32),
            grid=(2,),
            in_specs=[pl.BlockSpec((8, 128), lambda i: (0, 0),
                                   pipeline_mode=pl.Buffered(1))],
            out_specs=pl.BlockSpec((8, 128), lambda i: (0, 0)),
        )
        jax.block_until_ready(fn(jnp.zeros((8, 128), jnp.float32)))
        return True
    except Exception:   # fall back to default double buffering
        return False


_SINGLE_BUFFER_OK = _probe_single_buffering()


def _const_spec(shape):
    """Whole-array weight block, constant across the grid; single-buffered if possible."""
    ndim = len(shape)
    index_map = lambda b, _n=ndim: (0,) * _n
    if _SINGLE_BUFFER_OK:
        return pl.BlockSpec(shape, index_map, pipeline_mode=pl.Buffered(1))
    return pl.BlockSpec(shape, index_map)


# ----------------------------------------------------------------------------
# Fully fused decoder kernel: num_layers DecoderLayers + rating head.
# ----------------------------------------------------------------------------
def _decoder_kernel(*refs, num_heads, num_layers):
    n_dec, n_pred = len(DEC_KEYS), len(PRED_KEYS)
    x_ref, enc_ref, smask_ref, cbias_ref = refs[:4]
    dec_refs = dict(zip(DEC_KEYS, refs[4:4 + n_dec]))
    pred_refs = dict(zip(PRED_KEYS, refs[4 + n_dec:4 + n_dec + n_pred]))
    o_ref = refs[4 + n_dec + n_pred]

    D = x_ref.shape[2]
    H = num_heads
    Dh = D // H
    scale = 1.0 / (Dh ** 0.5)
    nt = (((1,), (1,)), ((), ()))        # contract last dims: A @ B^T without kh.T

    x = x_ref[0]                                   # (S, D)  f32 residual stream
    enc_bf = enc_ref[0]                            # (Su, D) bf16 (matmul operand only)
    smask = smask_ref[0]                           # (1, S)  f32 additive key-pad mask
    cbias = cbias_ref[0].astype(jnp.float32)       # (H, S, Su) rating bias + pad mask

    def ln(v, g, b):                               # f32 LayerNorm (torch eps)
        mu = jnp.mean(v, axis=-1, keepdims=True)
        var = jnp.mean(jnp.square(v - mu), axis=-1, keepdims=True)
        return (v - mu) * lax.rsqrt(var + 1e-5) * g + b

    def mha(q, k, v, bias_fn, wo_bf):
        """Multi-head attention; heads merged once through a single Wo matmul."""
        q_bf = q.astype(jnp.bfloat16)
        k_bf = k.astype(jnp.bfloat16)
        v_bf = v.astype(jnp.bfloat16)
        ctx = []
        for h in range(H):                         # static unroll, H small
            sl = slice(h * Dh, (h + 1) * Dh)
            s = lax.dot_general(q_bf[:, sl], k_bf[:, sl], nt,
                                preferred_element_type=jnp.float32) * scale
            s = s + bias_fn(h)
            m = jnp.max(s, axis=-1, keepdims=True)
            p = jnp.exp(s - m)                     # f32 softmax
            p = p * pl.reciprocal(jnp.sum(p, axis=-1, keepdims=True), approx=True)
            ctx.append(jnp.dot(p.astype(jnp.bfloat16), v_bf[:, sl],
                               preferred_element_type=jnp.float32))
        ctx = jnp.concatenate(ctx, axis=-1)        # (S, D): merge heads once
        return jnp.dot(ctx.astype(jnp.bfloat16), wo_bf,
                       preferred_element_type=jnp.float32)

    def run_layer(xin, W, last):
        xbf = xin.astype(jnp.bfloat16)
        # masked self-attention over items (fused Q|K|V projection)
        qkv = jnp.dot(xbf, W["wqkv"], preferred_element_type=jnp.float32) + W["bqkv"]
        attn = mha(qkv[:, :D], qkv[:, D:2 * D], qkv[:, 2 * D:],
                   lambda h: smask, W["wo_s"]) + W["bo_s"]
        x1 = ln(xin + attn, W["ln1_g"], W["ln1_b"])
        # item -> user cross-attention (fused K|V projection, shared rating bias)
        qc = jnp.dot(x1.astype(jnp.bfloat16), W["wq_c"],
                     preferred_element_type=jnp.float32) + W["bq_c"]
        kv = jnp.dot(enc_bf, W["wkv_c"],
                     preferred_element_type=jnp.float32) + W["bkv_c"]
        attn = mha(qc, kv[:, :D], kv[:, D:],
                   lambda h: cbias[h], W["wo_c"]) + W["bo_c"]
        x2 = ln(x1 + attn, W["ln2_g"], W["ln2_b"])
        # position-wise FFN (d_ffn intermediate never leaves vregs/VMEM)
        h1 = jnp.maximum(
            jnp.dot(x2.astype(jnp.bfloat16), W["w1"],
                    preferred_element_type=jnp.float32) + W["b1"], 0.0)
        h2 = jnp.dot(h1.astype(jnp.bfloat16), W["w2"],
                     preferred_element_type=jnp.float32) + W["b2"]
        if last:
            return h2                              # rating logits (lane-padded)
        return ln(x2 + h2, W["ln3_g"], W["ln3_b"])

    for l in range(num_layers):                    # static unroll over stacked weights
        x = run_layer(x, {k: dec_refs[k][l] for k in DEC_KEYS}, last=False)
    out = run_layer(x, {k: pred_refs[k][...] for k in PRED_KEYS}, last=True)
    o_ref[0] = out.astype(o_ref.dtype)


# ----------------------------------------------------------------------------
# Decoder forward (plain-JAX glue: embeddings, masks, shared rating bias)
# ----------------------------------------------------------------------------
def decoder_forward(params, batched_data, enc_output, num_heads):
    item_list = batched_data["item_list"]          # (B, S_item) int, 0 == pad
    item_degree = batched_data["item_degree"]      # (B, S_item) int
    user_seq = batched_data["user_seq"]            # (B, S_user) int, 0 == pad
    rating_matrix = batched_data["rating_matrix"]  # (B, S_user, S_item) int in [0, 5]

    # ItemNodeEncoder: node-id embedding + degree (centrality) embedding
    x = params["item_emb"][item_list] + params["degree_emb"][item_degree]  # (B,S,D) f32

    neg = jnp.float32(-1e9)
    # generate_attn_pad_mask(q, k): additive -1e9 where the KEY token is padding.
    self_mask = jnp.where((item_list == 0)[:, None, :], neg,
                          jnp.float32(0.0)).astype(jnp.float32)            # (B,1,S)
    cross_mask = jnp.where((user_seq == 0)[:, None, None, :], neg,
                           jnp.float32(0.0))                               # (B,1,1,Su)

    # RatingEncoder -> per-head bias permuted to (B,H,S_item,S_user); user pad
    # mask folded in ONCE; stored bf16 and DMA'd once per batch element.
    rb = params["rating_emb"][rating_matrix]                               # (B,Su,S,H)
    cross_bias = (jnp.transpose(rb, (0, 3, 2, 1)) + cross_mask).astype(jnp.bfloat16)

    enc_bf = enc_output.astype(jnp.bfloat16)       # only feeds the K|V matmul

    B, S, D = x.shape
    Su = enc_output.shape[1]
    H = num_heads
    L = params["dec"]["wqkv"].shape[0]

    dec_w = [params["dec"][k] for k in DEC_KEYS]
    pred_w = [params["pred"][k] for k in PRED_KEYS]
    out_pad = params["pred"]["w2"].shape[1]

    act_specs = [pl.BlockSpec((1, S, D), lambda b: (b, 0, 0)),
                 pl.BlockSpec((1, Su, D), lambda b: (b, 0, 0)),
                 pl.BlockSpec((1, 1, S), lambda b: (b, 0, 0)),
                 pl.BlockSpec((1, H, S, Su), lambda b: (b, 0, 0, 0))]
    w_specs = [_const_spec(a.shape) for a in dec_w + pred_w]

    out = pl.pallas_call(
        functools.partial(_decoder_kernel, num_heads=H, num_layers=L),
        out_shape=jax.ShapeDtypeStruct((B, S, out_pad), jnp.float32),
        grid=(B,),
        in_specs=act_specs + w_specs,
        out_specs=pl.BlockSpec((1, S, out_pad), lambda b: (b, 0, 0)),
        compiler_params=pltpu.CompilerParams(
            dimension_semantics=("parallel",),
            vmem_limit_bytes=32 * 1024 * 1024),
    )(x, enc_bf, self_mask, cross_bias, *dec_w, *pred_w)

    ratings = out[:, :, :1]                        # drop the lane padding
    # TODO(synk): DecoderLayer's auxiliary `loss` definition is absent from the reference; returning 0.
    return ratings, jnp.float32(0.0)


# ----------------------------------------------------------------------------
# Deterministic parameter init (stacked per-layer weights, bf16 matmul weights)
# ----------------------------------------------------------------------------
def init_params(key, num_item, max_degree, d_model, d_ffn, num_heads, num_layers):
    keys = iter(jax.random.split(key, 256))
    D, F, L = d_model, d_ffn, num_layers

    def lin_w(din, dout):                          # bf16 matmul weights (MXU path)
        w = jax.random.normal(next(keys), (din, dout), jnp.float32) / jnp.sqrt(float(din))
        return w.astype(jnp.bfloat16)

    def stack(make):
        return jnp.stack([make() for _ in range(L)], axis=0)

    dec = dict(
        wqkv=stack(lambda: lin_w(D, 3 * D)), bqkv=jnp.zeros((L, 1, 3 * D), jnp.float32),
        wo_s=stack(lambda: lin_w(D, D)),     bo_s=jnp.zeros((L, 1, D), jnp.float32),
        ln1_g=jnp.ones((L, 1, D), jnp.float32), ln1_b=jnp.zeros((L, 1, D), jnp.float32),
        wq_c=stack(lambda: lin_w(D, D)),     bq_c=jnp.zeros((L, 1, D), jnp.float32),
        wkv_c=stack(lambda: lin_w(D, 2 * D)), bkv_c=jnp.zeros((L, 1, 2 * D), jnp.float32),
        wo_c=stack(lambda: lin_w(D, D)),     bo_c=jnp.zeros((L, 1, D), jnp.float32),
        ln2_g=jnp.ones((L, 1, D), jnp.float32), ln2_b=jnp.zeros((L, 1, D), jnp.float32),
        w1=stack(lambda: lin_w(D, F)),       b1=jnp.zeros((L, 1, F), jnp.float32),
        w2=stack(lambda: lin_w(F, D)),       b2=jnp.zeros((L, 1, D), jnp.float32),
        ln3_g=jnp.ones((L, 1, D), jnp.float32), ln3_b=jnp.zeros((L, 1, D), jnp.float32),
    )

    # Pred head: DecoderLayer minus LN3; its (F,1) output projection is zero-padded
    # to OUT_PAD output lanes so the kernel's single HBM store is lane-dense.
    w2_col = jax.random.normal(next(keys), (F, 1), jnp.float32) / jnp.sqrt(float(F))
    w2_pred = jnp.zeros((F, OUT_PAD), jnp.float32).at[:, :1].set(w2_col)
    pred = dict(
        wqkv=lin_w(D, 3 * D), bqkv=jnp.zeros((1, 3 * D), jnp.float32),
        wo_s=lin_w(D, D),     bo_s=jnp.zeros((1, D), jnp.float32),
        ln1_g=jnp.ones((1, D), jnp.float32), ln1_b=jnp.zeros((1, D), jnp.float32),
        wq_c=lin_w(D, D),     bq_c=jnp.zeros((1, D), jnp.float32),
        wkv_c=lin_w(D, 2 * D), bkv_c=jnp.zeros((1, 2 * D), jnp.float32),
        wo_c=lin_w(D, D),     bo_c=jnp.zeros((1, D), jnp.float32),
        ln2_g=jnp.ones((1, D), jnp.float32), ln2_b=jnp.zeros((1, D), jnp.float32),
        w1=lin_w(D, F),       b1=jnp.zeros((1, F), jnp.float32),
        w2=w2_pred.astype(jnp.bfloat16), b2=jnp.zeros((1, OUT_PAD), jnp.float32),
    )

    return dict(
        item_emb=jax.random.normal(next(keys), (num_item + 1, D), jnp.float32) * 0.02,
        degree_emb=jax.random.normal(next(keys), (max_degree + 1, D), jnp.float32) * 0.02,
        rating_emb=jax.random.normal(next(keys), (6, num_heads), jnp.float32) * 0.02,
        dec=dec, pred=pred,
    )


# ----------------------------------------------------------------------------
# Example run
# ----------------------------------------------------------------------------
if __name__ == "__main__":
    num_item, max_degree = 50, 16
    d_model, d_ffn, num_heads, num_layers = 32, 64, 4, 2
    B, S_item, S_user = 2, 8, 8

    key = jax.random.PRNGKey(0)
    kp, k1, k2, k3, k4, k5 = jax.random.split(key, 6)

    params = init_params(kp, num_item, max_degree, d_model, d_ffn, num_heads, num_layers)

    item_list = jax.random.randint(k1, (B, S_item), 1, num_item)
    item_list = item_list.at[:, -2:].set(0)                      # padded positions
    item_degree = jax.random.randint(k2, (B, S_item), 0, max_degree + 1)
    item_degree = jnp.where(item_list == 0, 0, item_degree)
    user_seq = jax.random.randint(k3, (B, S_user), 1, 40)
    user_seq = user_seq.at[:, -1:].set(0)                        # padded position
    rating_matrix = jax.random.randint(k4, (B, S_user, S_item), 0, 6)
    enc_output = jax.random.normal(k5, (B, S_user, d_model), jnp.float32)

    batched_data = dict(item_list=item_list, item_degree=item_degree,
                        user_seq=user_seq, rating_matrix=rating_matrix)

    fwd = jax.jit(decoder_forward, static_argnames=("num_heads",))
    out, avg_loss = fwd(params, batched_data, enc_output, num_heads=num_heads)
    jax.block_until_ready((out, avg_loss))
    assert out.shape == (B, S_item, 1)
    print("KERNEL_OK")
</pallas_src>

<mosaic_0001>
module attributes {stable_mosaic.version = 11 : i64} {
  func.func @_k(%arg0: i32, %arg1: memref<8x128xf32, #tpu.memory_space<vmem>>, %arg2: memref<8x128xf32, #tpu.memory_space<vmem>>) attributes {dimension_semantics = [#tpu.dimension_semantics<arbitrary>], iteration_bounds = array<i64: 2>, scalar_prefetch = 0 : i64, scratch_operands = 0 : i64, tpu.core_type = #tpu.core_type<tc>, window_params = [{pipeline_mode = #tpu.pipeline_mode<synchronous>, transform_indices = @transform_0, window_bounds = array<i64: 8, 128>}, {pipeline_mode = #tpu.pipeline_mode<synchronous>, transform_indices = @transform_1, window_bounds = array<i64: 8, 128>}]} {
    %c0 = arith.constant 0 : index
    %c0_0 = arith.constant 0 : index
    %0 = vector.load %arg1[%c0, %c0_0] : memref<8x128xf32, #tpu.memory_space<vmem>>, vector<8x128xf32>
    %cst = arith.constant 1.000000e+00 : f32
    %1 = vector.broadcast %cst : f32 to vector<8x128xf32>
    %2 = arith.addf %0, %1 : vector<8x128xf32>
    %c0_1 = arith.constant 0 : index
    %c0_2 = arith.constant 0 : index
    %3 = vector.load %arg2[%c0_1, %c0_2] : memref<8x128xf32, #tpu.memory_space<vmem>>, vector<8x128xf32>
    tpu.vector_store %arg2[%c0_1, %c0_2], %2 {strides = array<i32>} : memref<8x128xf32, #tpu.memory_space<vmem>>, vector<8x128xf32>,
    return
  }
  func.func @transform_0(%arg0: i32) -> (i32, i32) {
    %c0_i32 = arith.constant 0 : i32
    %c0_i32_0 = arith.constant 0 : i32
    %c0_i32_1 = arith.constant 0 : i32
    return %c0_i32, %c0_i32_0 : i32, i32
  }
  func.func @transform_1(%arg0: i32) -> (i32, i32) {
    %c0_i32 = arith.constant 0 : i32
    %c0_i32_0 = arith.constant 0 : i32
    %c0_i32_1 = arith.constant 0 : i32
    return %c0_i32, %c0_i32_0 : i32, i32
  }
}

module attributes {stable_mosaic.version = 11 : i64} {
  func.func @_decoder_kernel(%arg0: i32, %arg1: memref<1x8x32xf32, #tpu.memory_space<vmem>>, %arg2: memref<1x8x32xbf16, #tpu.memory_space<vmem>>, %arg3: memref<1x1x8xf32, #tpu.memory_space<vmem>>, %arg4: memref<1x4x8x8xbf16, #tpu.memory_space<vmem>>, %arg5: memref<2x32x96xbf16, #tpu.memory_space<vmem>>, %arg6: memref<2x1x96xf32, #tpu.memory_space<vmem>>, %arg7: memref<2x32x32xbf16, #tpu.memory_space<vmem>>, %arg8: memref<2x1x32xf32, #tpu.memory_space<vmem>>, %arg9: memref<2x1x32xf32, #tpu.memory_space<vmem>>, %arg10: memref<2x1x32xf32, #tpu.memory_space<vmem>>, %arg11: memref<2x32x32xbf16, #tpu.memory_space<vmem>>, %arg12: memref<2x1x32xf32, #tpu.memory_space<vmem>>, %arg13: memref<2x32x64xbf16, #tpu.memory_space<vmem>>, %arg14: memref<2x1x64xf32, #tpu.memory_space<vmem>>, %arg15: memref<2x32x32xbf16, #tpu.memory_space<vmem>>, %arg16: memref<2x1x32xf32, #tpu.memory_space<vmem>>, %arg17: memref<2x1x32xf32, #tpu.memory_space<vmem>>, %arg18: memref<2x1x32xf32, #tpu.memory_space<vmem>>, %arg19: memref<2x32x64xbf16, #tpu.memory_space<vmem>>, %arg20: memref<2x1x64xf32, #tpu.memory_space<vmem>>, %arg21: memref<2x64x32xbf16, #tpu.memory_space<vmem>>, %arg22: memref<2x1x32xf32, #tpu.memory_space<vmem>>, %arg23: memref<2x1x32xf32, #tpu.memory_space<vmem>>, %arg24: memref<2x1x32xf32, #tpu.memory_space<vmem>>, %arg25: memref<32x96xbf16, #tpu.memory_space<vmem>>, %arg26: memref<1x96xf32, #tpu.memory_space<vmem>>, %arg27: memref<32x32xbf16, #tpu.memory_space<vmem>>, %arg28: memref<1x32xf32, #tpu.memory_space<vmem>>, %arg29: memref<1x32xf32, #tpu.memory_space<vmem>>, %arg30: memref<1x32xf32, #tpu.memory_space<vmem>>, %arg31: memref<32x32xbf16, #tpu.memory_space<vmem>>, %arg32: memref<1x32xf32, #tpu.memory_space<vmem>>, %arg33: memref<32x64xbf16, #tpu.memory_space<vmem>>, %arg34: memref<1x64xf32, #tpu.memory_space<vmem>>, %arg35: memref<32x32xbf16, #tpu.memory_space<vmem>>, %arg36: memref<1x32xf32, #tpu.memory_space<vmem>>, %arg37: memref<1x32xf32, #tpu.memory_space<vmem>>, %arg38: memref<1x32xf32, #tpu.memory_space<vmem>>, %arg39: memref<32x64xbf16, #tpu.memory_space<vmem>>, %arg40: memref<1x64xf32, #tpu.memory_space<vmem>>, %arg41: memref<64x128xbf16, #tpu.memory_space<vmem>>, %arg42: memref<1x128xf32, #tpu.memory_space<vmem>>, %arg43: memref<1x8x128xf32, #tpu.memory_space<vmem>>) attributes {dimension_semantics = [#tpu.dimension_semantics<parallel>], iteration_bounds = array<i64: 2>, scalar_prefetch = 0 : i64, scratch_operands = 0 : i64, tpu.core_type = #tpu.core_type<tc>, window_params = [{transform_indices = @transform_0, window_bounds = array<i64: 1, 8, 32>}, {transform_indices = @transform_1, window_bounds = array<i64: 1, 8, 32>}, {transform_indices = @transform_2, window_bounds = array<i64: 1, 1, 8>}, {transform_indices = @transform_3, window_bounds = array<i64: 1, 4, 8, 8>}, {pipeline_mode = #tpu.pipeline_mode<synchronous>, transform_indices = @transform_4, window_bounds = array<i64: 2, 32, 96>}, {pipeline_mode = #tpu.pipeline_mode<synchronous>, transform_indices = @transform_5, window_bounds = array<i64: 2, 1, 96>}, {pipeline_mode = #tpu.pipeline_mode<synchronous>, transform_indices = @transform_6, window_bounds = array<i64: 2, 32, 32>}, {pipeline_mode = #tpu.pipeline_mode<synchronous>, transform_indices = @transform_7, window_bounds = array<i64: 2, 1, 32>}, {pipeline_mode = #tpu.pipeline_mode<synchronous>, transform_indices = @transform_8, window_bounds = array<i64: 2, 1, 32>}, {pipeline_mode = #tpu.pipeline_mode<synchronous>, transform_indices = @transform_9, window_bounds = array<i64: 2, 1, 32>}, {pipeline_mode = #tpu.pipeline_mode<synchronous>, transform_indices = @transform_10, window_bounds = array<i64: 2, 32, 32>}, {pipeline_mode = #tpu.pipeline_mode<synchronous>, transform_indices = @transform_11, window_bounds = array<i64: 2, 1, 32>}, {pipeline_mode = #tpu.pipeline_mode<synchronous>, transform_indices = @transform_12, window_bounds = array<i64: 2, 32, 64>}, {pipeline_mode = #tpu.pipeline_mode<synchronous>, transform_indices = @transform_13, window_bounds = array<i64: 2, 1, 64>}, {pipeline_mode = #tpu.pipeline_mode<synchronous>, transform_indices = @transform_14, window_bounds = array<i64: 2, 32, 32>}, {pipeline_mode = #tpu.pipeline_mode<synchronous>, transform_indices = @transform_15, window_bounds = array<i64: 2, 1, 32>}, {pipeline_mode = #tpu.pipeline_mode<synchronous>, transform_indices = @transform_16, window_bounds = array<i64: 2, 1, 32>}, {pipeline_mode = #tpu.pipeline_mode<synchronous>, transform_indices = @transform_17, window_bounds = array<i64: 2, 1, 32>}, {pipeline_mode = #tpu.pipeline_mode<synchronous>, transform_indices = @transform_18, window_bounds = array<i64: 2, 32, 64>}, {pipeline_mode = #tpu.pipeline_mode<synchronous>, transform_indices = @transform_19, window_bounds = array<i64: 2, 1, 64>}, {pipeline_mode = #tpu.pipeline_mode<synchronous>, transform_indices = @transform_20, window_bounds = array<i64: 2, 64, 32>}, {pipeline_mode = #tpu.pipeline_mode<synchronous>, transform_indices = @transform_21, window_bounds = array<i64: 2, 1, 32>}, {pipeline_mode = #tpu.pipeline_mode<synchronous>, transform_indices = @transform_22, window_bounds = array<i64: 2, 1, 32>}, {pipeline_mode = #tpu.pipeline_mode<synchronous>, transform_indices = @transform_23, window_bounds = array<i64: 2, 1, 32>}, {pipeline_mode = #tpu.pipeline_mode<synchronous>, transform_indices = @transform_24, window_bounds = array<i64: 32, 96>}, {pipeline_mode = #tpu.pipeline_mode<synchronous>, transform_indices = @transform_25, window_bounds = array<i64: 1, 96>}, {pipeline_mode = #tpu.pipeline_mode<synchronous>, transform_indices = @transform_26, window_bounds = array<i64: 32, 32>}, {pipeline_mode = #tpu.pipeline_mode<synchronous>, transform_indices = @transform_27, window_bounds = array<i64: 1, 32>}, {pipeline_mode = #tpu.pipeline_mode<synchronous>, transform_indices = @transform_28, window_bounds = array<i64: 1, 32>}, {pipeline_mode = #tpu.pipeline_mode<synchronous>, transform_indices = @transform_29, window_bounds = array<i64: 1, 32>}, {pipeline_mode = #tpu.pipeline_mode<synchronous>, transform_indices = @transform_30, window_bounds = array<i64: 32, 32>}, {pipeline_mode = #tpu.pipeline_mode<synchronous>, transform_indices = @transform_31, window_bounds = array<i64: 1, 32>}, {pipeline_mode = #tpu.pipeline_mode<synchronous>, transform_indices = @transform_32, window_bounds = array<i64: 32, 64>}, {pipeline_mode = #tpu.pipeline_mode<synchronous>, transform_indices = @transform_33, window_bounds = array<i64: 1, 64>}, {pipeline_mode = #tpu.pipeline_mode<synchronous>, transform_indices = @transform_34, window_bounds = array<i64: 32, 32>}, {pipeline_mode = #tpu.pipeline_mode<synchronous>, transform_indices = @transform_35, window_bounds = array<i64: 1, 32>}, {pipeline_mode = #tpu.pipeline_mode<synchronous>, transform_indices = @transform_36, window_bounds = array<i64: 1, 32>}, {pipeline_mode = #tpu.pipeline_mode<synchronous>, transform_indices = @transform_37, window_bounds = array<i64: 1, 32>}, {pipeline_mode = #tpu.pipeline_mode<synchronous>, transform_indices = @transform_38, window_bounds = array<i64: 32, 64>}, {pipeline_mode = #tpu.pipeline_mode<synchronous>, transform_indices = @transform_39, window_bounds = array<i64: 1, 64>}, {pipeline_mode = #tpu.pipeline_mode<synchronous>, transform_indices = @transform_40, window_bounds = array<i64: 64, 128>}, {pipeline_mode = #tpu.pipeline_mode<synchronous>, transform_indices = @transform_41, window_bounds = array<i64: 1, 128>}, {transform_indices = @transform_42, window_bounds = array<i64: 1, 8, 128>}]} {
    %c0 = arith.constant 0 : index
    %c0_0 = arith.constant 0 : index
    %c0_1 = arith.constant 0 : index
    %0 = vector.load %arg1[%c0, %c0_0, %c0_1] : memref<1x8x32xf32, #tpu.memory_space<vmem>>, vector<1x8x32xf32>
    %1 = vector.shape_cast %0 : vector<1x8x32xf32> to vector<8x32xf32>
    %c0_2 = arith.constant 0 : index
    %c0_3 = arith.constant 0 : index
    %c0_4 = arith.constant 0 : index
    %2 = vector.load %arg2[%c0_2, %c0_3, %c0_4] : memref<1x8x32xbf16, #tpu.memory_space<vmem>>, vector<1x8x32xbf16>
    %3 = vector.shape_cast %2 : vector<1x8x32xbf16> to vector<8x32xbf16>
    %c0_5 = arith.constant 0 : index
    %c0_6 = arith.constant 0 : index
    %c0_7 = arith.constant 0 : index
    %4 = vector.load %arg3[%c0_5, %c0_6, %c0_7] : memref<1x1x8xf32, #tpu.memory_space<vmem>>, vector<1x1x8xf32>
    %5 = vector.shape_cast %4 : vector<1x1x8xf32> to vector<1x8xf32>
    %c0_8 = arith.constant 0 : index
    %c0_9 = arith.constant 0 : index
    %c0_10 = arith.constant 0 : index
    %c0_11 = arith.constant 0 : index
    %6 = vector.load %arg4[%c0_8, %c0_9, %c0_10, %c0_11] : memref<1x4x8x8xbf16, #tpu.memory_space<vmem>>, vector<1x4x8x8xbf16>
    %7 = vector.shape_cast %6 : vector<1x4x8x8xbf16> to vector<4x8x8xbf16>
    %8 = arith.extf %7 : vector<4x8x8xbf16> to vector<4x8x8xf32>
    %c0_12 = arith.constant 0 : index
    %c0_13 = arith.constant 0 : index
    %c0_14 = arith.constant 0 : index
    %9 = vector.load %arg5[%c0_12, %c0_13, %c0_14] : memref<2x32x96xbf16, #tpu.memory_space<vmem>>, vector<1x32x96xbf16>
    %10 = vector.shape_cast %9 : vector<1x32x96xbf16> to vector<32x96xbf16>
    %c0_15 = arith.constant 0 : index
    %c0_16 = arith.constant 0 : index
    %c0_17 = arith.constant 0 : index
    %11 = vector.load %arg6[%c0_15, %c0_16, %c0_17] : memref<2x1x96xf32, #tpu.memory_space<vmem>>, vector<1x1x96xf32>
    %12 = vector.shape_cast %11 : vector<1x1x96xf32> to vector<1x96xf32>
    %c0_18 = arith.constant 0 : index
    %c0_19 = arith.constant 0 : index
    %c0_20 = arith.constant 0 : index
    %13 = vector.load %arg7[%c0_18, %c0_19, %c0_20] : memref<2x32x32xbf16, #tpu.memory_space<vmem>>, vector<1x32x32xbf16>
    %14 = vector.shape_cast %13 : vector<1x32x32xbf16> to vector<32x32xbf16>
    %c0_21 = arith.constant 0 : index
    %c0_22 = arith.constant 0 : index
    %c0_23 = arith.constant 0 : index
    %15 = vector.load %arg8[%c0_21, %c0_22, %c0_23] : memref<2x1x32xf32, #tpu.memory_space<vmem>>, vector<1x1x32xf32>
    %16 = vector.shape_cast %15 : vector<1x1x32xf32> to vector<1x32xf32>
    %c0_24 = arith.constant 0 : index
    %c0_25 = arith.constant 0 : index
    %c0_26 = arith.constant 0 : index
    %17 = vector.load %arg9[%c0_24, %c0_25, %c0_26] : memref<2x1x32xf32, #tpu.memory_space<vmem>>, vector<1x1x32xf32>
    %18 = vector.shape_cast %17 : vector<1x1x32xf32> to vector<1x32xf32>
    %c0_27 = arith.constant 0 : index
    %c0_28 = arith.constant 0 : index
    %c0_29 = arith.constant 0 : index
    %19 = vector.load %arg10[%c0_27, %c0_28, %c0_29] : memref<2x1x32xf32, #tpu.memory_space<vmem>>, vector<1x1x32xf32>
    %20 = vector.shape_cast %19 : vector<1x1x32xf32> to vector<1x32xf32>
    %c0_30 = arith.constant 0 : index
    %c0_31 = arith.constant 0 : index
    %c0_32 = arith.constant 0 : index
    %21 = vector.load %arg11[%c0_30, %c0_31, %c0_32] : memref<2x32x32xbf16, #tpu.memory_space<vmem>>, vector<1x32x32xbf16>
    %22 = vector.shape_cast %21 : vector<1x32x32xbf16> to vector<32x32xbf16>
    %c0_33 = arith.constant 0 : index
    %c0_34 = arith.constant 0 : index
    %c0_35 = arith.constant 0 : index
    %23 = vector.load %arg12[%c0_33, %c0_34, %c0_35] : memref<2x1x32xf32, #tpu.memory_space<vmem>>, vector<1x1x32xf32>
    %24 = vector.shape_cast %23 : vector<1x1x32xf32> to vector<1x32xf32>
    %c0_36 = arith.constant 0 : index
    %c0_37 = arith.constant 0 : index
    %c0_38 = arith.constant 0 : index
    %25 = vector.load %arg13[%c0_36, %c0_37, %c0_38] : memref<2x32x64xbf16, #tpu.memory_space<vmem>>, vector<1x32x64xbf16>
    %26 = vector.shape_cast %25 : vector<1x32x64xbf16> to vector<32x64xbf16>
    %c0_39 = arith.constant 0 : index
    %c0_40 = arith.constant 0 : index
    %c0_41 = arith.constant 0 : index
    %27 = vector.load %arg14[%c0_39, %c0_40, %c0_41] : memref<2x1x64xf32, #tpu.memory_space<vmem>>, vector<1x1x64xf32>
    %28 = vector.shape_cast %27 : vector<1x1x64xf32> to vector<1x64xf32>
    %c0_42 = arith.constant 0 : index
    %c0_43 = arith.constant 0 : index
    %c0_44 = arith.constant 0 : index
    %29 = vector.load %arg15[%c0_42, %c0_43, %c0_44] : memref<2x32x32xbf16, #tpu.memory_space<vmem>>, vector<1x32x32xbf16>
    %30 = vector.shape_cast %29 : vector<1x32x32xbf16> to vector<32x32xbf16>
    %c0_45 = arith.constant 0 : index
    %c0_46 = arith.constant 0 : index
    %c0_47 = arith.constant 0 : index
    %31 = vector.load %arg16[%c0_45, %c0_46, %c0_47] : memref<2x1x32xf32, #tpu.memory_space<vmem>>, vector<1x1x32xf32>
    %32 = vector.shape_cast %31 : vector<1x1x32xf32> to vector<1x32xf32>
    %c0_48 = arith.constant 0 : index
    %c0_49 = arith.constant 0 : index
    %c0_50 = arith.constant 0 : index
    %33 = vector.load %arg17[%c0_48, %c0_49, %c0_50] : memref<2x1x32xf32, #tpu.memory_space<vmem>>, vector<1x1x32xf32>
    %34 = vector.shape_cast %33 : vector<1x1x32xf32> to vector<1x32xf32>
    %c0_51 = arith.constant 0 : index
    %c0_52 = arith.constant 0 : index
    %c0_53 = arith.constant 0 : index
    %35 = vector.load %arg18[%c0_51, %c0_52, %c0_53] : memref<2x1x32xf32, #tpu.memory_space<vmem>>, vector<1x1x32xf32>
    %36 = vector.shape_cast %35 : vector<1x1x32xf32> to vector<1x32xf32>
    %c0_54 = arith.constant 0 : index
    %c0_55 = arith.constant 0 : index
    %c0_56 = arith.constant 0 : index
    %37 = vector.load %arg19[%c0_54, %c0_55, %c0_56] : memref<2x32x64xbf16, #tpu.memory_space<vmem>>, vector<1x32x64xbf16>
    %38 = vector.shape_cast %37 : vector<1x32x64xbf16> to vector<32x64xbf16>
    %c0_57 = arith.constant 0 : index
    %c0_58 = arith.constant 0 : index
    %c0_59 = arith.constant 0 : index
    %39 = vector.load %arg20[%c0_57, %c0_58, %c0_59] : memref<2x1x64xf32, #tpu.memory_space<vmem>>, vector<1x1x64xf32>
    %40 = vector.shape_cast %39 : vector<1x1x64xf32> to vector<1x64xf32>
    %c0_60 = arith.constant 0 : index
    %c0_61 = arith.constant 0 : index
    %c0_62 = arith.constant 0 : index
    %41 = vector.load %arg21[%c0_60, %c0_61, %c0_62] : memref<2x64x32xbf16, #tpu.memory_space<vmem>>, vector<1x64x32xbf16>
    %42 = vector.shape_cast %41 : vector<1x64x32xbf16> to vector<64x32xbf16>
    %c0_63 = arith.constant 0 : index
    %c0_64 = arith.constant 0 : index
    %c0_65 = arith.constant 0 : index
    %43 = vector.load %arg22[%c0_63, %c0_64, %c0_65] : memref<2x1x32xf32, #tpu.memory_space<vmem>>, vector<1x1x32xf32>
    %44 = vector.shape_cast %43 : vector<1x1x32xf32> to vector<1x32xf32>
    %c0_66 = arith.constant 0 : index
    %c0_67 = arith.constant 0 : index
    %c0_68 = arith.constant 0 : index
    %45 = vector.load %arg23[%c0_66, %c0_67, %c0_68] : memref<2x1x32xf32, #tpu.memory_space<vmem>>, vector<1x1x32xf32>
    %46 = vector.shape_cast %45 : vector<1x1x32xf32> to vector<1x32xf32>
    %c0_69 = arith.constant 0 : index
    %c0_70 = arith.constant 0 : index
    %c0_71 = arith.constant 0 : index
    %47 = vector.load %arg24[%c0_69, %c0_70, %c0_71] : memref<2x1x32xf32, #tpu.memory_space<vmem>>, vector<1x1x32xf32>
    %48 = vector.shape_cast %47 : vector<1x1x32xf32> to vector<1x32xf32>
    %49 = arith.truncf %1 : vector<8x32xf32> to vector<8x32xbf16>
    %cst = arith.constant dense<0.000000e+00> : vector<8x96xf32>
    %50 = tpu.matmul %49, %10, %cst {dimension_numbers = #tpu.dot_dimension_numbers<[1], [0], [0], [1], [0, 0, 1, 1], [], []>} : vector<8x32xbf16>, vector<32x96xbf16>, vector<8x96xf32> -> vector<8x96xf32>
    %51 = vector.broadcast %12 : vector<1x96xf32> to vector<8x96xf32>
    %52 = arith.addf %50, %51 : vector<8x96xf32>
    %53 = vector.extract_strided_slice %52 {offsets = [0, 0], sizes = [8, 32], strides = [1, 1]} : vector<8x96xf32> to vector<8x32xf32>
    %54 = vector.extract_strided_slice %52 {offsets = [0, 32], sizes = [8, 32], strides = [1, 1]} : vector<8x96xf32> to vector<8x32xf32>
    %55 = vector.extract_strided_slice %52 {offsets = [0, 64], sizes = [8, 32], strides = [1, 1]} : vector<8x96xf32> to vector<8x32xf32>
    %56 = arith.truncf %53 : vector<8x32xf32> to vector<8x32xbf16>
    %57 = arith.truncf %54 : vector<8x32xf32> to vector<8x32xbf16>
    %58 = arith.truncf %55 : vector<8x32xf32> to vector<8x32xbf16>
    %59 = vector.extract_strided_slice %56 {offsets = [0, 0], sizes = [8, 8], strides = [1, 1]} : vector<8x32xbf16> to vector<8x8xbf16>
    %60 = vector.extract_strided_slice %57 {offsets = [0, 0], sizes = [8, 8], strides = [1, 1]} : vector<8x32xbf16> to vector<8x8xbf16>
    %cst_72 = arith.constant dense<0.000000e+00> : vector<8x8xf32>
    %61 = tpu.matmul %59, %60, %cst_72 {dimension_numbers = #tpu.dot_dimension_numbers<[1], [1], [0], [0], [0, 0, 1, 0], [], []>} : vector<8x8xbf16>, vector<8x8xbf16>, vector<8x8xf32> -> vector<8x8xf32>
    %cst_73 = arith.constant 0.353553385 : f32
    %62 = vector.broadcast %cst_73 : f32 to vector<8x8xf32>
    %63 = arith.mulf %61, %62 : vector<8x8xf32>
    %64 = vector.broadcast %5 : vector<1x8xf32> to vector<8x8xf32>
    %65 = arith.addf %63, %64 : vector<8x8xf32>
    %cst_74 = arith.constant dense<0xFF800000> : vector<8xf32>
    %66 = vector.multi_reduction <maximumf>, %65, %cst_74 [1] : vector<8x8xf32> to vector<8xf32>
    %67 = vector.shape_cast %66 : vector<8xf32> to vector<8x1xf32>
    %68 = vector.broadcast %67 : vector<8x1xf32> to vector<8x8xf32>
    %69 = arith.subf %65, %68 : vector<8x8xf32>
    %70 = math.exp %69 : vector<8x8xf32>
    %cst_75 = arith.constant dense<0.000000e+00> : vector<8xf32>
    %71 = vector.multi_reduction <add>, %70, %cst_75 [1] : vector<8x8xf32> to vector<8xf32>
    %72 = vector.shape_cast %71 : vector<8xf32> to vector<8x1xf32>
    %73 = tpu.reciprocal %72 {approx = true} : vector<8x1xf32> -> vector<8x1xf32>
    %74 = vector.broadcast %73 : vector<8x1xf32> to vector<8x8xf32>
    %75 = arith.mulf %70, %74 : vector<8x8xf32>
    %76 = arith.truncf %75 : vector<8x8xf32> to vector<8x8xbf16>
    %77 = vector.extract_strided_slice %58 {offsets = [0, 0], sizes = [8, 8], strides = [1, 1]} : vector<8x32xbf16> to vector<8x8xbf16>
    %cst_76 = arith.constant dense<0.000000e+00> : vector<8x8xf32>
    %78 = tpu.matmul %76, %77, %cst_76 {dimension_numbers = #tpu.dot_dimension_numbers<[1], [0], [0], [1], [0, 0, 1, 1], [], []>} : vector<8x8xbf16>, vector<8x8xbf16>, vector<8x8xf32> -> vector<8x8xf32>
    %79 = vector.extract_strided_slice %56 {offsets = [0, 8], sizes = [8, 8], strides = [1, 1]} : vector<8x32xbf16> to vector<8x8xbf16>
    %80 = vector.extract_strided_slice %57 {offsets = [0, 8], sizes = [8, 8], strides = [1, 1]} : vector<8x32xbf16> to vector<8x8xbf16>
    %cst_77 = arith.constant dense<0.000000e+00> : vector<8x8xf32>
    %81 = tpu.matmul %79, %80, %cst_77 {dimension_numbers = #tpu.dot_dimension_numbers<[1], [1], [0], [0], [0, 0, 1, 0], [], []>} : vector<8x8xbf16>, vector<8x8xbf16>, vector<8x8xf32> -> vector<8x8xf32>
    %cst_78 = arith.constant 0.353553385 : f32
    %82 = vector.broadcast %cst_78 : f32 to vector<8x8xf32>
    %83 = arith.mulf %81, %82 : vector<8x8xf32>
    %84 = vector.broadcast %5 : vector<1x8xf32> to vector<8x8xf32>
    %85 = arith.addf %83, %84 : vector<8x8xf32>
    %cst_79 = arith.constant dense<0xFF800000> : vector<8xf32>
    %86 = vector.multi_reduction <maximumf>, %85, %cst_79 [1] : vector<8x8xf32> to vector<8xf32>
    %87 = vector.shape_cast %86 : vector<8xf32> to vector<8x1xf32>
    %88 = vector.broadcast %87 : vector<8x1xf32> to vector<8x8xf32>
    %89 = arith.subf %85, %88 : vector<8x8xf32>
    %90 = math.exp %89 : vector<8x8xf32>
    %cst_80 = arith.constant dense<0.000000e+00> : vector<8xf32>
    %91 = vector.multi_reduction <add>, %90, %cst_80 [1] : vector<8x8xf32> to vector<8xf32>
    %92 = vector.shape_cast %91 : vector<8xf32> to vector<8x1xf32>
    %93 = tpu.reciprocal %92 {approx = true} : vector<8x1xf32> -> vector<8x1xf32>
    %94 = vector.broadcast %93 : vector<8x1xf32> to vector<8x8xf32>
    %95 = arith.mulf %90, %94 : vector<8x8xf32>
    %96 = arith.truncf %95 : vector<8x8xf32> to vector<8x8xbf16>
    %97 = vector.extract_strided_slice %58 {offsets = [0, 8], sizes = [8, 8], strides = [1, 1]} : vector<8x32xbf16> to vector<8x8xbf16>
    %cst_81 = arith.constant dense<0.000000e+00> : vector<8x8xf32>
    %98 = tpu.matmul %96, %97, %cst_81 {dimension_numbers = #tpu.dot_dimension_numbers<[1], [0], [0], [1], [0, 0, 1, 1], [], []>} : vector<8x8xbf16>, vector<8x8xbf16>, vector<8x8xf32> -> vector<8x8xf32>
    %99 = vector.extract_strided_slice %56 {offsets = [0, 16], sizes = [8, 8], strides = [1, 1]} : vector<8x32xbf16> to vector<8x8xbf16>
    %100 = vector.extract_strided_slice %57 {offsets = [0, 16], sizes = [8, 8], strides = [1, 1]} : vector<8x32xbf16> to vector<8x8xbf16>
    %cst_82 = arith.constant dense<0.000000e+00> : vector<8x8xf32>
    %101 = tpu.matmul %99, %100, %cst_82 {dimension_numbers = #tpu.dot_dimension_numbers<[1], [1], [0], [0], [0, 0, 1, 0], [], []>} : vector<8x8xbf16>, vector<8x8xbf16>, vector<8x8xf32> -> vector<8x8xf32>
    %cst_83 = arith.constant 0.353553385 : f32
    %102 = vector.broadcast %cst_83 : f32 to vector<8x8xf32>
    %103 = arith.mulf %101, %102 : vector<8x8xf32>
    %104 = vector.broadcast %5 : vector<1x8xf32> to vector<8x8xf32>
    %105 = arith.addf %103, %104 : vector<8x8xf32>
    %cst_84 = arith.constant dense<0xFF800000> : vector<8xf32>
    %106 = vector.multi_reduction <maximumf>, %105, %cst_84 [1] : vector<8x8xf32> to vector<8xf32>
    %107 = vector.shape_cast %106 : vector<8xf32> to vector<8x1xf32>
    %108 = vector.broadcast %107 : vector<8x1xf32> to vector<8x8xf32>
    %109 = arith.subf %105, %108 : vector<8x8xf32>
    %110 = math.exp %109 : vector<8x8xf32>
    %cst_85 = arith.constant dense<0.000000e+00> : vector<8xf32>
    %111 = vector.multi_reduction <add>, %110, %cst_85 [1] : vector<8x8xf32> to vector<8xf32>
    %112 = vector.shape_cast %111 : vector<8xf32> to vector<8x1xf32>
    %113 = tpu.reciprocal %112 {approx = true} : vector<8x1xf32> -> vector<8x1xf32>
    %114 = vector.broadcast %113 : vector<8x1xf32> to vector<8x8xf32>
    %115 = arith.mulf %110, %114 : vector<8x8xf32>
    %116 = arith.truncf %115 : vector<8x8xf32> to vector<8x8xbf16>
    %117 = vector.extract_strided_slice %58 {offsets = [0, 16], sizes = [8, 8], strides = [1, 1]} : vector<8x32xbf16> to vector<8x8xbf16>
    %cst_86 = arith.constant dense<0.000000e+00> : vector<8x8xf32>
    %118 = tpu.matmul %116, %117, %cst_86 {dimension_numbers = #tpu.dot_dimension_numbers<[1], [0], [0], [1], [0, 0, 1, 1], [], []>} : vector<8x8xbf16>, vector<8x8xbf16>, vector<8x8xf32> -> vector<8x8xf32>
    %119 = vector.extract_strided_slice %56 {offsets = [0, 24], sizes = [8, 8], strides = [1, 1]} : vector<8x32xbf16> to vector<8x8xbf16>
    %120 = vector.extract_strided_slice %57 {offsets = [0, 24], sizes = [8, 8], strides = [1, 1]} : vector<8x32xbf16> to vector<8x8xbf16>
    %cst_87 = arith.constant dense<0.000000e+00> : vector<8x8xf32>
    %121 = tpu.matmul %119, %120, %cst_87 {dimension_numbers = #tpu.dot_dimension_numbers<[1], [1], [0], [0], [0, 0, 1, 0], [], []>} : vector<8x8xbf16>, vector<8x8xbf16>, vector<8x8xf32> -> vector<8x8xf32>
    %cst_88 = arith.constant 0.353553385 : f32
    %122 = vector.broadcast %cst_88 : f32 to vector<8x8xf32>
    %123 = arith.mulf %121, %122 : vector<8x8xf32>
    %124 = vector.broadcast %5 : vector<1x8xf32> to vector<8x8xf32>
    %125 = arith.addf %123, %124 : vector<8x8xf32>
    %cst_89 = arith.constant dense<0xFF800000> : vector<8xf32>
    %126 = vector.multi_reduction <maximumf>, %125, %cst_89 [1] : vector<8x8xf32> to vector<8xf32>
    %127 = vector.shape_cast %126 : vector<8xf32> to vector<8x1xf32>
    %128 = vector.broadcast %127 : vector<8x1xf32> to vector<8x8xf32>
    %129 = arith.subf %125, %128 : vector<8x8xf32>
    %130 = math.exp %129 : vector<8x8xf32>
    %cst_90 = arith.constant dense<0.000000e+00> : vector<8xf32>
    %131 = vector.multi_reduction <add>, %130, %cst_90 [1] : vector<8x8xf32> to vector<8xf32>
    %132 = vector.shape_cast %131 : vector<8xf32> to vector<8x1xf32>
    %133 = tpu.reciprocal %132 {approx = true} : vector<8x1xf32> -> vector<8x1xf32>
    %134 = vector.broadcast %133 : vector<8x1xf32> to vector<8x8xf32>
    %135 = arith.mulf %130, %134 : vector<8x8xf32>
    %136 = arith.truncf %135 : vector<8x8xf32> to vector<8x8xbf16>
    %137 = vector.extract_strided_slice %58 {offsets = [0, 24], sizes = [8, 8], strides = [1, 1]} : vector<8x32xbf16> to vector<8x8xbf16>
    %cst_91 = arith.constant dense<0.000000e+00> : vector<8x8xf32>
    %138 = tpu.matmul %136, %137, %cst_91 {dimension_numbers = #tpu.dot_dimension_numbers<[1], [0], [0], [1], [0, 0, 1, 1], [], []>} : vector<8x8xbf16>, vector<8x8xbf16>, vector<8x8xf32> -> vector<8x8xf32>
    %139 = tpu.concatenate %78, %98, %118, %138 in 1 : vector<8x8xf32>, vector<8x8xf32>, vector<8x8xf32>, vector<8x8xf32> -> vector<8x32xf32>
    %140 = arith.truncf %139 : vector<8x32xf32> to vector<8x32xbf16>
    %cst_92 = arith.constant dense<0.000000e+00> : vector<8x32xf32>
    %141 = tpu.matmul %140, %14, %cst_92 {dimension_numbers = #tpu.dot_dimension_numbers<[1], [0], [0], [1], [0, 0, 1, 1], [], []>} : vector<8x32xbf16>, vector<32x32xbf16>, vector<8x32xf32> -> vector<8x32xf32>
    %142 = vector.broadcast %16 : vector<1x32xf32> to vector<8x32xf32>
    %143 = arith.addf %141, %142 : vector<8x32xf32>
    %144 = arith.addf %1, %143 : vector<8x32xf32>
    %cst_93 = arith.constant dense<0.000000e+00> : vector<8xf32>
    %145 = vector.multi_reduction <add>, %144, %cst_93 [1] : vector<8x32xf32> to vector<8xf32>
    %146 = vector.shape_cast %145 : vector<8xf32> to vector<8x1xf32>
    %cst_94 = arith.constant 3.200000e+01 : f32
    %147 = vector.broadcast %cst_94 : f32 to vector<8x1xf32>
    %148 = arith.divf %146, %147 : vector<8x1xf32>
    %149 = vector.broadcast %148 : vector<8x1xf32> to vector<8x32xf32>
    %150 = arith.subf %144, %149 : vector<8x32xf32>
    %151 = arith.mulf %150, %150 : vector<8x32xf32>
    %cst_95 = arith.constant dense<0.000000e+00> : vector<8xf32>
    %152 = vector.multi_reduction <add>, %151, %cst_95 [1] : vector<8x32xf32> to vector<8xf32>
    %153 = vector.shape_cast %152 : vector<8xf32> to vector<8x1xf32>
    %cst_96 = arith.constant 3.200000e+01 : f32
    %154 = vector.broadcast %cst_96 : f32 to vector<8x1xf32>
    %155 = arith.divf %153, %154 : vector<8x1xf32>
    %156 = vector.broadcast %148 : vector<8x1xf32> to vector<8x32xf32>
    %157 = arith.subf %144, %156 : vector<8x32xf32>
    %cst_97 = arith.constant 9.99999974E-6 : f32
    %158 = vector.broadcast %cst_97 : f32 to vector<8x1xf32>
    %159 = arith.addf %155, %158 : vector<8x1xf32>
    %160 = math.rsqrt %159 : vector<8x1xf32>
    %161 = vector.broadcast %160 : vector<8x1xf32> to vector<8x32xf32>
    %162 = arith.mulf %157, %161 : vector<8x32xf32>
    %163 = vector.broadcast %18 : vector<1x32xf32> to vector<8x32xf32>
    %164 = arith.mulf %162, %163 : vector<8x32xf32>
    %165 = vector.broadcast %20 : vector<1x32xf32> to vector<8x32xf32>
    %166 = arith.addf %164, %165 : vector<8x32xf32>
    %167 = arith.truncf %166 : vector<8x32xf32> to vector<8x32xbf16>
    %cst_98 = arith.constant dense<0.000000e+00> : vector<8x32xf32>
    %168 = tpu.matmul %167, %22, %cst_98 {dimension_numbers = #tpu.dot_dimension_numbers<[1], [0], [0], [1], [0, 0, 1, 1], [], []>} : vector<8x32xbf16>, vector<32x32xbf16>, vector<8x32xf32> -> vector<8x32xf32>
    %169 = vector.broadcast %24 : vector<1x32xf32> to vector<8x32xf32>
    %170 = arith.addf %168, %169 : vector<8x32xf32>
    %cst_99 = arith.constant dense<0.000000e+00> : vector<8x64xf32>
    %171 = tpu.matmul %3, %26, %cst_99 {dimension_numbers = #tpu.dot_dimension_numbers<[1], [0], [0], [1], [0, 0, 1, 1], [], []>} : vector<8x32xbf16>, vector<32x64xbf16>, vector<8x64xf32> -> vector<8x64xf32>
    %172 = vector.broadcast %28 : vector<1x64xf32> to vector<8x64xf32>
    %173 = arith.addf %171, %172 : vector<8x64xf32>
    %174 = vector.extract_strided_slice %173 {offsets = [0, 0], sizes = [8, 32], strides = [1, 1]} : vector<8x64xf32> to vector<8x32xf32>
    %175 = vector.extract_strided_slice %173 {offsets = [0, 32], sizes = [8, 32], strides = [1, 1]} : vector<8x64xf32> to vector<8x32xf32>
    %176 = arith.truncf %170 : vector<8x32xf32> to vector<8x32xbf16>
    %177 = arith.truncf %174 : vector<8x32xf32> to vector<8x32xbf16>
    %178 = arith.truncf %175 : vector<8x32xf32> to vector<8x32xbf16>
    %179 = vector.extract_strided_slice %176 {offsets = [0, 0], sizes = [8, 8], strides = [1, 1]} : vector<8x32xbf16> to vector<8x8xbf16>
    %180 = vector.extract_strided_slice %177 {offsets = [0, 0], sizes = [8, 8], strides = [1, 1]} : vector<8x32xbf16> to vector<8x8xbf16>
    %cst_100 = arith.constant dense<0.000000e+00> : vector<8x8xf32>
    %181 = tpu.matmul %179, %180, %cst_100 {dimension_numbers = #tpu.dot_dimension_numbers<[1], [1], [0], [0], [0, 0, 1, 0], [], []>} : vector<8x8xbf16>, vector<8x8xbf16>, vector<8x8xf32> -> vector<8x8xf32>
    %cst_101 = arith.constant 0.353553385 : f32
    %182 = vector.broadcast %cst_101 : f32 to vector<8x8xf32>
    %183 = arith.mulf %181, %182 : vector<8x8xf32>
    %184 = vector.extract_strided_slice %8 {offsets = [0, 0, 0], sizes = [1, 8, 8], strides = [1, 1, 1]} : vector<4x8x8xf32> to vector<1x8x8xf32>
    %185 = vector.shape_cast %184 : vector<1x8x8xf32> to vector<8x8xf32>
    %186 = arith.addf %183, %185 : vector<8x8xf32>
    %cst_102 = arith.constant dense<0xFF800000> : vector<8xf32>
    %187 = vector.multi_reduction <maximumf>, %186, %cst_102 [1] : vector<8x8xf32> to vector<8xf32>
    %188 = vector.shape_cast %187 : vector<8xf32> to vector<8x1xf32>
    %189 = vector.broadcast %188 : vector<8x1xf32> to vector<8x8xf32>
    %190 = arith.subf %186, %189 : vector<8x8xf32>
    %191 = math.exp %190 : vector<8x8xf32>
    %cst_103 = arith.constant dense<0.000000e+00> : vector<8xf32>
    %192 = vector.multi_reduction <add>, %191, %cst_103 [1] : vector<8x8xf32> to vector<8xf32>
    %193 = vector.shape_cast %192 : vector<8xf32> to vector<8x1xf32>
    %194 = tpu.reciprocal %193 {approx = true} : vector<8x1xf32> -> vector<8x1xf32>
    %195 = vector.broadcast %194 : vector<8x1xf32> to vector<8x8xf32>
    %196 = arith.mulf %191, %195 : vector<8x8xf32>
    %197 = arith.truncf %196 : vector<8x8xf32> to vector<8x8xbf16>
    %198 = vector.extract_strided_slice %178 {offsets = [0, 0], sizes = [8, 8], strides = [1, 1]} : vector<8x32xbf16> to vector<8x8xbf16>
    %cst_104 = arith.constant dense<0.000000e+00> : vector<8x8xf32>
    %199 = tpu.matmul %197, %198, %cst_104 {dimension_numbers = #tpu.dot_dimension_numbers<[1], [0], [0], [1], [0, 0, 1, 1], [], []>} : vector<8x8xbf16>, vector<8x8xbf16>, vector<8x8xf32> -> vector<8x8xf32>
    %200 = vector.extract_strided_slice %176 {offsets = [0, 8], sizes = [8, 8], strides = [1, 1]} : vector<8x32xbf16> to vector<8x8xbf16>
    %201 = vector.extract_strided_slice %177 {offsets = [0, 8], sizes = [8, 8], strides = [1, 1]} : vector<8x32xbf16> to vector<8x8xbf16>
    %cst_105 = arith.constant dense<0.000000e+00> : vector<8x8xf32>
    %202 = tpu.matmul %200, %201, %cst_105 {dimension_numbers = #tpu.dot_dimension_numbers<[1], [1], [0], [0], [0, 0, 1, 0], [], []>} : vector<8x8xbf16>, vector<8x8xbf16>, vector<8x8xf32> -> vector<8x8xf32>
    %cst_106 = arith.constant 0.353553385 : f32
    %203 = vector.broadcast %cst_106 : f32 to vector<8x8xf32>
    %204 = arith.mulf %202, %203 : vector<8x8xf32>
    %205 = vector.extract_strided_slice %8 {offsets = [1, 0, 0], sizes = [1, 8, 8], strides = [1, 1, 1]} : vector<4x8x8xf32> to vector<1x8x8xf32>
    %206 = vector.shape_cast %205 : vector<1x8x8xf32> to vector<8x8xf32>
    %207 = arith.addf %204, %206 : vector<8x8xf32>
    %cst_107 = arith.constant dense<0xFF800000> : vector<8xf32>
    %208 = vector.multi_reduction <maximumf>, %207, %cst_107 [1] : vector<8x8xf32> to vector<8xf32>
    %209 = vector.shape_cast %208 : vector<8xf32> to vector<8x1xf32>
    %210 = vector.broadcast %209 : vector<8x1xf32> to vector<8x8xf32>
    %211 = arith.subf %207, %210 : vector<8x8xf32>
    %212 = math.exp %211 : vector<8x8xf32>
    %cst_108 = arith.constant dense<0.000000e+00> : vector<8xf32>
    %213 = vector.multi_reduction <add>, %212, %cst_108 [1] : vector<8x8xf32> to vector<8xf32>
    %214 = vector.shape_cast %213 : vector<8xf32> to vector<8x1xf32>
    %215 = tpu.reciprocal %214 {approx = true} : vector<8x1xf32> -> vector<8x1xf32>
    %216 = vector.broadcast %215 : vector<8x1xf32> to vector<8x8xf32>
    %217 = arith.mulf %212, %216 : vector<8x8xf32>
    %218 = arith.truncf %217 : vector<8x8xf32> to vector<8x8xbf16>
    %219 = vector.extract_strided_slice %178 {offsets = [0, 8], sizes = [8, 8], strides = [1, 1]} : vector<8x32xbf16> to vector<8x8xbf16>
    %cst_109 = arith.constant dense<0.000000e+00> : vector<8x8xf32>
    %220 = tpu.matmul %218, %219, %cst_109 {dimension_numbers = #tpu.dot_dimension_numbers<[1], [0], [0], [1], [0, 0, 1, 1], [], []>} : vector<8x8xbf16>, vector<8x8xbf16>, vector<8x8xf32> -> vector<8x8xf32>
    %221 = vector.extract_strided_slice %176 {offsets = [0, 16], sizes = [8, 8], strides = [1, 1]} : vector<8x32xbf16> to vector<8x8xbf16>
    %222 = vector.extract_strided_slice %177 {offsets = [0, 16], sizes = [8, 8], strides = [1, 1]} : vector<8x32xbf16> to vector<8x8xbf16>
    %cst_110 = arith.constant dense<0.000000e+00> : vector<8x8xf32>
    %223 = tpu.matmul %221, %222, %cst_110 {dimension_numbers = #tpu.dot_dimension_numbers<[1], [1], [0], [0], [0, 0, 1, 0], [], []>} : vector<8x8xbf16>, vector<8x8xbf16>, vector<8x8xf32> -> vector<8x8xf32>
    %cst_111 = arith.constant 0.353553385 : f32
    %224 = vector.broadcast %cst_111 : f32 to vector<8x8xf32>
    %225 = arith.mulf %223, %224 : vector<8x8xf32>
    %226 = vector.extract_strided_slice %8 {offsets = [2, 0, 0], sizes = [1, 8, 8], strides = [1, 1, 1]} : vector<4x8x8xf32> to vector<1x8x8xf32>
    %227 = vector.shape_cast %226 : vector<1x8x8xf32> to vector<8x8xf32>
    %228 = arith.addf %225, %227 : vector<8x8xf32>
    %cst_112 = arith.constant dense<0xFF800000> : vector<8xf32>
    %229 = vector.multi_reduction <maximumf>, %228, %cst_112 [1] : vector<8x8xf32> to vector<8xf32>
    %230 = vector.shape_cast %229 : vector<8xf32> to vector<8x1xf32>
    %231 = vector.broadcast %230 : vector<8x1xf32> to vector<8x8xf32>
    %232 = arith.subf %228, %231 : vector<8x8xf32>
    %233 = math.exp %232 : vector<8x8xf32>
    %cst_113 = arith.constant dense<0.000000e+00> : vector<8xf32>
    %234 = vector.multi_reduction <add>, %233, %cst_113 [1] : vector<8x8xf32> to vector<8xf32>
    %235 = vector.shape_cast %234 : vector<8xf32> to vector<8x1xf32>
    %236 = tpu.reciprocal %235 {approx = true} : vector<8x1xf32> -> vector<8x1xf32>
    %237 = vector.broadcast %236 : vector<8x1xf32> to vector<8x8xf32>
    %238 = arith.mulf %233, %237 : vector<8x8xf32>
    %239 = arith.truncf %238 : vector<8x8xf32> to vector<8x8xbf16>
    %240 = vector.extract_strided_slice %178 {offsets = [0, 16], sizes = [8, 8], strides = [1, 1]} : vector<8x32xbf16> to vector<8x8xbf16>
    %cst_114 = arith.constant dense<0.000000e+00> : vector<8x8xf32>
    %241 = tpu.matmul %239, %240, %cst_114 {dimension_numbers = #tpu.dot_dimension_numbers<[1], [0], [0], [1], [0, 0, 1, 1], [], []>} : vector<8x8xbf16>, vector<8x8xbf16>, vector<8x8xf32> -> vector<8x8xf32>
    %242 = vector.extract_strided_slice %176 {offsets = [0, 24], sizes = [8, 8], strides = [1, 1]} : vector<8x32xbf16> to vector<8x8xbf16>
    %243 = vector.extract_strided_slice %177 {offsets = [0, 24], sizes = [8, 8], strides = [1, 1]} : vector<8x32xbf16> to vector<8x8xbf16>
    %cst_115 = arith.constant dense<0.000000e+00> : vector<8x8xf32>
    %244 = tpu.matmul %242, %243, %cst_115 {dimension_numbers = #tpu.dot_dimension_numbers<[1], [1], [0], [0], [0, 0, 1, 0], [], []>} : vector<8x8xbf16>, vector<8x8xbf16>, vector<8x8xf32> -> vector<8x8xf32>
    %cst_116 = arith.constant 0.353553385 : f32
    %245 = vector.broadcast %cst_116 : f32 to vector<8x8xf32>
    %246 = arith.mulf %244, %245 : vector<8x8xf32>
    %247 = vector.extract_strided_slice %8 {offsets = [3, 0, 0], sizes = [1, 8, 8], strides = [1, 1, 1]} : vector<4x8x8xf32> to vector<1x8x8xf32>
    %248 = vector.shape_cast %247 : vector<1x8x8xf32> to vector<8x8xf32>
    %249 = arith.addf %246, %248 : vector<8x8xf32>
    %cst_117 = arith.constant dense<0xFF800000> : vector<8xf32>
    %250 = vector.multi_reduction <maximumf>, %249, %cst_117 [1] : vector<8x8xf32> to vector<8xf32>
    %251 = vector.shape_cast %250 : vector<8xf32> to vector<8x1xf32>
    %252 = vector.broadcast %251 : vector<8x1xf32> to vector<8x8xf32>
    %253 = arith.subf %249, %252 : vector<8x8xf32>
    %254 = math.exp %253 : vector<8x8xf32>
    %cst_118 = arith.constant dense<0.000000e+00> : vector<8xf32>
    %255 = vector.multi_reduction <add>, %254, %cst_118 [1] : vector<8x8xf32> to vector<8xf32>
    %256 = vector.shape_cast %255 : vector<8xf32> to vector<8x1xf32>
    %257 = tpu.reciprocal %256 {approx = true} : vector<8x1xf32> -> vector<8x1xf32>
    %258 = vector.broadcast %257 : vector<8x1xf32> to vector<8x8xf32>
    %259 = arith.mulf %254, %258 : vector<8x8xf32>
    %260 = arith.truncf %259 : vector<8x8xf32> to vector<8x8xbf16>
    %261 = vector.extract_strided_slice %178 {offsets = [0, 24], sizes = [8, 8], strides = [1, 1]} : vector<8x32xbf16> to vector<8x8xbf16>
    %cst_119 = arith.constant dense<0.000000e+00> : vector<8x8xf32>
    %262 = tpu.matmul %260, %261, %cst_119 {dimension_numbers = #tpu.dot_dimension_numbers<[1], [0], [0], [1], [0, 0, 1, 1], [], []>} : vector<8x8xbf16>, vector<8x8xbf16>, vector<8x8xf32> -> vector<8x8xf32>
    %263 = tpu.concatenate %199, %220, %241, %262 in 1 : vector<8x8xf32>, vector<8x8xf32>, vector<8x8xf32>, vector<8x8xf32> -> vector<8x32xf32>
    %264 = arith.truncf %263 : vector<8x32xf32> to vector<8x32xbf16>
    %cst_120 = arith.constant dense<0.000000e+00> : vector<8x32xf32>
    %265 = tpu.matmul %264, %30, %cst_120 {dimension_numbers = #tpu.dot_dimension_numbers<[1], [0], [0], [1], [0, 0, 1, 1], [], []>} : vector<8x32xbf16>, vector<32x32xbf16>, vector<8x32xf32> -> vector<8x32xf32>
    %266 = vector.broadcast %32 : vector<1x32xf32> to vector<8x32xf32>
    %267 = arith.addf %265, %266 : vector<8x32xf32>
    %268 = arith.addf %166, %267 : vector<8x32xf32>
    %cst_121 = arith.constant dense<0.000000e+00> : vector<8xf32>
    %269 = vector.multi_reduction <add>, %268, %cst_121 [1] : vector<8x32xf32> to vector<8xf32>
    %270 = vector.shape_cast %269 : vector<8xf32> to vector<8x1xf32>
    %cst_122 = arith.constant 3.200000e+01 : f32
    %271 = vector.broadcast %cst_122 : f32 to vector<8x1xf32>
    %272 = arith.divf %270, %271 : vector<8x1xf32>
    %273 = vector.broadcast %272 : vector<8x1xf32> to vector<8x32xf32>
    %274 = arith.subf %268, %273 : vector<8x32xf32>
    %275 = arith.mulf %274, %274 : vector<8x32xf32>
    %cst_123 = arith.constant dense<0.000000e+00> : vector<8xf32>
    %276 = vector.multi_reduction <add>, %275, %cst_123 [1] : vector<8x32xf32> to vector<8xf32>
    %277 = vector.shape_cast %276 : vector<8xf32> to vector<8x1xf32>
    %cst_124 = arith.constant 3.200000e+01 : f32
    %278 = vector.broadcast %cst_124 : f32 to vector<8x1xf32>
    %279 = arith.divf %277, %278 : vector<8x1xf32>
    %280 = vector.broadcast %272 : vector<8x1xf32> to vector<8x32xf32>
    %281 = arith.subf %268, %280 : vector<8x32xf32>
    %cst_125 = arith.constant 9.99999974E-6 : f32
    %282 = vector.broadcast %cst_125 : f32 to vector<8x1xf32>
    %283 = arith.addf %279, %282 : vector<8x1xf32>
    %284 = math.rsqrt %283 : vector<8x1xf32>
    %285 = vector.broadcast %284 : vector<8x1xf32> to vector<8x32xf32>
    %286 = arith.mulf %281, %285 : vector<8x32xf32>
    %287 = vector.broadcast %34 : vector<1x32xf32> to vector<8x32xf32>
    %288 = arith.mulf %286, %287 : vector<8x32xf32>
    %289 = vector.broadcast %36 : vector<1x32xf32> to vector<8x32xf32>
    %290 = arith.addf %288, %289 : vector<8x32xf32>
    %291 = arith.truncf %290 : vector<8x32xf32> to vector<8x32xbf16>
    %cst_126 = arith.constant dense<0.000000e+00> : vector<8x64xf32>
    %292 = tpu.matmul %291, %38, %cst_126 {dimension_numbers = #tpu.dot_dimension_numbers<[1], [0], [0], [1], [0, 0, 1, 1], [], []>} : vector<8x32xbf16>, vector<32x64xbf16>, vector<8x64xf32> -> vector<8x64xf32>
    %293 = vector.broadcast %40 : vector<1x64xf32> to vector<8x64xf32>
    %294 = arith.addf %292, %293 : vector<8x64xf32>
    %cst_127 = arith.constant 0.000000e+00 : f32
    %295 = vector.broadcast %cst_127 : f32 to vector<8x64xf32>
    %296 = arith.maximumf %294, %295 : vector<8x64xf32>
    %297 = arith.truncf %296 : vector<8x64xf32> to vector<8x64xbf16>
    %cst_128 = arith.constant dense<0.000000e+00> : vector<8x32xf32>
    %298 = tpu.matmul %297, %42, %cst_128 {dimension_numbers = #tpu.dot_dimension_numbers<[1], [0], [0], [1], [0, 0, 1, 1], [], []>} : vector<8x64xbf16>, vector<64x32xbf16>, vector<8x32xf32> -> vector<8x32xf32>
    %299 = vector.broadcast %44 : vector<1x32xf32> to vector<8x32xf32>
    %300 = arith.addf %298, %299 : vector<8x32xf32>
    %301 = arith.addf %290, %300 : vector<8x32xf32>
    %cst_129 = arith.constant dense<0.000000e+00> : vector<8xf32>
    %302 = vector.multi_reduction <add>, %301, %cst_129 [1] : vector<8x32xf32> to vector<8xf32>
    %303 = vector.shape_cast %302 : vector<8xf32> to vector<8x1xf32>
    %cst_130 = arith.constant 3.200000e+01 : f32
    %304 = vector.broadcast %cst_130 : f32 to vector<8x1xf32>
    %305 = arith.divf %303, %304 : vector<8x1xf32>
    %306 = vector.broadcast %305 : vector<8x1xf32> to vector<8x32xf32>
    %307 = arith.subf %301, %306 : vector<8x32xf32>
    %308 = arith.mulf %307, %307 : vector<8x32xf32>
    %cst_131 = arith.constant dense<0.000000e+00> : vector<8xf32>
    %309 = vector.multi_reduction <add>, %308, %cst_131 [1] : vector<8x32xf32> to vector<8xf32>
    %310 = vector.shape_cast %309 : vector<8xf32> to vector<8x1xf32>
    %cst_132 = arith.constant 3.200000e+01 : f32
    %311 = vector.broadcast %cst_132 : f32 to vector<8x1xf32>
    %312 = arith.divf %310, %311 : vector<8x1xf32>
    %313 = vector.broadcast %305 : vector<8x1xf32> to vector<8x32xf32>
    %314 = arith.subf %301, %313 : vector<8x32xf32>
    %cst_133 = arith.constant 9.99999974E-6 : f32
    %315 = vector.broadcast %cst_133 : f32 to vector<8x1xf32>
    %316 = arith.addf %312, %315 : vector<8x1xf32>
    %317 = math.rsqrt %316 : vector<8x1xf32>
    %318 = vector.broadcast %317 : vector<8x1xf32> to vector<8x32xf32>
    %319 = arith.mulf %314, %318 : vector<8x32xf32>
    %320 = vector.broadcast %46 : vector<1x32xf32> to vector<8x32xf32>
    %321 = arith.mulf %319, %320 : vector<8x32xf32>
    %322 = vector.broadcast %48 : vector<1x32xf32> to vector<8x32xf32>
    %323 = arith.addf %321, %322 : vector<8x32xf32>
    %c1 = arith.constant 1 : index
    %c0_134 = arith.constant 0 : index
    %c0_135 = arith.constant 0 : index
    %324 = vector.load %arg5[%c1, %c0_134, %c0_135] : memref<2x32x96xbf16, #tpu.memory_space<vmem>>, vector<1x32x96xbf16>
    %325 = vector.shape_cast %324 : vector<1x32x96xbf16> to vector<32x96xbf16>
    %c1_136 = arith.constant 1 : index
    %c0_137 = arith.constant 0 : index
    %c0_138 = arith.constant 0 : index
    %326 = vector.load %arg6[%c1_136, %c0_137, %c0_138] : memref<2x1x96xf32, #tpu.memory_space<vmem>>, vector<1x1x96xf32>
    %327 = vector.shape_cast %326 : vector<1x1x96xf32> to vector<1x96xf32>
    %c1_139 = arith.constant 1 : index
    %c0_140 = arith.constant 0 : index
    %c0_141 = arith.constant 0 : index
    %328 = vector.load %arg7[%c1_139, %c0_140, %c0_141] : memref<2x32x32xbf16, #tpu.memory_space<vmem>>, vector<1x32x32xbf16>
    %329 = vector.shape_cast %328 : vector<1x32x32xbf16> to vector<32x32xbf16>
    %c1_142 = arith.constant 1 : index
    %c0_143 = arith.constant 0 : index
    %c0_144 = arith.constant 0 : index
    %330 = vector.load %arg8[%c1_142, %c0_143, %c0_144] : memref<2x1x32xf32, #tpu.memory_space<vmem>>, vector<1x1x32xf32>
    %331 = vector.shape_cast %330 : vector<1x1x32xf32> to vector<1x32xf32>
    %c1_145 = arith.constant 1 : index
    %c0_146 = arith.constant 0 : index
    %c0_147 = arith.constant 0 : index
    %332 = vector.load %arg9[%c1_145, %c0_146, %c0_147] : memref<2x1x32xf32, #tpu.memory_space<vmem>>, vector<1x1x32xf32>
    %333 = vector.shape_cast %332 : vector<1x1x32xf32> to vector<1x32xf32>
    %c1_148 = arith.constant 1 : index
    %c0_149 = arith.constant 0 : index
    %c0_150 = arith.constant 0 : index
    %334 = vector.load %arg10[%c1_148, %c0_149, %c0_150] : memref<2x1x32xf32, #tpu.memory_space<vmem>>, vector<1x1x32xf32>
    %335 = vector.shape_cast %334 : vector<1x1x32xf32> to vector<1x32xf32>
    %c1_151 = arith.constant 1 : index
    %c0_152 = arith.constant 0 : index
    %c0_153 = arith.constant 0 : index
    %336 = vector.load %arg11[%c1_151, %c0_152, %c0_153] : memref<2x32x32xbf16, #tpu.memory_space<vmem>>, vector<1x32x32xbf16>
    %337 = vector.shape_cast %336 : vector<1x32x32xbf16> to vector<32x32xbf16>
    %c1_154 = arith.constant 1 : index
    %c0_155 = arith.constant 0 : index
    %c0_156 = arith.constant 0 : index
    %338 = vector.load %arg12[%c1_154, %c0_155, %c0_156] : memref<2x1x32xf32, #tpu.memory_space<vmem>>, vector<1x1x32xf32>
    %339 = vector.shape_cast %338 : vector<1x1x32xf32> to vector<1x32xf32>
    %c1_157 = arith.constant 1 : index
    %c0_158 = arith.constant 0 : index
    %c0_159 = arith.constant 0 : index
    %340 = vector.load %arg13[%c1_157, %c0_158, %c0_159] : memref<2x32x64xbf16, #tpu.memory_space<vmem>>, vector<1x32x64xbf16>
    %341 = vector.shape_cast %340 : vector<1x32x64xbf16> to vector<32x64xbf16>
    %c1_160 = arith.constant 1 : index
    %c0_161 = arith.constant 0 : index
    %c0_162 = arith.constant 0 : index
    %342 = vector.load %arg14[%c1_160, %c0_161, %c0_162] : memref<2x1x64xf32, #tpu.memory_space<vmem>>, vector<1x1x64xf32>
    %343 = vector.shape_cast %342 : vector<1x1x64xf32> to vector<1x64xf32>
    %c1_163 = arith.constant 1 : index
    %c0_164 = arith.constant 0 : index
    %c0_165 = arith.constant 0 : index
    %344 = vector.load %arg15[%c1_163, %c0_164, %c0_165] : memref<2x32x32xbf16, #tpu.memory_space<vmem>>, vector<1x32x32xbf16>
    %345 = vector.shape_cast %344 : vector<1x32x32xbf16> to vector<32x32xbf16>
    %c1_166 = arith.constant 1 : index
    %c0_167 = arith.constant 0 : index
    %c0_168 = arith.constant 0 : index
    %346 = vector.load %arg16[%c1_166, %c0_167, %c0_168] : memref<2x1x32xf32, #tpu.memory_space<vmem>>, vector<1x1x32xf32>
    %347 = vector.shape_cast %346 : vector<1x1x32xf32> to vector<1x32xf32>
    %c1_169 = arith.constant 1 : index
    %c0_170 = arith.constant 0 : index
    %c0_171 = arith.constant 0 : index
    %348 = vector.load %arg17[%c1_169, %c0_170, %c0_171] : memref<2x1x32xf32, #tpu.memory_space<vmem>>, vector<1x1x32xf32>
    %349 = vector.shape_cast %348 : vector<1x1x32xf32> to vector<1x32xf32>
    %c1_172 = arith.constant 1 : index
    %c0_173 = arith.constant 0 : index
    %c0_174 = arith.constant 0 : index
    %350 = vector.load %arg18[%c1_172, %c0_173, %c0_174] : memref<2x1x32xf32, #tpu.memory_space<vmem>>, vector<1x1x32xf32>
    %351 = vector.shape_cast %350 : vector<1x1x32xf32> to vector<1x32xf32>
    %c1_175 = arith.constant 1 : index
    %c0_176 = arith.constant 0 : index
    %c0_177 = arith.constant 0 : index
    %352 = vector.load %arg19[%c1_175, %c0_176, %c0_177] : memref<2x32x64xbf16, #tpu.memory_space<vmem>>, vector<1x32x64xbf16>
    %353 = vector.shape_cast %352 : vector<1x32x64xbf16> to vector<32x64xbf16>
    %c1_178 = arith.constant 1 : index
    %c0_179 = arith.constant 0 : index
    %c0_180 = arith.constant 0 : index
    %354 = vector.load %arg20[%c1_178, %c0_179, %c0_180] : memref<2x1x64xf32, #tpu.memory_space<vmem>>, vector<1x1x64xf32>
    %355 = vector.shape_cast %354 : vector<1x1x64xf32> to vector<1x64xf32>
    %c1_181 = arith.constant 1 : index
    %c0_182 = arith.constant 0 : index
    %c0_183 = arith.constant 0 : index
    %356 = vector.load %arg21[%c1_181, %c0_182, %c0_183] : memref<2x64x32xbf16, #tpu.memory_space<vmem>>, vector<1x64x32xbf16>
    %357 = vector.shape_cast %356 : vector<1x64x32xbf16> to vector<64x32xbf16>
    %c1_184 = arith.constant 1 : index
    %c0_185 = arith.constant 0 : index
    %c0_186 = arith.constant 0 : index
    %358 = vector.load %arg22[%c1_184, %c0_185, %c0_186] : memref<2x1x32xf32, #tpu.memory_space<vmem>>, vector<1x1x32xf32>
    %359 = vector.shape_cast %358 : vector<1x1x32xf32> to vector<1x32xf32>
    %c1_187 = arith.constant 1 : index
    %c0_188 = arith.constant 0 : index
    %c0_189 = arith.constant 0 : index
    %360 = vector.load %arg23[%c1_187, %c0_188, %c0_189] : memref<2x1x32xf32, #tpu.memory_space<vmem>>, vector<1x1x32xf32>
    %361 = vector.shape_cast %360 : vector<1x1x32xf32> to vector<1x32xf32>
    %c1_190 = arith.constant 1 : index
    %c0_191 = arith.constant 0 : index
    %c0_192 = arith.constant 0 : index
    %362 = vector.load %arg24[%c1_190, %c0_191, %c0_192] : memref<2x1x32xf32, #tpu.memory_space<vmem>>, vector<1x1x32xf32>
    %363 = vector.shape_cast %362 : vector<1x1x32xf32> to vector<1x32xf32>
    %364 = arith.truncf %323 : vector<8x32xf32> to vector<8x32xbf16>
    %cst_193 = arith.constant dense<0.000000e+00> : vector<8x96xf32>
    %365 = tpu.matmul %364, %325, %cst_193 {dimension_numbers = #tpu.dot_dimension_numbers<[1], [0], [0], [1], [0, 0, 1, 1], [], []>} : vector<8x32xbf16>, vector<32x96xbf16>, vector<8x96xf32> -> vector<8x96xf32>
    %366 = vector.broadcast %327 : vector<1x96xf32> to vector<8x96xf32>
    %367 = arith.addf %365, %366 : vector<8x96xf32>
    %368 = vector.extract_strided_slice %367 {offsets = [0, 0], sizes = [8, 32], strides = [1, 1]} : vector<8x96xf32> to vector<8x32xf32>
    %369 = vector.extract_strided_slice %367 {offsets = [0, 32], sizes = [8, 32], strides = [1, 1]} : vector<8x96xf32> to vector<8x32xf32>
    %370 = vector.extract_strided_slice %367 {offsets = [0, 64], sizes = [8, 32], strides = [1, 1]} : vector<8x96xf32> to vector<8x32xf32>
    %371 = arith.truncf %368 : vector<8x32xf32> to vector<8x32xbf16>
    %372 = arith.truncf %369 : vector<8x32xf32> to vector<8x32xbf16>
    %373 = arith.truncf %370 : vector<8x32xf32> to vector<8x32xbf16>
    %374 = vector.extract_strided_slice %371 {offsets = [0, 0], sizes = [8, 8], strides = [1, 1]} : vector<8x32xbf16> to vector<8x8xbf16>
    %375 = vector.extract_strided_slice %372 {offsets = [0, 0], sizes = [8, 8], strides = [1, 1]} : vector<8x32xbf16> to vector<8x8xbf16>
    %cst_194 = arith.constant dense<0.000000e+00> : vector<8x8xf32>
    %376 = tpu.matmul %374, %375, %cst_194 {dimension_numbers = #tpu.dot_dimension_numbers<[1], [1], [0], [0], [0, 0, 1, 0], [], []>} : vector<8x8xbf16>, vector<8x8xbf16>, vector<8x8xf32> -> vector<8x8xf32>
    %cst_195 = arith.constant 0.353553385 : f32
    %377 = vector.broadcast %cst_195 : f32 to vector<8x8xf32>
    %378 = arith.mulf %376, %377 : vector<8x8xf32>
    %379 = vector.broadcast %5 : vector<1x8xf32> to vector<8x8xf32>
    %380 = arith.addf %378, %379 : vector<8x8xf32>
    %cst_196 = arith.constant dense<0xFF800000> : vector<8xf32>
    %381 = vector.multi_reduction <maximumf>, %380, %cst_196 [1] : vector<8x8xf32> to vector<8xf32>
    %382 = vector.shape_cast %381 : vector<8xf32> to vector<8x1xf32>
    %383 = vector.broadcast %382 : vector<8x1xf32> to vector<8x8xf32>
    %384 = arith.subf %380, %383 : vector<8x8xf32>
    %385 = math.exp %384 : vector<8x8xf32>
    %cst_197 = arith.constant dense<0.000000e+00> : vector<8xf32>
    %386 = vector.multi_reduction <add>, %385, %cst_197 [1] : vector<8x8xf32> to vector<8xf32>
    %387 = vector.shape_cast %386 : vector<8xf32> to vector<8x1xf32>
    %388 = tpu.reciprocal %387 {approx = true} : vector<8x1xf32> -> vector<8x1xf32>
    %389 = vector.broadcast %388 : vector<8x1xf32> to vector<8x8xf32>
    %390 = arith.mulf %385, %389 : vector<8x8xf32>
    %391 = arith.truncf %390 : vector<8x8xf32> to vector<8x8xbf16>
    %392 = vector.extract_strided_slice %373 {offsets = [0, 0], sizes = [8, 8], strides = [1, 1]} : vector<8x32xbf16> to vector<8x8xbf16>
    %cst_198 = arith.constant dense<0.000000e+00> : vector<8x8xf32>
    %393 = tpu.matmul %391, %392, %cst_198 {dimension_numbers = #tpu.dot_dimension_numbers<[1], [0], [0], [1], [0, 0, 1, 1], [], []>} : vector<8x8xbf16>, vector<8x8xbf16>, vector<8x8xf32> -> vector<8x8xf32>
    %394 = vector.extract_strided_slice %371 {offsets = [0, 8], sizes = [8, 8], strides = [1, 1]} : vector<8x32xbf16> to vector<8x8xbf16>
    %395 = vector.extract_strided_slice %372 {offsets = [0, 8], sizes = [8, 8], strides = [1, 1]} : vector<8x32xbf16> to vector<8x8xbf16>
    %cst_199 = arith.constant dense<0.000000e+00> : vector<8x8xf32>
    %396 = tpu.matmul %394, %395, %cst_199 {dimension_numbers = #tpu.dot_dimension_numbers<[1], [1], [0], [0], [0, 0, 1, 0], [], []>} : vector<8x8xbf16>, vector<8x8xbf16>, vector<8x8xf32> -> vector<8x8xf32>
    %cst_200 = arith.constant 0.353553385 : f32
    %397 = vector.broadcast %cst_200 : f32 to vector<8x8xf32>
    %398 = arith.mulf %396, %397 : vector<8x8xf32>
    %399 = vector.broadcast %5 : vector<1x8xf32> to vector<8x8xf32>
    %400 = arith.addf %398, %399 : vector<8x8xf32>
    %cst_201 = arith.constant dense<0xFF800000> : vector<8xf32>
    %401 = vector.multi_reduction <maximumf>, %400, %cst_201 [1] : vector<8x8xf32> to vector<8xf32>
    %402 = vector.shape_cast %401 : vector<8xf32> to vector<8x1xf32>
    %403 = vector.broadcast %402 : vector<8x1xf32> to vector<8x8xf32>
    %404 = arith.subf %400, %403 : vector<8x8xf32>
    %405 = math.exp %404 : vector<8x8xf32>
    %cst_202 = arith.constant dense<0.000000e+00> : vector<8xf32>
    %406 = vector.multi_reduction <add>, %405, %cst_202 [1] : vector<8x8xf32> to vector<8xf32>
    %407 = vector.shape_cast %406 : vector<8xf32> to vector<8x1xf32>
    %408 = tpu.reciprocal %407 {approx = true} : vector<8x1xf32> -> vector<8x1xf32>
    %409 = vector.broadcast %408 : vector<8x1xf32> to vector<8x8xf32>
    %410 = arith.mulf %405, %409 : vector<8x8xf32>
    %411 = arith.truncf %410 : vector<8x8xf32> to vector<8x8xbf16>
    %412 = vector.extract_strided_slice %373 {offsets = [0, 8], sizes = [8, 8], strides = [1, 1]} : vector<8x32xbf16> to vector<8x8xbf16>
    %cst_203 = arith.constant dense<0.000000e+00> : vector<8x8xf32>
    %413 = tpu.matmul %411, %412, %cst_203 {dimension_numbers = #tpu.dot_dimension_numbers<[1], [0], [0], [1], [0, 0, 1, 1], [], []>} : vector<8x8xbf16>, vector<8x8xbf16>, vector<8x8xf32> -> vector<8x8xf32>
    %414 = vector.extract_strided_slice %371 {offsets = [0, 16], sizes = [8, 8], strides = [1, 1]} : vector<8x32xbf16> to vector<8x8xbf16>
    %415 = vector.extract_strided_slice %372 {offsets = [0, 16], sizes = [8, 8], strides = [1, 1]} : vector<8x32xbf16> to vector<8x8xbf16>
    %cst_204 = arith.constant dense<0.000000e+00> : vector<8x8xf32>
    %416 = tpu.matmul %414, %415, %cst_204 {dimension_numbers = #tpu.dot_dimension_numbers<[1], [1], [0], [0], [0, 0, 1, 0], [], []>} : vector<8x8xbf16>, vector<8x8xbf16>, vector<8x8xf32> -> vector<8x8xf32>
    %cst_205 = arith.constant 0.353553385 : f32
    %417 = vector.broadcast %cst_205 : f32 to vector<8x8xf32>
    %418 = arith.mulf %416, %417 : vector<8x8xf32>
    %419 = vector.broadcast %5 : vector<1x8xf32> to vector<8x8xf32>
    %420 = arith.addf %418, %419 : vector<8x8xf32>
    %cst_206 = arith.constant dense<0xFF800000> : vector<8xf32>
    %421 = vector.multi_reduction <maximumf>, %420, %cst_206 [1] : vector<8x8xf32> to vector<8xf32>
    %422 = vector.shape_cast %421 : vector<8xf32> to vector<8x1xf32>
    %423 = vector.broadcast %422 : vector<8x1xf32> to vector<8x8xf32>
    %424 = arith.subf %420, %423 : vector<8x8xf32>
    %425 = math.exp %424 : vector<8x8xf32>
    %cst_207 = arith.constant dense<0.000000e+00> : vector<8xf32>
    %426 = vector.multi_reduction <add>, %425, %cst_207 [1] : vector<8x8xf32> to vector<8xf32>
    %427 = vector.shape_cast %426 : vector<8xf32> to vector<8x1xf32>
    %428 = tpu.reciprocal %427 {approx = true} : vector<8x1xf32> -> vector<8x1xf32>
    %429 = vector.broadcast %428 : vector<8x1xf32> to vector<8x8xf32>
    %430 = arith.mulf %425, %429 : vector<8x8xf32>
    %431 = arith.truncf %430 : vector<8x8xf32> to vector<8x8xbf16>
    %432 = vector.extract_strided_slice %373 {offsets = [0, 16], sizes = [8, 8], strides = [1, 1]} : vector<8x32xbf16> to vector<8x8xbf16>
    %cst_208 = arith.constant dense<0.000000e+00> : vector<8x8xf32>
    %433 = tpu.matmul %431, %432, %cst_208 {dimension_numbers = #tpu.dot_dimension_numbers<[1], [0], [0], [1], [0, 0, 1, 1], [], []>} : vector<8x8xbf16>, vector<8x8xbf16>, vector<8x8xf32> -> vector<8x8xf32>
    %434 = vector.extract_strided_slice %371 {offsets = [0, 24], sizes = [8, 8], strides = [1, 1]} : vector<8x32xbf16> to vector<8x8xbf16>
    %435 = vector.extract_strided_slice %372 {offsets = [0, 24], sizes = [8, 8], strides = [1, 1]} : vector<8x32xbf16> to vector<8x8xbf16>
    %cst_209 = arith.constant dense<0.000000e+00> : vector<8x8xf32>
    %436 = tpu.matmul %434, %435, %cst_209 {dimension_numbers = #tpu.dot_dimension_numbers<[1], [1], [0], [0], [0, 0, 1, 0], [], []>} : vector<8x8xbf16>, vector<8x8xbf16>, vector<8x8xf32> -> vector<8x8xf32>
    %cst_210 = arith.constant 0.353553385 : f32
    %437 = vector.broadcast %cst_210 : f32 to vector<8x8xf32>
    %438 = arith.mulf %436, %437 : vector<8x8xf32>
    %439 = vector.broadcast %5 : vector<1x8xf32> to vector<8x8xf32>
    %440 = arith.addf %438, %439 : vector<8x8xf32>
    %cst_211 = arith.constant dense<0xFF800000> : vector<8xf32>
    %441 = vector.multi_reduction <maximumf>, %440, %cst_211 [1] : vector<8x8xf32> to vector<8xf32>
    %442 = vector.shape_cast %441 : vector<8xf32> to vector<8x1xf32>
    %443 = vector.broadcast %442 : vector<8x1xf32> to vector<8x8xf32>
    %444 = arith.subf %440, %443 : vector<8x8xf32>
    %445 = math.exp %444 : vector<8x8xf32>
    %cst_212 = arith.constant dense<0.000000e+00> : vector<8xf32>
    %446 = vector.multi_reduction <add>, %445, %cst_212 [1] : vector<8x8xf32> to vector<8xf32>
    %447 = vector.shape_cast %446 : vector<8xf32> to vector<8x1xf32>
    %448 = tpu.reciprocal %447 {approx = true} : vector<8x1xf32> -> vector<8x1xf32>
    %449 = vector.broadcast %448 : vector<8x1xf32> to vector<8x8xf32>
    %450 = arith.mulf %445, %449 : vector<8x8xf32>
    %451 = arith.truncf %450 : vector<8x8xf32> to vector<8x8xbf16>
    %452 = vector.extract_strided_slice %373 {offsets = [0, 24], sizes = [8, 8], strides = [1, 1]} : vector<8x32xbf16> to vector<8x8xbf16>
    %cst_213 = arith.constant dense<0.000000e+00> : vector<8x8xf32>
    %453 = tpu.matmul %451, %452, %cst_213 {dimension_numbers = #tpu.dot_dimension_numbers<[1], [0], [0], [1], [0, 0, 1, 1], [], []>} : vector<8x8xbf16>, vector<8x8xbf16>, vector<8x8xf32> -> vector<8x8xf32>
    %454 = tpu.concatenate %393, %413, %433, %453 in 1 : vector<8x8xf32>, vector<8x8xf32>, vector<8x8xf32>, vector<8x8xf32> -> vector<8x32xf32>
    %455 = arith.truncf %454 : vector<8x32xf32> to vector<8x32xbf16>
    %cst_214 = arith.constant dense<0.000000e+00> : vector<8x32xf32>
    %456 = tpu.matmul %455, %329, %cst_214 {dimension_numbers = #tpu.dot_dimension_numbers<[1], [0], [0], [1], [0, 0, 1, 1], [], []>} : vector<8x32xbf16>, vector<32x32xbf16>, vector<8x32xf32> -> vector<8x32xf32>
    %457 = vector.broadcast %331 : vector<1x32xf32> to vector<8x32xf32>
    %458 = arith.addf %456, %457 : vector<8x32xf32>
    %459 = arith.addf %323, %458 : vector<8x32xf32>
    %cst_215 = arith.constant dense<0.000000e+00> : vector<8xf32>
    %460 = vector.multi_reduction <add>, %459, %cst_215 [1] : vector<8x32xf32> to vector<8xf32>
    %461 = vector.shape_cast %460 : vector<8xf32> to vector<8x1xf32>
    %cst_216 = arith.constant 3.200000e+01 : f32
    %462 = vector.broadcast %cst_216 : f32 to vector<8x1xf32>
    %463 = arith.divf %461, %462 : vector<8x1xf32>
    %464 = vector.broadcast %463 : vector<8x1xf32> to vector<8x32xf32>
    %465 = arith.subf %459, %464 : vector<8x32xf32>
    %466 = arith.mulf %465, %465 : vector<8x32xf32>
    %cst_217 = arith.constant dense<0.000000e+00> : vector<8xf32>
    %467 = vector.multi_reduction <add>, %466, %cst_217 [1] : vector<8x32xf32> to vector<8xf32>
    %468 = vector.shape_cast %467 : vector<8xf32> to vector<8x1xf32>
    %cst_218 = arith.constant 3.200000e+01 : f32
    %469 = vector.broadcast %cst_218 : f32 to vector<8x1xf32>
    %470 = arith.divf %468, %469 : vector<8x1xf32>
    %471 = vector.broadcast %463 : vector<8x1xf32> to vector<8x32xf32>
    %472 = arith.subf %459, %471 : vector<8x32xf32>
    %cst_219 = arith.constant 9.99999974E-6 : f32
    %473 = vector.broadcast %cst_219 : f32 to vector<8x1xf32>
    %474 = arith.addf %470, %473 : vector<8x1xf32>
    %475 = math.rsqrt %474 : vector<8x1xf32>
    %476 = vector.broadcast %475 : vector<8x1xf32> to vector<8x32xf32>
    %477 = arith.mulf %472, %476 : vector<8x32xf32>
    %478 = vector.broadcast %333 : vector<1x32xf32> to vector<8x32xf32>
    %479 = arith.mulf %477, %478 : vector<8x32xf32>
    %480 = vector.broadcast %335 : vector<1x32xf32> to vector<8x32xf32>
    %481 = arith.addf %479, %480 : vector<8x32xf32>
    %482 = arith.truncf %481 : vector<8x32xf32> to vector<8x32xbf16>
    %cst_220 = arith.constant dense<0.000000e+00> : vector<8x32xf32>
    %483 = tpu.matmul %482, %337, %cst_220 {dimension_numbers = #tpu.dot_dimension_numbers<[1], [0], [0], [1], [0, 0, 1, 1], [], []>} : vector<8x32xbf16>, vector<32x32xbf16>, vector<8x32xf32> -> vector<8x32xf32>
    %484 = vector.broadcast %339 : vector<1x32xf32> to vector<8x32xf32>
    %485 = arith.addf %483, %484 : vector<8x32xf32>
    %cst_221 = arith.constant dense<0.000000e+00> : vector<8x64xf32>
    %486 = tpu.matmul %3, %341, %cst_221 {dimension_numbers = #tpu.dot_dimension_numbers<[1], [0], [0], [1], [0, 0, 1, 1], [], []>} : vector<8x32xbf16>, vector<32x64xbf16>, vector<8x64xf32> -> vector<8x64xf32>
    %487 = vector.broadcast %343 : vector<1x64xf32> to vector<8x64xf32>
    %488 = arith.addf %486, %487 : vector<8x64xf32>
    %489 = vector.extract_strided_slice %488 {offsets = [0, 0], sizes = [8, 32], strides = [1, 1]} : vector<8x64xf32> to vector<8x32xf32>
    %490 = vector.extract_strided_slice %488 {offsets = [0, 32], sizes = [8, 32], strides = [1, 1]} : vector<8x64xf32> to vector<8x32xf32>
    %491 = arith.truncf %485 : vector<8x32xf32> to vector<8x32xbf16>
    %492 = arith.truncf %489 : vector<8x32xf32> to vector<8x32xbf16>
    %493 = arith.truncf %490 : vector<8x32xf32> to vector<8x32xbf16>
    %494 = vector.extract_strided_slice %491 {offsets = [0, 0], sizes = [8, 8], strides = [1, 1]} : vector<8x32xbf16> to vector<8x8xbf16>
    %495 = vector.extract_strided_slice %492 {offsets = [0, 0], sizes = [8, 8], strides = [1, 1]} : vector<8x32xbf16> to vector<8x8xbf16>
    %cst_222 = arith.constant dense<0.000000e+00> : vector<8x8xf32>
    %496 = tpu.matmul %494, %495, %cst_222 {dimension_numbers = #tpu.dot_dimension_numbers<[1], [1], [0], [0], [0, 0, 1, 0], [], []>} : vector<8x8xbf16>, vector<8x8xbf16>, vector<8x8xf32> -> vector<8x8xf32>
    %cst_223 = arith.constant 0.353553385 : f32
    %497 = vector.broadcast %cst_223 : f32 to vector<8x8xf32>
    %498 = arith.mulf %496, %497 : vector<8x8xf32>
    %499 = vector.extract_strided_slice %8 {offsets = [0, 0, 0], sizes = [1, 8, 8], strides = [1, 1, 1]} : vector<4x8x8xf32> to vector<1x8x8xf32>
    %500 = vector.shape_cast %499 : vector<1x8x8xf32> to vector<8x8xf32>
    %501 = arith.addf %498, %500 : vector<8x8xf32>
    %cst_224 = arith.constant dense<0xFF800000> : vector<8xf32>
    %502 = vector.multi_reduction <maximumf>, %501, %cst_224 [1] : vector<8x8xf32> to vector<8xf32>
    %503 = vector.shape_cast %502 : vector<8xf32> to vector<8x1xf32>
    %504 = vector.broadcast %503 : vector<8x1xf32> to vector<8x8xf32>
    %505 = arith.subf %501, %504 : vector<8x8xf32>
    %506 = math.exp %505 : vector<8x8xf32>
    %cst_225 = arith.constant dense<0.000000e+00> : vector<8xf32>
    %507 = vector.multi_reduction <add>, %506, %cst_225 [1] : vector<8x8xf32> to vector<8xf32>
    %508 = vector.shape_cast %507 : vector<8xf32> to vector<8x1xf32>
    %509 = tpu.reciprocal %508 {approx = true} : vector<8x1xf32> -> vector<8x1xf32>
    %510 = vector.broadcast %509 : vector<8x1xf32> to vector<8x8xf32>
    %511 = arith.mulf %506, %510 : vector<8x8xf32>
    %512 = arith.truncf %511 : vector<8x8xf32> to vector<8x8xbf16>
    %513 = vector.extract_strided_slice %493 {offsets = [0, 0], sizes = [8, 8], strides = [1, 1]} : vector<8x32xbf16> to vector<8x8xbf16>
    %cst_226 = arith.constant dense<0.000000e+00> : vector<8x8xf32>
    %514 = tpu.matmul %512, %513, %cst_226 {dimension_numbers = #tpu.dot_dimension_numbers<[1], [0], [0], [1], [0, 0, 1, 1], [], []>} : vector<8x8xbf16>, vector<8x8xbf16>, vector<8x8xf32> -> vector<8x8xf32>
    %515 = vector.extract_strided_slice %491 {offsets = [0, 8], sizes = [8, 8], strides = [1, 1]} : vector<8x32xbf16> to vector<8x8xbf16>
    %516 = vector.extract_strided_slice %492 {offsets = [0, 8], sizes = [8, 8], strides = [1, 1]} : vector<8x32xbf16> to vector<8x8xbf16>
    %cst_227 = arith.constant dense<0.000000e+00> : vector<8x8xf32>
    %517 = tpu.matmul %515, %516, %cst_227 {dimension_numbers = #tpu.dot_dimension_numbers<[1], [1], [0], [0], [0, 0, 1, 0], [], []>} : vector<8x8xbf16>, vector<8x8xbf16>, vector<8x8xf32> -> vector<8x8xf32>
    %cst_228 = arith.constant 0.353553385 : f32
    %518 = vector.broadcast %cst_228 : f32 to vector<8x8xf32>
    %519 = arith.mulf %517, %518 : vector<8x8xf32>
    %520 = vector.extract_strided_slice %8 {offsets = [1, 0, 0], sizes = [1, 8, 8], strides = [1, 1, 1]} : vector<4x8x8xf32> to vector<1x8x8xf32>
    %521 = vector.shape_cast %520 : vector<1x8x8xf32> to vector<8x8xf32>
    %522 = arith.addf %519, %521 : vector<8x8xf32>
    %cst_229 = arith.constant dense<0xFF800000> : vector<8xf32>
    %523 = vector.multi_reduction <maximumf>, %522, %cst_229 [1] : vector<8x8xf32> to vector<8xf32>
    %524 = vector.shape_cast %523 : vector<8xf32> to vector<8x1xf32>
    %525 = vector.broadcast %524 : vector<8x1xf32> to vector<8x8xf32>
    %526 = arith.subf %522, %525 : vector<8x8xf32>
    %527 = math.exp %526 : vector<8x8xf32>
    %cst_230 = arith.constant dense<0.000000e+00> : vector<8xf32>
    %528 = vector.multi_reduction <add>, %527, %cst_230 [1] : vector<8x8xf32> to vector<8xf32>
    %529 = vector.shape_cast %528 : vector<8xf32> to vector<8x1xf32>
    %530 = tpu.reciprocal %529 {approx = true} : vector<8x1xf32> -> vector<8x1xf32>
    %531 = vector.broadcast %530 : vector<8x1xf32> to vector<8x8xf32>
    %532 = arith.mulf %527, %531 : vector<8x8xf32>
    %533 = arith.truncf %532 : vector<8x8xf32> to vector<8x8xbf16>
    %534 = vector.extract_strided_slice %493 {offsets = [0, 8], sizes = [8, 8], strides = [1, 1]} : vector<8x32xbf16> to vector<8x8xbf16>
    %cst_231 = arith.constant dense<0.000000e+00> : vector<8x8xf32>
    %535 = tpu.matmul %533, %534, %cst_231 {dimension_numbers = #tpu.dot_dimension_numbers<[1], [0], [0], [1], [0, 0, 1, 1], [], []>} : vector<8x8xbf16>, vector<8x8xbf16>, vector<8x8xf32> -> vector<8x8xf32>
    %536 = vector.extract_strided_slice %491 {offsets = [0, 16], sizes = [8, 8], strides = [1, 1]} : vector<8x32xbf16> to vector<8x8xbf16>
    %537 = vector.extract_strided_slice %492 {offsets = [0, 16], sizes = [8, 8], strides = [1, 1]} : vector<8x32xbf16> to vector<8x8xbf16>
    %cst_232 = arith.constant dense<0.000000e+00> : vector<8x8xf32>
    %538 = tpu.matmul %536, %537, %cst_232 {dimension_numbers = #tpu.dot_dimension_numbers<[1], [1], [0], [0], [0, 0, 1, 0], [], []>} : vector<8x8xbf16>, vector<8x8xbf16>, vector<8x8xf32> -> vector<8x8xf32>
    %cst_233 = arith.constant 0.353553385 : f32
    %539 = vector.broadcast %cst_233 : f32 to vector<8x8xf32>
    %540 = arith.mulf %538, %539 : vector<8x8xf32>
    %541 = vector.extract_strided_slice %8 {offsets = [2, 0, 0], sizes = [1, 8, 8], strides = [1, 1, 1]} : vector<4x8x8xf32> to vector<1x8x8xf32>
    %542 = vector.shape_cast %541 : vector<1x8x8xf32> to vector<8x8xf32>
    %543 = arith.addf %540, %542 : vector<8x8xf32>
    %cst_234 = arith.constant dense<0xFF800000> : vector<8xf32>
    %544 = vector.multi_reduction <maximumf>, %543, %cst_234 [1] : vector<8x8xf32> to vector<8xf32>
    %545 = vector.shape_cast %544 : vector<8xf32> to vector<8x1xf32>
    %546 = vector.broadcast %545 : vector<8x1xf32> to vector<8x8xf32>
    %547 = arith.subf %543, %546 : vector<8x8xf32>
    %548 = math.exp %547 : vector<8x8xf32>
    %cst_235 = arith.constant dense<0.000000e+00> : vector<8xf32>
    %549 = vector.multi_reduction <add>, %548, %cst_235 [1] : vector<8x8xf32> to vector<8xf32>
    %550 = vector.shape_cast %549 : vector<8xf32> to vector<8x1xf32>
    %551 = tpu.reciprocal %550 {approx = true} : vector<8x1xf32> -> vector<8x1xf32>
    %552 = vector.broadcast %551 : vector<8x1xf32> to vector<8x8xf32>
    %553 = arith.mulf %548, %552 : vector<8x8xf32>
    %554 = arith.truncf %553 : vector<8x8xf32> to vector<8x8xbf16>
    %555 = vector.extract_strided_slice %493 {offsets = [0, 16], sizes = [8, 8], strides = [1, 1]} : vector<8x32xbf16> to vector<8x8xbf16>
    %cst_236 = arith.constant dense<0.000000e+00> : vector<8x8xf32>
    %556 = tpu.matmul %554, %555, %cst_236 {dimension_numbers = #tpu.dot_dimension_numbers<[1], [0], [0], [1], [0, 0, 1, 1], [], []>} : vector<8x8xbf16>, vector<8x8xbf16>, vector<8x8xf32> -> vector<8x8xf32>
    %557 = vector.extract_strided_slice %491 {offsets = [0, 24], sizes = [8, 8], strides = [1, 1]} : vector<8x32xbf16> to vector<8x8xbf16>
    %558 = vector.extract_strided_slice %492 {offsets = [0, 24], sizes = [8, 8], strides = [1, 1]} : vector<8x32xbf16> to vector<8x8xbf16>
    %cst_237 = arith.constant dense<0.000000e+00> : vector<8x8xf32>
    %559 = tpu.matmul %557, %558, %cst_237 {dimension_numbers = #tpu.dot_dimension_numbers<[1], [1], [0], [0], [0, 0, 1, 0], [], []>} : vector<8x8xbf16>, vector<8x8xbf16>, vector<8x8xf32> -> vector<8x8xf32>
    %cst_238 = arith.constant 0.353553385 : f32
    %560 = vector.broadcast %cst_238 : f32 to vector<8x8xf32>
    %561 = arith.mulf %559, %560 : vector<8x8xf32>
    %562 = vector.extract_strided_slice %8 {offsets = [3, 0, 0], sizes = [1, 8, 8], strides = [1, 1, 1]} : vector<4x8x8xf32> to vector<1x8x8xf32>
    %563 = vector.shape_cast %562 : vector<1x8x8xf32> to vector<8x8xf32>
    %564 = arith.addf %561, %563 : vector<8x8xf32>
    %cst_239 = arith.constant dense<0xFF800000> : vector<8xf32>
    %565 = vector.multi_reduction <maximumf>, %564, %cst_239 [1] : vector<8x8xf32> to vector<8xf32>
    %566 = vector.shape_cast %565 : vector<8xf32> to vector<8x1xf32>
    %567 = vector.broadcast %566 : vector<8x1xf32> to vector<8x8xf32>
    %568 = arith.subf %564, %567 : vector<8x8xf32>
    %569 = math.exp %568 : vector<8x8xf32>
    %cst_240 = arith.constant dense<0.000000e+00> : vector<8xf32>
    %570 = vector.multi_reduction <add>, %569, %cst_240 [1] : vector<8x8xf32> to vector<8xf32>
    %571 = vector.shape_cast %570 : vector<8xf32> to vector<8x1xf32>
    %572 = tpu.reciprocal %571 {approx = true} : vector<8x1xf32> -> vector<8x1xf32>
    %573 = vector.broadcast %572 : vector<8x1xf32> to vector<8x8xf32>
    %574 = arith.mulf %569, %573 : vector<8x8xf32>
    %575 = arith.truncf %574 : vector<8x8xf32> to vector<8x8xbf16>
    %576 = vector.extract_strided_slice %493 {offsets = [0, 24], sizes = [8, 8], strides = [1, 1]} : vector<8x32xbf16> to vector<8x8xbf16>
    %cst_241 = arith.constant dense<0.000000e+00> : vector<8x8xf32>
    %577 = tpu.matmul %575, %576, %cst_241 {dimension_numbers = #tpu.dot_dimension_numbers<[1], [0], [0], [1], [0, 0, 1, 1], [], []>} : vector<8x8xbf16>, vector<8x8xbf16>, vector<8x8xf32> -> vector<8x8xf32>
    %578 = tpu.concatenate %514, %535, %556, %577 in 1 : vector<8x8xf32>, vector<8x8xf32>, vector<8x8xf32>, vector<8x8xf32> -> vector<8x32xf32>
    %579 = arith.truncf %578 : vector<8x32xf32> to vector<8x32xbf16>
    %cst_242 = arith.constant dense<0.000000e+00> : vector<8x32xf32>
    %580 = tpu.matmul %579, %345, %cst_242 {dimension_numbers = #tpu.dot_dimension_numbers<[1], [0], [0], [1], [0, 0, 1, 1], [], []>} : vector<8x32xbf16>, vector<32x32xbf16>, vector<8x32xf32> -> vector<8x32xf32>
    %581 = vector.broadcast %347 : vector<1x32xf32> to vector<8x32xf32>
    %582 = arith.addf %580, %581 : vector<8x32xf32>
    %583 = arith.addf %481, %582 : vector<8x32xf32>
    %cst_243 = arith.constant dense<0.000000e+00> : vector<8xf32>
    %584 = vector.multi_reduction <add>, %583, %cst_243 [1] : vector<8x32xf32> to vector<8xf32>
    %585 = vector.shape_cast %584 : vector<8xf32> to vector<8x1xf32>
    %cst_244 = arith.constant 3.200000e+01 : f32
    %586 = vector.broadcast %cst_244 : f32 to vector<8x1xf32>
    %587 = arith.divf %585, %586 : vector<8x1xf32>
    %588 = vector.broadcast %587 : vector<8x1xf32> to vector<8x32xf32>
    %589 = arith.subf %583, %588 : vector<8x32xf32>
    %590 = arith.mulf %589, %589 : vector<8x32xf32>
    %cst_245 = arith.constant dense<0.000000e+00> : vector<8xf32>
    %591 = vector.multi_reduction <add>, %590, %cst_245 [1] : vector<8x32xf32> to vector<8xf32>
    %592 = vector.shape_cast %591 : vector<8xf32> to vector<8x1xf32>
    %cst_246 = arith.constant 3.200000e+01 : f32
    %593 = vector.broadcast %cst_246 : f32 to vector<8x1xf32>
    %594 = arith.divf %592, %593 : vector<8x1xf32>
    %595 = vector.broadcast %587 : vector<8x1xf32> to vector<8x32xf32>
    %596 = arith.subf %583, %595 : vector<8x32xf32>
    %cst_247 = arith.constant 9.99999974E-6 : f32
    %597 = vector.broadcast %cst_247 : f32 to vector<8x1xf32>
    %598 = arith.addf %594, %597 : vector<8x1xf32>
    %599 = math.rsqrt %598 : vector<8x1xf32>
    %600 = vector.broadcast %599 : vector<8x1xf32> to vector<8x32xf32>
    %601 = arith.mulf %596, %600 : vector<8x32xf32>
    %602 = vector.broadcast %349 : vector<1x32xf32> to vector<8x32xf32>
    %603 = arith.mulf %601, %602 : vector<8x32xf32>
    %604 = vector.broadcast %351 : vector<1x32xf32> to vector<8x32xf32>
    %605 = arith.addf %603, %604 : vector<8x32xf32>
    %606 = arith.truncf %605 : vector<8x32xf32> to vector<8x32xbf16>
    %cst_248 = arith.constant dense<0.000000e+00> : vector<8x64xf32>
    %607 = tpu.matmul %606, %353, %cst_248 {dimension_numbers = #tpu.dot_dimension_numbers<[1], [0], [0], [1], [0, 0, 1, 1], [], []>} : vector<8x32xbf16>, vector<32x64xbf16>, vector<8x64xf32> -> vector<8x64xf32>
    %608 = vector.broadcast %355 : vector<1x64xf32> to vector<8x64xf32>
    %609 = arith.addf %607, %608 : vector<8x64xf32>
    %cst_249 = arith.constant 0.000000e+00 : f32
    %610 = vector.broadcast %cst_249 : f32 to vector<8x64xf32>
    %611 = arith.maximumf %609, %610 : vector<8x64xf32>
    %612 = arith.truncf %611 : vector<8x64xf32> to vector<8x64xbf16>
    %cst_250 = arith.constant dense<0.000000e+00> : vector<8x32xf32>
    %613 = tpu.matmul %612, %357, %cst_250 {dimension_numbers = #tpu.dot_dimension_numbers<[1], [0], [0], [1], [0, 0, 1, 1], [], []>} : vector<8x64xbf16>, vector<64x32xbf16>, vector<8x32xf32> -> vector<8x32xf32>
    %614 = vector.broadcast %359 : vector<1x32xf32> to vector<8x32xf32>
    %615 = arith.addf %613, %614 : vector<8x32xf32>
    %616 = arith.addf %605, %615 : vector<8x32xf32>
    %cst_251 = arith.constant dense<0.000000e+00> : vector<8xf32>
    %617 = vector.multi_reduction <add>, %616, %cst_251 [1] : vector<8x32xf32> to vector<8xf32>
    %618 = vector.shape_cast %617 : vector<8xf32> to vector<8x1xf32>
    %cst_252 = arith.constant 3.200000e+01 : f32
    %619 = vector.broadcast %cst_252 : f32 to vector<8x1xf32>
    %620 = arith.divf %618, %619 : vector<8x1xf32>
    %621 = vector.broadcast %620 : vector<8x1xf32> to vector<8x32xf32>
    %622 = arith.subf %616, %621 : vector<8x32xf32>
    %623 = arith.mulf %622, %622 : vector<8x32xf32>
    %cst_253 = arith.constant dense<0.000000e+00> : vector<8xf32>
    %624 = vector.multi_reduction <add>, %623, %cst_253 [1] : vector<8x32xf32> to vector<8xf32>
    %625 = vector.shape_cast %624 : vector<8xf32> to vector<8x1xf32>
    %cst_254 = arith.constant 3.200000e+01 : f32
    %626 = vector.broadcast %cst_254 : f32 to vector<8x1xf32>
    %627 = arith.divf %625, %626 : vector<8x1xf32>
    %628 = vector.broadcast %620 : vector<8x1xf32> to vector<8x32xf32>
    %629 = arith.subf %616, %628 : vector<8x32xf32>
    %cst_255 = arith.constant 9.99999974E-6 : f32
    %630 = vector.broadcast %cst_255 : f32 to vector<8x1xf32>
    %631 = arith.addf %627, %630 : vector<8x1xf32>
    %632 = math.rsqrt %631 : vector<8x1xf32>
    %633 = vector.broadcast %632 : vector<8x1xf32> to vector<8x32xf32>
    %634 = arith.mulf %629, %633 : vector<8x32xf32>
    %635 = vector.broadcast %361 : vector<1x32xf32> to vector<8x32xf32>
    %636 = arith.mulf %634, %635 : vector<8x32xf32>
    %637 = vector.broadcast %363 : vector<1x32xf32> to vector<8x32xf32>
    %638 = arith.addf %636, %637 : vector<8x32xf32>
    %c0_256 = arith.constant 0 : index
    %c0_257 = arith.constant 0 : index
    %639 = vector.load %arg25[%c0_256, %c0_257] : memref<32x96xbf16, #tpu.memory_space<vmem>>, vector<32x96xbf16>
    %c0_258 = arith.constant 0 : index
    %c0_259 = arith.constant 0 : index
    %640 = vector.load %arg26[%c0_258, %c0_259] : memref<1x96xf32, #tpu.memory_space<vmem>>, vector<1x96xf32>
    %c0_260 = arith.constant 0 : index
    %c0_261 = arith.constant 0 : index
    %641 = vector.load %arg27[%c0_260, %c0_261] : memref<32x32xbf16, #tpu.memory_space<vmem>>, vector<32x32xbf16>
    %c0_262 = arith.constant 0 : index
    %c0_263 = arith.constant 0 : index
    %642 = vector.load %arg28[%c0_262, %c0_263] : memref<1x32xf32, #tpu.memory_space<vmem>>, vector<1x32xf32>
    %c0_264 = arith.constant 0 : index
    %c0_265 = arith.constant 0 : index
    %643 = vector.load %arg29[%c0_264, %c0_265] : memref<1x32xf32, #tpu.memory_space<vmem>>, vector<1x32xf32>
    %c0_266 = arith.constant 0 : index
    %c0_267 = arith.constant 0 : index
    %644 = vector.load %arg30[%c0_266, %c0_267] : memref<1x32xf32, #tpu.memory_space<vmem>>, vector<1x32xf32>
    %c0_268 = arith.constant 0 : index
    %c0_269 = arith.constant 0 : index
    %645 = vector.load %arg31[%c0_268, %c0_269] : memref<32x32xbf16, #tpu.memory_space<vmem>>, vector<32x32xbf16>
    %c0_270 = arith.constant 0 : index
    %c0_271 = arith.constant 0 : index
    %646 = vector.load %arg32[%c0_270, %c0_271] : memref<1x32xf32, #tpu.memory_space<vmem>>, vector<1x32xf32>
    %c0_272 = arith.constant 0 : index
    %c0_273 = arith.constant 0 : index
    %647 = vector.load %arg33[%c0_272, %c0_273] : memref<32x64xbf16, #tpu.memory_space<vmem>>, vector<32x64xbf16>
    %c0_274 = arith.constant 0 : index
    %c0_275 = arith.constant 0 : index
    %648 = vector.load %arg34[%c0_274, %c0_275] : memref<1x64xf32, #tpu.memory_space<vmem>>, vector<1x64xf32>
    %c0_276 = arith.constant 0 : index
    %c0_277 = arith.constant 0 : index
    %649 = vector.load %arg35[%c0_276, %c0_277] : memref<32x32xbf16, #tpu.memory_space<vmem>>, vector<32x32xbf16>
    %c0_278 = arith.constant 0 : index
    %c0_279 = arith.constant 0 : index
    %650 = vector.load %arg36[%c0_278, %c0_279] : memref<1x32xf32, #tpu.memory_space<vmem>>, vector<1x32xf32>
    %c0_280 = arith.constant 0 : index
    %c0_281 = arith.constant 0 : index
    %651 = vector.load %arg37[%c0_280, %c0_281] : memref<1x32xf32, #tpu.memory_space<vmem>>, vector<1x32xf32>
    %c0_282 = arith.constant 0 : index
    %c0_283 = arith.constant 0 : index
    %652 = vector.load %arg38[%c0_282, %c0_283] : memref<1x32xf32, #tpu.memory_space<vmem>>, vector<1x32xf32>
    %c0_284 = arith.constant 0 : index
    %c0_285 = arith.constant 0 : index
    %653 = vector.load %arg39[%c0_284, %c0_285] : memref<32x64xbf16, #tpu.memory_space<vmem>>, vector<32x64xbf16>
    %c0_286 = arith.constant 0 : index
    %c0_287 = arith.constant 0 : index
    %654 = vector.load %arg40[%c0_286, %c0_287] : memref<1x64xf32, #tpu.memory_space<vmem>>, vector<1x64xf32>
    %c0_288 = arith.constant 0 : index
    %c0_289 = arith.constant 0 : index
    %655 = vector.load %arg41[%c0_288, %c0_289] : memref<64x128xbf16, #tpu.memory_space<vmem>>, vector<64x128xbf16>
    %c0_290 = arith.constant 0 : index
    %c0_291 = arith.constant 0 : index
    %656 = vector.load %arg42[%c0_290, %c0_291] : memref<1x128xf32, #tpu.memory_space<vmem>>, vector<1x128xf32>
    %657 = arith.truncf %638 : vector<8x32xf32> to vector<8x32xbf16>
    %cst_292 = arith.constant dense<0.000000e+00> : vector<8x96xf32>
    %658 = tpu.matmul %657, %639, %cst_292 {dimension_numbers = #tpu.dot_dimension_numbers<[1], [0], [0], [1], [0, 0, 1, 1], [], []>} : vector<8x32xbf16>, vector<32x96xbf16>, vector<8x96xf32> -> vector<8x96xf32>
    %659 = vector.broadcast %640 : vector<1x96xf32> to vector<8x96xf32>
    %660 = arith.addf %658, %659 : vector<8x96xf32>
    %661 = vector.extract_strided_slice %660 {offsets = [0, 0], sizes = [8, 32], strides = [1, 1]} : vector<8x96xf32> to vector<8x32xf32>
    %662 = vector.extract_strided_slice %660 {offsets = [0, 32], sizes = [8, 32], strides = [1, 1]} : vector<8x96xf32> to vector<8x32xf32>
    %663 = vector.extract_strided_slice %660 {offsets = [0, 64], sizes = [8, 32], strides = [1, 1]} : vector<8x96xf32> to vector<8x32xf32>
    %664 = arith.truncf %661 : vector<8x32xf32> to vector<8x32xbf16>
    %665 = arith.truncf %662 : vector<8x32xf32> to vector<8x32xbf16>
    %666 = arith.truncf %663 : vector<8x32xf32> to vector<8x32xbf16>
    %667 = vector.extract_strided_slice %664 {offsets = [0, 0], sizes = [8, 8], strides = [1, 1]} : vector<8x32xbf16> to vector<8x8xbf16>
    %668 = vector.extract_strided_slice %665 {offsets = [0, 0], sizes = [8, 8], strides = [1, 1]} : vector<8x32xbf16> to vector<8x8xbf16>
    %cst_293 = arith.constant dense<0.000000e+00> : vector<8x8xf32>
    %669 = tpu.matmul %667, %668, %cst_293 {dimension_numbers = #tpu.dot_dimension_numbers<[1], [1], [0], [0], [0, 0, 1, 0], [], []>} : vector<8x8xbf16>, vector<8x8xbf16>, vector<8x8xf32> -> vector<8x8xf32>
    %cst_294 = arith.constant 0.353553385 : f32
    %670 = vector.broadcast %cst_294 : f32 to vector<8x8xf32>
    %671 = arith.mulf %669, %670 : vector<8x8xf32>
    %672 = vector.broadcast %5 : vector<1x8xf32> to vector<8x8xf32>
    %673 = arith.addf %671, %672 : vector<8x8xf32>
    %cst_295 = arith.constant dense<0xFF800000> : vector<8xf32>
    %674 = vector.multi_reduction <maximumf>, %673, %cst_295 [1] : vector<8x8xf32> to vector<8xf32>
    %675 = vector.shape_cast %674 : vector<8xf32> to vector<8x1xf32>
    %676 = vector.broadcast %675 : vector<8x1xf32> to vector<8x8xf32>
    %677 = arith.subf %673, %676 : vector<8x8xf32>
    %678 = math.exp %677 : vector<8x8xf32>
    %cst_296 = arith.constant dense<0.000000e+00> : vector<8xf32>
    %679 = vector.multi_reduction <add>, %678, %cst_296 [1] : vector<8x8xf32> to vector<8xf32>
    %680 = vector.shape_cast %679 : vector<8xf32> to vector<8x1xf32>
    %681 = tpu.reciprocal %680 {approx = true} : vector<8x1xf32> -> vector<8x1xf32>
    %682 = vector.broadcast %681 : vector<8x1xf32> to vector<8x8xf32>
    %683 = arith.mulf %678, %682 : vector<8x8xf32>
    %684 = arith.truncf %683 : vector<8x8xf32> to vector<8x8xbf16>
    %685 = vector.extract_strided_slice %666 {offsets = [0, 0], sizes = [8, 8], strides = [1, 1]} : vector<8x32xbf16> to vector<8x8xbf16>
    %cst_297 = arith.constant dense<0.000000e+00> : vector<8x8xf32>
    %686 = tpu.matmul %684, %685, %cst_297 {dimension_numbers = #tpu.dot_dimension_numbers<[1], [0], [0], [1], [0, 0, 1, 1], [], []>} : vector<8x8xbf16>, vector<8x8xbf16>, vector<8x8xf32> -> vector<8x8xf32>
    %687 = vector.extract_strided_slice %664 {offsets = [0, 8], sizes = [8, 8], strides = [1, 1]} : vector<8x32xbf16> to vector<8x8xbf16>
    %688 = vector.extract_strided_slice %665 {offsets = [0, 8], sizes = [8, 8], strides = [1, 1]} : vector<8x32xbf16> to vector<8x8xbf16>
    %cst_298 = arith.constant dense<0.000000e+00> : vector<8x8xf32>
    %689 = tpu.matmul %687, %688, %cst_298 {dimension_numbers = #tpu.dot_dimension_numbers<[1], [1], [0], [0], [0, 0, 1, 0], [], []>} : vector<8x8xbf16>, vector<8x8xbf16>, vector<8x8xf32> -> vector<8x8xf32>
    %cst_299 = arith.constant 0.353553385 : f32
    %690 = vector.broadcast %cst_299 : f32 to vector<8x8xf32>
    %691 = arith.mulf %689, %690 : vector<8x8xf32>
    %692 = vector.broadcast %5 : vector<1x8xf32> to vector<8x8xf32>
    %693 = arith.addf %691, %692 : vector<8x8xf32>
    %cst_300 = arith.constant dense<0xFF800000> : vector<8xf32>
    %694 = vector.multi_reduction <maximumf>, %693, %cst_300 [1] : vector<8x8xf32> to vector<8xf32>
    %695 = vector.shape_cast %694 : vector<8xf32> to vector<8x1xf32>
    %696 = vector.broadcast %695 : vector<8x1xf32> to vector<8x8xf32>
    %697 = arith.subf %693, %696 : vector<8x8xf32>
    %698 = math.exp %697 : vector<8x8xf32>
    %cst_301 = arith.constant dense<0.000000e+00> : vector<8xf32>
    %699 = vector.multi_reduction <add>, %698, %cst_301 [1] : vector<8x8xf32> to vector<8xf32>
    %700 = vector.shape_cast %699 : vector<8xf32> to vector<8x1xf32>
    %701 = tpu.reciprocal %700 {approx = true} : vector<8x1xf32> -> vector<8x1xf32>
    %702 = vector.broadcast %701 : vector<8x1xf32> to vector<8x8xf32>
    %703 = arith.mulf %698, %702 : vector<8x8xf32>
    %704 = arith.truncf %703 : vector<8x8xf32> to vector<8x8xbf16>
    %705 = vector.extract_strided_slice %666 {offsets = [0, 8], sizes = [8, 8], strides = [1, 1]} : vector<8x32xbf16> to vector<8x8xbf16>
    %cst_302 = arith.constant dense<0.000000e+00> : vector<8x8xf32>
    %706 = tpu.matmul %704, %705, %cst_302 {dimension_numbers = #tpu.dot_dimension_numbers<[1], [0], [0], [1], [0, 0, 1, 1], [], []>} : vector<8x8xbf16>, vector<8x8xbf16>, vector<8x8xf32> -> vector<8x8xf32>
    %707 = vector.extract_strided_slice %664 {offsets = [0, 16], sizes = [8, 8], strides = [1, 1]} : vector<8x32xbf16> to vector<8x8xbf16>
    %708 = vector.extract_strided_slice %665 {offsets = [0, 16], sizes = [8, 8], strides = [1, 1]} : vector<8x32xbf16> to vector<8x8xbf16>
    %cst_303 = arith.constant dense<0.000000e+00> : vector<8x8xf32>
    %709 = tpu.matmul %707, %708, %cst_303 {dimension_numbers = #tpu.dot_dimension_numbers<[1], [1], [0], [0], [0, 0, 1, 0], [], []>} : vector<8x8xbf16>, vector<8x8xbf16>, vector<8x8xf32> -> vector<8x8xf32>
    %cst_304 = arith.constant 0.353553385 : f32
    %710 = vector.broadcast %cst_304 : f32 to vector<8x8xf32>
    %711 = arith.mulf %709, %710 : vector<8x8xf32>
    %712 = vector.broadcast %5 : vector<1x8xf32> to vector<8x8xf32>
    %713 = arith.addf %711, %712 : vector<8x8xf32>
    %cst_305 = arith.constant dense<0xFF800000> : vector<8xf32>
    %714 = vector.multi_reduction <maximumf>, %713, %cst_305 [1] : vector<8x8xf32> to vector<8xf32>
    %715 = vector.shape_cast %714 : vector<8xf32> to vector<8x1xf32>
    %716 = vector.broadcast %715 : vector<8x1xf32> to vector<8x8xf32>
    %717 = arith.subf %713, %716 : vector<8x8xf32>
    %718 = math.exp %717 : vector<8x8xf32>
    %cst_306 = arith.constant dense<0.000000e+00> : vector<8xf32>
    %719 = vector.multi_reduction <add>, %718, %cst_306 [1] : vector<8x8xf32> to vector<8xf32>
    %720 = vector.shape_cast %719 : vector<8xf32> to vector<8x1xf32>
    %721 = tpu.reciprocal %720 {approx = true} : vector<8x1xf32> -> vector<8x1xf32>
    %722 = vector.broadcast %721 : vector<8x1xf32> to vector<8x8xf32>
    %723 = arith.mulf %718, %722 : vector<8x8xf32>
    %724 = arith.truncf %723 : vector<8x8xf32> to vector<8x8xbf16>
    %725 = vector.extract_strided_slice %666 {offsets = [0, 16], sizes = [8, 8], strides = [1, 1]} : vector<8x32xbf16> to vector<8x8xbf16>
    %cst_307 = arith.constant dense<0.000000e+00> : vector<8x8xf32>
    %726 = tpu.matmul %724, %725, %cst_307 {dimension_numbers = #tpu.dot_dimension_numbers<[1], [0], [0], [1], [0, 0, 1, 1], [], []>} : vector<8x8xbf16>, vector<8x8xbf16>, vector<8x8xf32> -> vector<8x8xf32>
    %727 = vector.extract_strided_slice %664 {offsets = [0, 24], sizes = [8, 8], strides = [1, 1]} : vector<8x32xbf16> to vector<8x8xbf16>
    %728 = vector.extract_strided_slice %665 {offsets = [0, 24], sizes = [8, 8], strides = [1, 1]} : vector<8x32xbf16> to vector<8x8xbf16>
    %cst_308 = arith.constant dense<0.000000e+00> : vector<8x8xf32>
    %729 = tpu.matmul %727, %728, %cst_308 {dimension_numbers = #tpu.dot_dimension_numbers<[1], [1], [0], [0], [0, 0, 1, 0], [], []>} : vector<8x8xbf16>, vector<8x8xbf16>, vector<8x8xf32> -> vector<8x8xf32>
    %cst_309 = arith.constant 0.353553385 : f32
    %730 = vector.broadcast %cst_309 : f32 to vector<8x8xf32>
    %731 = arith.mulf %729, %730 : vector<8x8xf32>
    %732 = vector.broadcast %5 : vector<1x8xf32> to vector<8x8xf32>
    %733 = arith.addf %731, %732 : vector<8x8xf32>
    %cst_310 = arith.constant dense<0xFF800000> : vector<8xf32>
    %734 = vector.multi_reduction <maximumf>, %733, %cst_310 [1] : vector<8x8xf32> to vector<8xf32>
    %735 = vector.shape_cast %734 : vector<8xf32> to vector<8x1xf32>
    %736 = vector.broadcast %735 : vector<8x1xf32> to vector<8x8xf32>
    %737 = arith.subf %733, %736 : vector<8x8xf32>
    %738 = math.exp %737 : vector<8x8xf32>
    %cst_311 = arith.constant dense<0.000000e+00> : vector<8xf32>
    %739 = vector.multi_reduction <add>, %738, %cst_311 [1] : vector<8x8xf32> to vector<8xf32>
    %740 = vector.shape_cast %739 : vector<8xf32> to vector<8x1xf32>
    %741 = tpu.reciprocal %740 {approx = true} : vector<8x1xf32> -> vector<8x1xf32>
    %742 = vector.broadcast %741 : vector<8x1xf32> to vector<8x8xf32>
    %743 = arith.mulf %738, %742 : vector<8x8xf32>
    %744 = arith.truncf %743 : vector<8x8xf32> to vector<8x8xbf16>
    %745 = vector.extract_strided_slice %666 {offsets = [0, 24], sizes = [8, 8], strides = [1, 1]} : vector<8x32xbf16> to vector<8x8xbf16>
    %cst_312 = arith.constant dense<0.000000e+00> : vector<8x8xf32>
    %746 = tpu.matmul %744, %745, %cst_312 {dimension_numbers = #tpu.dot_dimension_numbers<[1], [0], [0], [1], [0, 0, 1, 1], [], []>} : vector<8x8xbf16>, vector<8x8xbf16>, vector<8x8xf32> -> vector<8x8xf32>
    %747 = tpu.concatenate %686, %706, %726, %746 in 1 : vector<8x8xf32>, vector<8x8xf32>, vector<8x8xf32>, vector<8x8xf32> -> vector<8x32xf32>
    %748 = arith.truncf %747 : vector<8x32xf32> to vector<8x32xbf16>
    %cst_313 = arith.constant dense<0.000000e+00> : vector<8x32xf32>
    %749 = tpu.matmul %748, %641, %cst_313 {dimension_numbers = #tpu.dot_dimension_numbers<[1], [0], [0], [1], [0, 0, 1, 1], [], []>} : vector<8x32xbf16>, vector<32x32xbf16>, vector<8x32xf32> -> vector<8x32xf32>
    %750 = vector.broadcast %642 : vector<1x32xf32> to vector<8x32xf32>
    %751 = arith.addf %749, %750 : vector<8x32xf32>
    %752 = arith.addf %638, %751 : vector<8x32xf32>
    %cst_314 = arith.constant dense<0.000000e+00> : vector<8xf32>
    %753 = vector.multi_reduction <add>, %752, %cst_314 [1] : vector<8x32xf32> to vector<8xf32>
    %754 = vector.shape_cast %753 : vector<8xf32> to vector<8x1xf32>
    %cst_315 = arith.constant 3.200000e+01 : f32
    %755 = vector.broadcast %cst_315 : f32 to vector<8x1xf32>
    %756 = arith.divf %754, %755 : vector<8x1xf32>
    %757 = vector.broadcast %756 : vector<8x1xf32> to vector<8x32xf32>
    %758 = arith.subf %752, %757 : vector<8x32xf32>
    %759 = arith.mulf %758, %758 : vector<8x32xf32>
    %cst_316 = arith.constant dense<0.000000e+00> : vector<8xf32>
    %760 = vector.multi_reduction <add>, %759, %cst_316 [1] : vector<8x32xf32> to vector<8xf32>
    %761 = vector.shape_cast %760 : vector<8xf32> to vector<8x1xf32>
    %cst_317 = arith.constant 3.200000e+01 : f32
    %762 = vector.broadcast %cst_317 : f32 to vector<8x1xf32>
    %763 = arith.divf %761, %762 : vector<8x1xf32>
    %764 = vector.broadcast %756 : vector<8x1xf32> to vector<8x32xf32>
    %765 = arith.subf %752, %764 : vector<8x32xf32>
    %cst_318 = arith.constant 9.99999974E-6 : f32
    %766 = vector.broadcast %cst_318 : f32 to vector<8x1xf32>
    %767 = arith.addf %763, %766 : vector<8x1xf32>
    %768 = math.rsqrt %767 : vector<8x1xf32>
    %769 = vector.broadcast %768 : vector<8x1xf32> to vector<8x32xf32>
    %770 = arith.mulf %765, %769 : vector<8x32xf32>
    %771 = vector.broadcast %643 : vector<1x32xf32> to vector<8x32xf32>
    %772 = arith.mulf %770, %771 : vector<8x32xf32>
    %773 = vector.broadcast %644 : vector<1x32xf32> to vector<8x32xf32>
    %774 = arith.addf %772, %773 : vector<8x32xf32>
    %775 = arith.truncf %774 : vector<8x32xf32> to vector<8x32xbf16>
    %cst_319 = arith.constant dense<0.000000e+00> : vector<8x32xf32>
    %776 = tpu.matmul %775, %645, %cst_319 {dimension_numbers = #tpu.dot_dimension_numbers<[1], [0], [0], [1], [0, 0, 1, 1], [], []>} : vector<8x32xbf16>, vector<32x32xbf16>, vector<8x32xf32> -> vector<8x32xf32>
    %777 = vector.broadcast %646 : vector<1x32xf32> to vector<8x32xf32>
    %778 = arith.addf %776, %777 : vector<8x32xf32>
    %cst_320 = arith.constant dense<0.000000e+00> : vector<8x64xf32>
    %779 = tpu.matmul %3, %647, %cst_320 {dimension_numbers = #tpu.dot_dimension_numbers<[1], [0], [0], [1], [0, 0, 1, 1], [], []>} : vector<8x32xbf16>, vector<32x64xbf16>, vector<8x64xf32> -> vector<8x64xf32>
    %780 = vector.broadcast %648 : vector<1x64xf32> to vector<8x64xf32>
    %781 = arith.addf %779, %780 : vector<8x64xf32>
    %782 = vector.extract_strided_slice %781 {offsets = [0, 0], sizes = [8, 32], strides = [1, 1]} : vector<8x64xf32> to vector<8x32xf32>
    %783 = vector.extract_strided_slice %781 {offsets = [0, 32], sizes = [8, 32], strides = [1, 1]} : vector<8x64xf32> to vector<8x32xf32>
    %784 = arith.truncf %778 : vector<8x32xf32> to vector<8x32xbf16>
    %785 = arith.truncf %782 : vector<8x32xf32> to vector<8x32xbf16>
    %786 = arith.truncf %783 : vector<8x32xf32> to vector<8x32xbf16>
    %787 = vector.extract_strided_slice %784 {offsets = [0, 0], sizes = [8, 8], strides = [1, 1]} : vector<8x32xbf16> to vector<8x8xbf16>
    %788 = vector.extract_strided_slice %785 {offsets = [0, 0], sizes = [8, 8], strides = [1, 1]} : vector<8x32xbf16> to vector<8x8xbf16>
    %cst_321 = arith.constant dense<0.000000e+00> : vector<8x8xf32>
    %789 = tpu.matmul %787, %788, %cst_321 {dimension_numbers = #tpu.dot_dimension_numbers<[1], [1], [0], [0], [0, 0, 1, 0], [], []>} : vector<8x8xbf16>, vector<8x8xbf16>, vector<8x8xf32> -> vector<8x8xf32>
    %cst_322 = arith.constant 0.353553385 : f32
    %790 = vector.broadcast %cst_322 : f32 to vector<8x8xf32>
    %791 = arith.mulf %789, %790 : vector<8x8xf32>
    %792 = vector.extract_strided_slice %8 {offsets = [0, 0, 0], sizes = [1, 8, 8], strides = [1, 1, 1]} : vector<4x8x8xf32> to vector<1x8x8xf32>
    %793 = vector.shape_cast %792 : vector<1x8x8xf32> to vector<8x8xf32>
    %794 = arith.addf %791, %793 : vector<8x8xf32>
    %cst_323 = arith.constant dense<0xFF800000> : vector<8xf32>
    %795 = vector.multi_reduction <maximumf>, %794, %cst_323 [1] : vector<8x8xf32> to vector<8xf32>
    %796 = vector.shape_cast %795 : vector<8xf32> to vector<8x1xf32>
    %797 = vector.broadcast %796 : vector<8x1xf32> to vector<8x8xf32>
    %798 = arith.subf %794, %797 : vector<8x8xf32>
    %799 = math.exp %798 : vector<8x8xf32>
    %cst_324 = arith.constant dense<0.000000e+00> : vector<8xf32>
    %800 = vector.multi_reduction <add>, %799, %cst_324 [1] : vector<8x8xf32> to vector<8xf32>
    %801 = vector.shape_cast %800 : vector<8xf32> to vector<8x1xf32>
    %802 = tpu.reciprocal %801 {approx = true} : vector<8x1xf32> -> vector<8x1xf32>
    %803 = vector.broadcast %802 : vector<8x1xf32> to vector<8x8xf32>
    %804 = arith.mulf %799, %803 : vector<8x8xf32>
    %805 = arith.truncf %804 : vector<8x8xf32> to vector<8x8xbf16>
    %806 = vector.extract_strided_slice %786 {offsets = [0, 0], sizes = [8, 8], strides = [1, 1]} : vector<8x32xbf16> to vector<8x8xbf16>
    %cst_325 = arith.constant dense<0.000000e+00> : vector<8x8xf32>
    %807 = tpu.matmul %805, %806, %cst_325 {dimension_numbers = #tpu.dot_dimension_numbers<[1], [0], [0], [1], [0, 0, 1, 1], [], []>} : vector<8x8xbf16>, vector<8x8xbf16>, vector<8x8xf32> -> vector<8x8xf32>
    %808 = vector.extract_strided_slice %784 {offsets = [0, 8], sizes = [8, 8], strides = [1, 1]} : vector<8x32xbf16> to vector<8x8xbf16>
    %809 = vector.extract_strided_slice %785 {offsets = [0, 8], sizes = [8, 8], strides = [1, 1]} : vector<8x32xbf16> to vector<8x8xbf16>
    %cst_326 = arith.constant dense<0.000000e+00> : vector<8x8xf32>
    %810 = tpu.matmul %808, %809, %cst_326 {dimension_numbers = #tpu.dot_dimension_numbers<[1], [1], [0], [0], [0, 0, 1, 0], [], []>} : vector<8x8xbf16>, vector<8x8xbf16>, vector<8x8xf32> -> vector<8x8xf32>
    %cst_327 = arith.constant 0.353553385 : f32
    %811 = vector.broadcast %cst_327 : f32 to vector<8x8xf32>
    %812 = arith.mulf %810, %811 : vector<8x8xf32>
    %813 = vector.extract_strided_slice %8 {offsets = [1, 0, 0], sizes = [1, 8, 8], strides = [1, 1, 1]} : vector<4x8x8xf32> to vector<1x8x8xf32>
    %814 = vector.shape_cast %813 : vector<1x8x8xf32> to vector<8x8xf32>
    %815 = arith.addf %812, %814 : vector<8x8xf32>
    %cst_328 = arith.constant dense<0xFF800000> : vector<8xf32>
    %816 = vector.multi_reduction <maximumf>, %815, %cst_328 [1] : vector<8x8xf32> to vector<8xf32>
    %817 = vector.shape_cast %816 : vector<8xf32> to vector<8x1xf32>
    %818 = vector.broadcast %817 : vector<8x1xf32> to vector<8x8xf32>
    %819 = arith.subf %815, %818 : vector<8x8xf32>
    %820 = math.exp %819 : vector<8x8xf32>
    %cst_329 = arith.constant dense<0.000000e+00> : vector<8xf32>
    %821 = vector.multi_reduction <add>, %820, %cst_329 [1] : vector<8x8xf32> to vector<8xf32>
    %822 = vector.shape_cast %821 : vector<8xf32> to vector<8x1xf32>
    %823 = tpu.reciprocal %822 {approx = true} : vector<8x1xf32> -> vector<8x1xf32>
    %824 = vector.broadcast %823 : vector<8x1xf32> to vector<8x8xf32>
    %825 = arith.mulf %820, %824 : vector<8x8xf32>
    %826 = arith.truncf %825 : vector<8x8xf32> to vector<8x8xbf16>
    %827 = vector.extract_strided_slice %786 {offsets = [0, 8], sizes = [8, 8], strides = [1, 1]} : vector<8x32xbf16> to vector<8x8xbf16>
    %cst_330 = arith.constant dense<0.000000e+00> : vector<8x8xf32>
    %828 = tpu.matmul %826, %827, %cst_330 {dimension_numbers = #tpu.dot_dimension_numbers<[1], [0], [0], [1], [0, 0, 1, 1], [], []>} : vector<8x8xbf16>, vector<8x8xbf16>, vector<8x8xf32> -> vector<8x8xf32>
    %829 = vector.extract_strided_slice %784 {offsets = [0, 16], sizes = [8, 8], strides = [1, 1]} : vector<8x32xbf16> to vector<8x8xbf16>
    %830 = vector.extract_strided_slice %785 {offsets = [0, 16], sizes = [8, 8], strides = [1, 1]} : vector<8x32xbf16> to vector<8x8xbf16>
    %cst_331 = arith.constant dense<0.000000e+00> : vector<8x8xf32>
    %831 = tpu.matmul %829, %830, %cst_331 {dimension_numbers = #tpu.dot_dimension_numbers<[1], [1], [0], [0], [0, 0, 1, 0], [], []>} : vector<8x8xbf16>, vector<8x8xbf16>, vector<8x8xf32> -> vector<8x8xf32>
    %cst_332 = arith.constant 0.353553385 : f32
    %832 = vector.broadcast %cst_332 : f32 to vector<8x8xf32>
    %833 = arith.mulf %831, %832 : vector<8x8xf32>
    %834 = vector.extract_strided_slice %8 {offsets = [2, 0, 0], sizes = [1, 8, 8], strides = [1, 1, 1]} : vector<4x8x8xf32> to vector<1x8x8xf32>
    %835 = vector.shape_cast %834 : vector<1x8x8xf32> to vector<8x8xf32>
    %836 = arith.addf %833, %835 : vector<8x8xf32>
    %cst_333 = arith.constant dense<0xFF800000> : vector<8xf32>
    %837 = vector.multi_reduction <maximumf>, %836, %cst_333 [1] : vector<8x8xf32> to vector<8xf32>
    %838 = vector.shape_cast %837 : vector<8xf32> to vector<8x1xf32>
    %839 = vector.broadcast %838 : vector<8x1xf32> to vector<8x8xf32>
    %840 = arith.subf %836, %839 : vector<8x8xf32>
    %841 = math.exp %840 : vector<8x8xf32>
    %cst_334 = arith.constant dense<0.000000e+00> : vector<8xf32>
    %842 = vector.multi_reduction <add>, %841, %cst_334 [1] : vector<8x8xf32> to vector<8xf32>
    %843 = vector.shape_cast %842 : vector<8xf32> to vector<8x1xf32>
    %844 = tpu.reciprocal %843 {approx = true} : vector<8x1xf32> -> vector<8x1xf32>
    %845 = vector.broadcast %844 : vector<8x1xf32> to vector<8x8xf32>
    %846 = arith.mulf %841, %845 : vector<8x8xf32>
    %847 = arith.truncf %846 : vector<8x8xf32> to vector<8x8xbf16>
    %848 = vector.extract_strided_slice %786 {offsets = [0, 16], sizes = [8, 8], strides = [1, 1]} : vector<8x32xbf16> to vector<8x8xbf16>
    %cst_335 = arith.constant dense<0.000000e+00> : vector<8x8xf32>
    %849 = tpu.matmul %847, %848, %cst_335 {dimension_numbers = #tpu.dot_dimension_numbers<[1], [0], [0], [1], [0, 0, 1, 1], [], []>} : vector<8x8xbf16>, vector<8x8xbf16>, vector<8x8xf32> -> vector<8x8xf32>
    %850 = vector.extract_strided_slice %784 {offsets = [0, 24], sizes = [8, 8], strides = [1, 1]} : vector<8x32xbf16> to vector<8x8xbf16>
    %851 = vector.extract_strided_slice %785 {offsets = [0, 24], sizes = [8, 8], strides = [1, 1]} : vector<8x32xbf16> to vector<8x8xbf16>
    %cst_336 = arith.constant dense<0.000000e+00> : vector<8x8xf32>
    %852 = tpu.matmul %850, %851, %cst_336 {dimension_numbers = #tpu.dot_dimension_numbers<[1], [1], [0], [0], [0, 0, 1, 0], [], []>} : vector<8x8xbf16>, vector<8x8xbf16>, vector<8x8xf32> -> vector<8x8xf32>
    %cst_337 = arith.constant 0.353553385 : f32
    %853 = vector.broadcast %cst_337 : f32 to vector<8x8xf32>
    %854 = arith.mulf %852, %853 : vector<8x8xf32>
    %855 = vector.extract_strided_slice %8 {offsets = [3, 0, 0], sizes = [1, 8, 8], strides = [1, 1, 1]} : vector<4x8x8xf32> to vector<1x8x8xf32>
    %856 = vector.shape_cast %855 : vector<1x8x8xf32> to vector<8x8xf32>
    %857 = arith.addf %854, %856 : vector<8x8xf32>
    %cst_338 = arith.constant dense<0xFF800000> : vector<8xf32>
    %858 = vector.multi_reduction <maximumf>, %857, %cst_338 [1] : vector<8x8xf32> to vector<8xf32>
    %859 = vector.shape_cast %858 : vector<8xf32> to vector<8x1xf32>
    %860 = vector.broadcast %859 : vector<8x1xf32> to vector<8x8xf32>
    %861 = arith.subf %857, %860 : vector<8x8xf32>
    %862 = math.exp %861 : vector<8x8xf32>
    %cst_339 = arith.constant dense<0.000000e+00> : vector<8xf32>
    %863 = vector.multi_reduction <add>, %862, %cst_339 [1] : vector<8x8xf32> to vector<8xf32>
    %864 = vector.shape_cast %863 : vector<8xf32> to vector<8x1xf32>
    %865 = tpu.reciprocal %864 {approx = true} : vector<8x1xf32> -> vector<8x1xf32>
    %866 = vector.broadcast %865 : vector<8x1xf32> to vector<8x8xf32>
    %867 = arith.mulf %862, %866 : vector<8x8xf32>
    %868 = arith.truncf %867 : vector<8x8xf32> to vector<8x8xbf16>
    %869 = vector.extract_strided_slice %786 {offsets = [0, 24], sizes = [8, 8], strides = [1, 1]} : vector<8x32xbf16> to vector<8x8xbf16>
    %cst_340 = arith.constant dense<0.000000e+00> : vector<8x8xf32>
    %870 = tpu.matmul %868, %869, %cst_340 {dimension_numbers = #tpu.dot_dimension_numbers<[1], [0], [0], [1], [0, 0, 1, 1], [], []>} : vector<8x8xbf16>, vector<8x8xbf16>, vector<8x8xf32> -> vector<8x8xf32>
    %871 = tpu.concatenate %807, %828, %849, %870 in 1 : vector<8x8xf32>, vector<8x8xf32>, vector<8x8xf32>, vector<8x8xf32> -> vector<8x32xf32>
    %872 = arith.truncf %871 : vector<8x32xf32> to vector<8x32xbf16>
    %cst_341 = arith.constant dense<0.000000e+00> : vector<8x32xf32>
    %873 = tpu.matmul %872, %649, %cst_341 {dimension_numbers = #tpu.dot_dimension_numbers<[1], [0], [0], [1], [0, 0, 1, 1], [], []>} : vector<8x32xbf16>, vector<32x32xbf16>, vector<8x32xf32> -> vector<8x32xf32>
    %874 = vector.broadcast %650 : vector<1x32xf32> to vector<8x32xf32>
    %875 = arith.addf %873, %874 : vector<8x32xf32>
    %876 = arith.addf %774, %875 : vector<8x32xf32>
    %cst_342 = arith.constant dense<0.000000e+00> : vector<8xf32>
    %877 = vector.multi_reduction <add>, %876, %cst_342 [1] : vector<8x32xf32> to vector<8xf32>
    %878 = vector.shape_cast %877 : vector<8xf32> to vector<8x1xf32>
    %cst_343 = arith.constant 3.200000e+01 : f32
    %879 = vector.broadcast %cst_343 : f32 to vector<8x1xf32>
    %880 = arith.divf %878, %879 : vector<8x1xf32>
    %881 = vector.broadcast %880 : vector<8x1xf32> to vector<8x32xf32>
    %882 = arith.subf %876, %881 : vector<8x32xf32>
    %883 = arith.mulf %882, %882 : vector<8x32xf32>
    %cst_344 = arith.constant dense<0.000000e+00> : vector<8xf32>
    %884 = vector.multi_reduction <add>, %883, %cst_344 [1] : vector<8x32xf32> to vector<8xf32>
    %885 = vector.shape_cast %884 : vector<8xf32> to vector<8x1xf32>
    %cst_345 = arith.constant 3.200000e+01 : f32
    %886 = vector.broadcast %cst_345 : f32 to vector<8x1xf32>
    %887 = arith.divf %885, %886 : vector<8x1xf32>
    %888 = vector.broadcast %880 : vector<8x1xf32> to vector<8x32xf32>
    %889 = arith.subf %876, %888 : vector<8x32xf32>
    %cst_346 = arith.constant 9.99999974E-6 : f32
    %890 = vector.broadcast %cst_346 : f32 to vector<8x1xf32>
    %891 = arith.addf %887, %890 : vector<8x1xf32>
    %892 = math.rsqrt %891 : vector<8x1xf32>
    %893 = vector.broadcast %892 : vector<8x1xf32> to vector<8x32xf32>
    %894 = arith.mulf %889, %893 : vector<8x32xf32>
    %895 = vector.broadcast %651 : vector<1x32xf32> to vector<8x32xf32>
    %896 = arith.mulf %894, %895 : vector<8x32xf32>
    %897 = vector.broadcast %652 : vector<1x32xf32> to vector<8x32xf32>
    %898 = arith.addf %896, %897 : vector<8x32xf32>
    %899 = arith.truncf %898 : vector<8x32xf32> to vector<8x32xbf16>
    %cst_347 = arith.constant dense<0.000000e+00> : vector<8x64xf32>
    %900 = tpu.matmul %899, %653, %cst_347 {dimension_numbers = #tpu.dot_dimension_numbers<[1], [0], [0], [1], [0, 0, 1, 1], [], []>} : vector<8x32xbf16>, vector<32x64xbf16>, vector<8x64xf32> -> vector<8x64xf32>
    %901 = vector.broadcast %654 : vector<1x64xf32> to vector<8x64xf32>
    %902 = arith.addf %900, %901 : vector<8x64xf32>
    %cst_348 = arith.constant 0.000000e+00 : f32
    %903 = vector.broadcast %cst_348 : f32 to vector<8x64xf32>
    %904 = arith.maximumf %902, %903 : vector<8x64xf32>
    %905 = arith.truncf %904 : vector<8x64xf32> to vector<8x64xbf16>
    %cst_349 = arith.constant dense<0.000000e+00> : vector<8x128xf32>
    %906 = tpu.matmul %905, %655, %cst_349 {dimension_numbers = #tpu.dot_dimension_numbers<[1], [0], [0], [1], [0, 0, 1, 1], [], []>} : vector<8x64xbf16>, vector<64x128xbf16>, vector<8x128xf32> -> vector<8x128xf32>
    %907 = vector.broadcast %656 : vector<1x128xf32> to vector<8x128xf32>
    %908 = arith.addf %906, %907 : vector<8x128xf32>
    %c0_350 = arith.constant 0 : index
    %c0_351 = arith.constant 0 : index
    %c0_352 = arith.constant 0 : index
    %909 = vector.load %arg43[%c0_350, %c0_351, %c0_352] : memref<1x8x128xf32, #tpu.memory_space<vmem>>, vector<1x8x128xf32>
    %910 = vector.shape_cast %909 : vector<1x8x128xf32> to vector<8x128xf32>
    %911 = vector.shape_cast %908 : vector<8x128xf32> to vector<1x8x128xf32>
    tpu.vector_store %arg43[%c0_350, %c0_351, %c0_352], %911 {strides = array<i32>} : memref<1x8x128xf32, #tpu.memory_space<vmem>>, vector<1x8x128xf32>,
    return
  }
  func.func @transform_0(%arg0: i32) -> (i32, i32, i32) {
    %c0_i32 = arith.constant 0 : i32
    %c0_i32_0 = arith.constant 0 : i32
    %c0_i32_1 = arith.constant 0 : i32
    return %arg0, %c0_i32, %c0_i32_0 : i32, i32, i32
  }
  func.func @transform_1(%arg0: i32) -> (i32, i32, i32) {
    %c0_i32 = arith.constant 0 : i32
    %c0_i32_0 = arith.constant 0 : i32
    %c0_i32_1 = arith.constant 0 : i32
    return %arg0, %c0_i32, %c0_i32_0 : i32, i32, i32
  }
  func.func @transform_2(%arg0: i32) -> (i32, i32, i32) {
    %c0_i32 = arith.constant 0 : i32
    %c0_i32_0 = arith.constant 0 : i32
    %c0_i32_1 = arith.constant 0 : i32
    return %arg0, %c0_i32, %c0_i32_0 : i32, i32, i32
  }
  func.func @transform_3(%arg0: i32) -> (i32, i32, i32, i32) {
    %c0_i32 = arith.constant 0 : i32
    %c0_i32_0 = arith.constant 0 : i32
    %c0_i32_1 = arith.constant 0 : i32
    %c0_i32_2 = arith.constant 0 : i32
    return %arg0, %c0_i32, %c0_i32_0, %c0_i32_1 : i32, i32, i32, i32
  }
  func.func @transform_4(%arg0: i32) -> (i32, i32, i32) {
    %c0_i32 = arith.constant 0 : i32
    %c0_i32_0 = arith.constant 0 : i32
    %c0_i32_1 = arith.constant 0 : i32
    %c0_i32_2 = arith.constant 0 : i32
    return %c0_i32, %c0_i32_0, %c0_i32_1 : i32, i32, i32
  }
  func.func @transform_5(%arg0: i32) -> (i32, i32, i32) {
    %c0_i32 = arith.constant 0 : i32
    %c0_i32_0 = arith.constant 0 : i32
    %c0_i32_1 = arith.constant 0 : i32
    %c0_i32_2 = arith.constant 0 : i32
    return %c0_i32, %c0_i32_0, %c0_i32_1 : i32, i32, i32
  }
  func.func @transform_6(%arg0: i32) -> (i32, i32, i32) {
    %c0_i32 = arith.constant 0 : i32
    %c0_i32_0 = arith.constant 0 : i32
    %c0_i32_1 = arith.constant 0 : i32
    %c0_i32_2 = arith.constant 0 : i32
    return %c0_i32, %c0_i32_0, %c0_i32_1 : i32, i32, i32
  }
  func.func @transform_7(%arg0: i32) -> (i32, i32, i32) {
    %c0_i32 = arith.constant 0 : i32
    %c0_i32_0 = arith.constant 0 : i32
    %c0_i32_1 = arith.constant 0 : i32
    %c0_i32_2 = arith.constant 0 : i32
    return %c0_i32, %c0_i32_0, %c0_i32_1 : i32, i32, i32
  }
  func.func @transform_8(%arg0: i32) -> (i32, i32, i32) {
    %c0_i32 = arith.constant 0 : i32
    %c0_i32_0 = arith.constant 0 : i32
    %c0_i32_1 = arith.constant 0 : i32
    %c0_i32_2 = arith.constant 0 : i32
    return %c0_i32, %c0_i32_0, %c0_i32_1 : i32, i32, i32
  }
  func.func @transform_9(%arg0: i32) -> (i32, i32, i32) {
    %c0_i32 = arith.constant 0 : i32
    %c0_i32_0 = arith.constant 0 : i32
    %c0_i32_1 = arith.constant 0 : i32
    %c0_i32_2 = arith.constant 0 : i32
    return %c0_i32, %c0_i32_0, %c0_i32_1 : i32, i32, i32
  }
  func.func @transform_10(%arg0: i32) -> (i32, i32, i32) {
    %c0_i32 = arith.constant 0 : i32
    %c0_i32_0 = arith.constant 0 : i32
    %c0_i32_1 = arith.constant 0 : i32
    %c0_i32_2 = arith.constant 0 : i32
    return %c0_i32, %c0_i32_0, %c0_i32_1 : i32, i32, i32
  }
  func.func @transform_11(%arg0: i32) -> (i32, i32, i32) {
    %c0_i32 = arith.constant 0 : i32
    %c0_i32_0 = arith.constant 0 : i32
    %c0_i32_1 = arith.constant 0 : i32
    %c0_i32_2 = arith.constant 0 : i32
    return %c0_i32, %c0_i32_0, %c0_i32_1 : i32, i32, i32
  }
  func.func @transform_12(%arg0: i32) -> (i32, i32, i32) {
    %c0_i32 = arith.constant 0 : i32
    %c0_i32_0 = arith.constant 0 : i32
    %c0_i32_1 = arith.constant 0 : i32
    %c0_i32_2 = arith.constant 0 : i32
    return %c0_i32, %c0_i32_0, %c0_i32_1 : i32, i32, i32
  }
  func.func @transform_13(%arg0: i32) -> (i32, i32, i32) {
    %c0_i32 = arith.constant 0 : i32
    %c0_i32_0 = arith.constant 0 : i32
    %c0_i32_1 = arith.constant 0 : i32
    %c0_i32_2 = arith.constant 0 : i32
    return %c0_i32, %c0_i32_0, %c0_i32_1 : i32, i32, i32
  }
  func.func @transform_14(%arg0: i32) -> (i32, i32, i32) {
    %c0_i32 = arith.constant 0 : i32
    %c0_i32_0 = arith.constant 0 : i32
    %c0_i32_1 = arith.constant 0 : i32
    %c0_i32_2 = arith.constant 0 : i32
    return %c0_i32, %c0_i32_0, %c0_i32_1 : i32, i32, i32
  }
  func.func @transform_15(%arg0: i32) -> (i32, i32, i32) {
    %c0_i32 = arith.constant 0 : i32
    %c0_i32_0 = arith.constant 0 : i32
    %c0_i32_1 = arith.constant 0 : i32
    %c0_i32_2 = arith.constant 0 : i32
    return %c0_i32, %c0_i32_0, %c0_i32_1 : i32, i32, i32
  }
  func.func @transform_16(%arg0: i32) -> (i32, i32, i32) {
    %c0_i32 = arith.constant 0 : i32
    %c0_i32_0 = arith.constant 0 : i32
    %c0_i32_1 = arith.constant 0 : i32
    %c0_i32_2 = arith.constant 0 : i32
    return %c0_i32, %c0_i32_0, %c0_i32_1 : i32, i32, i32
  }
  func.func @transform_17(%arg0: i32) -> (i32, i32, i32) {
    %c0_i32 = arith.constant 0 : i32
    %c0_i32_0 = arith.constant 0 : i32
    %c0_i32_1 = arith.constant 0 : i32
    %c0_i32_2 = arith.constant 0 : i32
    return %c0_i32, %c0_i32_0, %c0_i32_1 : i32, i32, i32
  }
  func.func @transform_18(%arg0: i32) -> (i32, i32, i32) {
    %c0_i32 = arith.constant 0 : i32
    %c0_i32_0 = arith.constant 0 : i32
    %c0_i32_1 = arith.constant 0 : i32
    %c0_i32_2 = arith.constant 0 : i32
    return %c0_i32, %c0_i32_0, %c0_i32_1 : i32, i32, i32
  }
  func.func @transform_19(%arg0: i32) -> (i32, i32, i32) {
    %c0_i32 = arith.constant 0 : i32
    %c0_i32_0 = arith.constant 0 : i32
    %c0_i32_1 = arith.constant 0 : i32
    %c0_i32_2 = arith.constant 0 : i32
    return %c0_i32, %c0_i32_0, %c0_i32_1 : i32, i32, i32
  }
  func.func @transform_20(%arg0: i32) -> (i32, i32, i32) {
    %c0_i32 = arith.constant 0 : i32
    %c0_i32_0 = arith.constant 0 : i32
    %c0_i32_1 = arith.constant 0 : i32
    %c0_i32_2 = arith.constant 0 : i32
    return %c0_i32, %c0_i32_0, %c0_i32_1 : i32, i32, i32
  }
  func.func @transform_21(%arg0: i32) -> (i32, i32, i32) {
    %c0_i32 = arith.constant 0 : i32
    %c0_i32_0 = arith.constant 0 : i32
    %c0_i32_1 = arith.constant 0 : i32
    %c0_i32_2 = arith.constant 0 : i32
    return %c0_i32, %c0_i32_0, %c0_i32_1 : i32, i32, i32
  }
  func.func @transform_22(%arg0: i32) -> (i32, i32, i32) {
    %c0_i32 = arith.constant 0 : i32
    %c0_i32_0 = arith.constant 0 : i32
    %c0_i32_1 = arith.constant 0 : i32
    %c0_i32_2 = arith.constant 0 : i32
    return %c0_i32, %c0_i32_0, %c0_i32_1 : i32, i32, i32
  }
  func.func @transform_23(%arg0: i32) -> (i32, i32, i32) {
    %c0_i32 = arith.constant 0 : i32
    %c0_i32_0 = arith.constant 0 : i32
    %c0_i32_1 = arith.constant 0 : i32
    %c0_i32_2 = arith.constant 0 : i32
    return %c0_i32, %c0_i32_0, %c0_i32_1 : i32, i32, i32
  }
  func.func @transform_24(%arg0: i32) -> (i32, i32) {
    %c0_i32 = arith.constant 0 : i32
    %c0_i32_0 = arith.constant 0 : i32
    %c0_i32_1 = arith.constant 0 : i32
    return %c0_i32, %c0_i32_0 : i32, i32
  }
  func.func @transform_25(%arg0: i32) -> (i32, i32) {
    %c0_i32 = arith.constant 0 : i32
    %c0_i32_0 = arith.constant 0 : i32
    %c0_i32_1 = arith.constant 0 : i32
    return %c0_i32, %c0_i32_0 : i32, i32
  }
  func.func @transform_26(%arg0: i32) -> (i32, i32) {
    %c0_i32 = arith.constant 0 : i32
    %c0_i32_0 = arith.constant 0 : i32
    %c0_i32_1 = arith.constant 0 : i32
    return %c0_i32, %c0_i32_0 : i32, i32
  }
  func.func @transform_27(%arg0: i32) -> (i32, i32) {
    %c0_i32 = arith.constant 0 : i32
    %c0_i32_0 = arith.constant 0 : i32
    %c0_i32_1 = arith.constant 0 : i32
    return %c0_i32, %c0_i32_0 : i32, i32
  }
  func.func @transform_28(%arg0: i32) -> (i32, i32) {
    %c0_i32 = arith.constant 0 : i32
    %c0_i32_0 = arith.constant 0 : i32
    %c0_i32_1 = arith.constant 0 : i32
    return %c0_i32, %c0_i32_0 : i32, i32
  }
  func.func @transform_29(%arg0: i32) -> (i32, i32) {
    %c0_i32 = arith.constant 0 : i32
    %c0_i32_0 = arith.constant 0 : i32
    %c0_i32_1 = arith.constant 0 : i32
    return %c0_i32, %c0_i32_0 : i32, i32
  }
  func.func @transform_30(%arg0: i32) -> (i32, i32) {
    %c0_i32 = arith.constant 0 : i32
    %c0_i32_0 = arith.constant 0 : i32
    %c0_i32_1 = arith.constant 0 : i32
    return %c0_i32, %c0_i32_0 : i32, i32
  }
  func.func @transform_31(%arg0: i32) -> (i32, i32) {
    %c0_i32 = arith.constant 0 : i32
    %c0_i32_0 = arith.constant 0 : i32
    %c0_i32_1 = arith.constant 0 : i32
    return %c0_i32, %c0_i32_0 : i32, i32
  }
  func.func @transform_32(%arg0: i32) -> (i32, i32) {
    %c0_i32 = arith.constant 0 : i32
    %c0_i32_0 = arith.constant 0 : i32
    %c0_i32_1 = arith.constant 0 : i32
    return %c0_i32, %c0_i32_0 : i32, i32
  }
  func.func @transform_33(%arg0: i32) -> (i32, i32) {
    %c0_i32 = arith.constant 0 : i32
    %c0_i32_0 = arith.constant 0 : i32
    %c0_i32_1 = arith.constant 0 : i32
    return %c0_i32, %c0_i32_0 : i32, i32
  }
  func.func @transform_34(%arg0: i32) -> (i32, i32) {
    %c0_i32 = arith.constant 0 : i32
    %c0_i32_0 = arith.constant 0 : i32
    %c0_i32_1 = arith.constant 0 : i32
    return %c0_i32, %c0_i32_0 : i32, i32
  }
  func.func @transform_35(%arg0: i32) -> (i32, i32) {
    %c0_i32 = arith.constant 0 : i32
    %c0_i32_0 = arith.constant 0 : i32
    %c0_i32_1 = arith.constant 0 : i32
    return %c0_i32, %c0_i32_0 : i32, i32
  }
  func.func @transform_36(%arg0: i32) -> (i32, i32) {
    %c0_i32 = arith.constant 0 : i32
    %c0_i32_0 = arith.constant 0 : i32
    %c0_i32_1 = arith.constant 0 : i32
    return %c0_i32, %c0_i32_0 : i32, i32
  }
  func.func @transform_37(%arg0: i32) -> (i32, i32) {
    %c0_i32 = arith.constant 0 : i32
    %c0_i32_0 = arith.constant 0 : i32
    %c0_i32_1 = arith.constant 0 : i32
    return %c0_i32, %c0_i32_0 : i32, i32
  }
  func.func @transform_38(%arg0: i32) -> (i32, i32) {
    %c0_i32 = arith.constant 0 : i32
    %c0_i32_0 = arith.constant 0 : i32
    %c0_i32_1 = arith.constant 0 : i32
    return %c0_i32, %c0_i32_0 : i32, i32
  }
  func.func @transform_39(%arg0: i32) -> (i32, i32) {
    %c0_i32 = arith.constant 0 : i32
    %c0_i32_0 = arith.constant 0 : i32
    %c0_i32_1 = arith.constant 0 : i32
    return %c0_i32, %c0_i32_0 : i32, i32
  }
  func.func @transform_40(%arg0: i32) -> (i32, i32) {
    %c0_i32 = arith.constant 0 : i32
    %c0_i32_0 = arith.constant 0 : i32
    %c0_i32_1 = arith.constant 0 : i32
    return %c0_i32, %c0_i32_0 : i32, i32
  }
  func.func @transform_41(%arg0: i32) -> (i32, i32) {
    %c0_i32 = arith.constant 0 : i32
    %c0_i32_0 = arith.constant 0 : i32
    %c0_i32_1 = arith.constant 0 : i32
    return %c0_i32, %c0_i32_0 : i32, i32
  }
  func.func @transform_42(%arg0: i32) -> (i32, i32, i32) {
    %c0_i32 = arith.constant 0 : i32
    %c0_i32_0 = arith.constant 0 : i32
    %c0_i32_1 = arith.constant 0 : i32
    return %arg0, %c0_i32, %c0_i32_0 : i32, i32, i32
  }
}

</mosaic_0001>

<bundles_post_ra>
// kernel: tpu_custom_call.1
= control target key start
LH: loop header
LB: loop body
LE: loop exit
PB: predicated region body
PF: predicated region fallthrough
CT: control target
= control target key end

     0   :  { %6 = vsyncpa [#allocation3], 0  ;;  %s305_s0 = inlined_call_operand.hbm [shape: f32[8,128], index: 0, kind: input, shape index: {}]   ;;  %s306_s1 = inlined_call_operand.hbm [shape: f32[8,128], index: 1, kind: output, shape index: {}]  }
   0x1   :  { %7 = vsyncpa [#allocation4], 0  ;;  %s258_s6 = smov 0  }
   0x2 LB: > { %s145_s7 = sadd.s32 4294967295, %s244_s6   ;;  %p146_p0 = scmp.ge.s32.totalorder %s244_s6, 1  ;;  %s244_s6 = sphi %s258_s6, %s13_s6  }
   0x3   : > { %p60_p1 = scmp.lt.s32.totalorder %s244_s6, 3  ;;  %p270_p3 = scmp.eq.s32.totalorder %s145_s7, 0 }
   0x4   : > { %s246_s10 = smov [#allocation2]  }
   0x5   : > { %p266_p2 = pnand %p146_p0, %p60_p1  ;;  %s73_s11 = sshll.u32 %s246_s10, 4  ;;  %s74_s11 = int_to_ptr.vmem [resolvable:$true] %s73_s11 }
   0x6   : > { %s191_s12 = scalar_lea.vmem %s74_s11, 128  ;;  %p199_p10 = scmp.lt.s32.totalorder %s74_s11, %s74_s11 }
   0x7   : > { %p162_p4 = pneg %p266_p2  ;;  %p192_p7 = scmp.ne.s32.totalorder %s74_s11, %s191_s12 }
   0x8   : > { %p200_p11 = scmp.lt.s32.totalorder %s191_s12, %s191_s12 }
   0x9   : > { %p163_p5 = pnand %p270_p3, %p162_p4 }
   0xa   : > { %p201_p12 = por %p200_p11, %p199_p10 }
   0xb   : > { %p182_p6 = pneg %p163_p5 }
   0xd   : > { %p194_p8 = pnand %p192_p7, %p182_p6 }
   0xf   : > { %p195_p9 = pneg %p194_p8 }
  0x11   : > { %p202_p13 = pnand %p201_p12, %p195_p9 }
  0x13   : > { %205 = shalt.err (!%p202_p13)
}
  0x14   : > { %165 = dma.hbm_to_vmem [thread:$0]  (!%p163_p5), %s305_s0, 128, %s74_s11, [#allocation3]  }
  0x15   : > { %86 = sbr.rel (%p266_p2) target bundleno = 42 (0x2a), region = 24 }
  0x1a   : > { %235 = dma.done.wait (%p270_p3), [#allocation3], 128  }
  0x1b   : > { %237 = vsyncadd (%p270_p3), [#allocation3], 4294967168  ;;  %s247_s15 = smov [#allocation5]   ;;  %v96_v0 = vld [vmem:[#allocation2] sm:$0xff]  ;;  %p287_p0 = scmp.eq.s32.totalorder %s145_s7, 1 }
  0x1c   : > { %s106_s16 = sshll.u32 %s247_s15, 4  ;;  %v97_v1 = vadd.f32 1.0, %v96_v0  ;;  %s107_s16 = int_to_ptr.vmem [resolvable:$true] %s106_s16 }
  0x1d   : > { %s206_s18 = scalar_lea.vmem %s107_s16, 128  ;;  %p213_p5 = scmp.lt.s32.totalorder %s107_s16, %s107_s16 }
  0x1e   : > { %98 = vst [vmem:[#allocation5] sm:$0xff] %v97_v1  ;;  %p207_p1 = scmp.ne.s32.totalorder %s107_s16, %s206_s18  ;;  %p214_p6 = scmp.lt.s32.totalorder %s206_s18, %s206_s18 }
  0x20   : > { %p208_p2 = pnand %p207_p1, %p287_p0  ;;  %p215_p7 = por %p214_p6, %p213_p5 }
  0x22   : > { %p209_p4 = pneg %p208_p2 }
  0x24   : > { %p216_p3 = pnand %p215_p7, %p209_p4 }
  0x26   : > { %219 = shalt.err (!%p216_p3)
}
  0x27   : > { %159 = dma.vmem_to_hbm [thread:$0]  (%p287_p0), %s107_s16, 128, %s306_s1, [#allocation4]  }
  0x28   : > { %239 = dma.done.wait (%p287_p0), [#allocation4], 128  }
  0x29   : > { %241 = vsyncadd (%p287_p0), [#allocation4], 4294967168 }
  0x2a PF: > { %s13_s6 = sadd.s32 1, %s244_s6  }
  0x2b   : > { %p10_p8 = scmp.ge.s32.totalorder %s13_s6, 4  }
  0x2d   :  { %12 = sbr.rel (!%p10_p8) target bundleno = 2 (0x2), region = 53 }
  0x32   :  { %119 = vsyncpa [#allocation3], 1 }
  0x33   :  { %121 = vsyncpa [#allocation3 + $0x1], 1 }
  0x34   :  { %122 = vsyncpa [#allocation4], 1 }
  0x35   :  { %124 = vsyncpa [#allocation4 + $0x1], 1 }

// kernel: decoder_forward.1
= control target key start
LH: loop header
LB: loop body
LE: loop exit
PB: predicated region body
PF: predicated region fallthrough
CT: control target
= control target key end

     0   :  { %s7114_s6 = smov 1   ;;  %s7115_s10 = smov 2   ;;  %s8180_s0 = inlined_call_operand.smem [shape: u32[43], index: -1, kind: input, shape index: {}] }
   0x1   :  { %s7181_s5 = sld [smem:[%s8180_s0]]   ;;  %s7116_s14 = smov 3  }
   0x2   :  { %s7186_s9 = sld [smem:[%s8180_s0 + %s7114_s6]]   ;;  %s7117_s18 = smov 4  }
   0x3   :  { %s7191_s13 = sld [smem:[%s8180_s0 + %s7115_s10]]   ;;  %s7118_s22 = smov 5  }
   0x4   :  { %s7196_s17 = sld [smem:[%s8180_s0 + %s7116_s14]]   ;;  %s7119_s26 = smov 6  }
   0x5   :  { %s7201_s21 = sld [smem:[%s8180_s0 + %s7117_s18]]   ;;  %s7120_s30 = smov 7  }
   0x6   :  { %s7206_s25 = sld [smem:[%s8180_s0 + %s7118_s22]]   ;;  %s7121_s4 = smov 8  }
   0x7   :  { %8237 = sst [smem:[#allocation5_spill]] %s7181_s5  ;;  %s7122_s10 = smov 9  }
   0x8   :  { %8238 = sst [smem:[#allocation6_spill]] %s7186_s9  ;;  %s7123_s15 = smov 10  }
   0x9   :  { %8239 = sst [smem:[#allocation7_spill]] %s7191_s13  ;;  %s7124_s20 = smov 11  }
   0xa   :  { %8240 = sst [smem:[#allocation8_spill]] %s7196_s17  ;;  %s7126_s1 = smov 13  }
   0xb   :  { %8241 = sst [smem:[#allocation9_spill]] %s7201_s21  ;;  %s7127_s7 = smov 14  }
   0xc   :  { %8242 = sst [smem:[#allocation10_spill]] %s7206_s25  ;;  %s7129_s22 = smov 16  }
   0xd   :  { %s7211_s29 = sld [smem:[%s8180_s0 + %s7119_s26]]   ;;  %s7125_s26 = smov 12  }
   0xe   :  { %s7216_s3 = sld [smem:[%s8180_s0 + %s7120_s30]]   ;;  %s7130_s28 = smov 17  }
   0xf   :  { %s7221_s8 = sld [smem:[%s8180_s0 + %s7121_s4]]  }
  0x10   :  { %s7226_s14 = sld [smem:[%s8180_s0 + %s7122_s10]]  }
  0x11   :  { %s7231_s19 = sld [smem:[%s8180_s0 + %s7123_s15]]   ;;  %s7128_s15 = smov 15  }
  0x12   :  { %s7236_s24 = sld [smem:[%s8180_s0 + %s7124_s20]]  }
  0x13   :  { %s7241_s30 = sld [smem:[%s8180_s0 + %s7125_s26]]  }
  0x14   :  { %8243 = sst [smem:[#allocation11_spill]] %s7216_s3 }
  0x15   :  { %s7246_s6 = sld [smem:[%s8180_s0 + %s7126_s1]]  }
  0x16   :  { %s7251_s12 = sld [smem:[%s8180_s0 + %s7127_s7]]   ;;  %s7131_s7 = smov 18  }
  0x17   :  { %s7256_s20 = sld [smem:[%s8180_s0 + %s7128_s15]]   ;;  %s7132_s15 = smov 19  }
  0x18   :  { %s7261_s27 = sld [smem:[%s8180_s0 + %s7129_s22]]   ;;  %s7133_s22 = smov 20  }
  0x19   :  { %s7266_s4 = sld [smem:[%s8180_s0 + %s7130_s28]]   ;;  %s7134_s28 = smov 21  }
  0x1c   :  { %8244 = sst [smem:[#allocation12_spill]] %s7251_s12 }
  0x1d   :  { %8245 = sst [smem:[#allocation13_spill]] %s7256_s20 }
  0x1e   :  { %8246 = sst [smem:[#allocation14_spill]] %s7261_s27 }
  0x1f   :  { %8247 = sst [smem:[#allocation15_spill]] %s7266_s4 }
  0x20   :  { %s7271_s12 = sld [smem:[%s8180_s0 + %s7131_s7]]   ;;  %s7135_s7 = smov 22  }
  0x21   :  { %s7276_s20 = sld [smem:[%s8180_s0 + %s7132_s15]]   ;;  %s7136_s15 = smov 23  }
  0x22   :  { %s7281_s27 = sld [smem:[%s8180_s0 + %s7133_s22]]   ;;  %s7137_s22 = smov 24  }
  0x23   :  { %s7286_s4 = sld [smem:[%s8180_s0 + %s7134_s28]]   ;;  %s7138_s28 = smov 25  }
  0x26   :  { %8248 = sst [smem:[#allocation16_spill]] %s7271_s12 }
  0x27   :  { %8249 = sst [smem:[#allocation17_spill]] %s7276_s20 }
  0x28   :  { %8250 = sst [smem:[#allocation18_spill]] %s7281_s27 }
  0x29   :  { %8251 = sst [smem:[#allocation19_spill]] %s7286_s4 }
  0x2a   :  { %s7291_s12 = sld [smem:[%s8180_s0 + %s7135_s7]]   ;;  %s7139_s7 = smov 26  }
  0x2b   :  { %s7296_s20 = sld [smem:[%s8180_s0 + %s7136_s15]]   ;;  %s7140_s15 = smov 27  }
  0x2c   :  { %s7301_s27 = sld [smem:[%s8180_s0 + %s7137_s22]]   ;;  %s7141_s22 = smov 28  }
  0x2d   :  { %s7306_s4 = sld [smem:[%s8180_s0 + %s7138_s28]]   ;;  %s7142_s28 = smov 29  }
  0x30   :  { %8252 = sst [smem:[#allocation20_spill]] %s7291_s12 }
  0x31   :  { %8253 = sst [smem:[#allocation21_spill]] %s7296_s20 }
  0x32   :  { %8254 = sst [smem:[#allocation22_spill]] %s7301_s27 }
  0x33   :  { %8255 = sst [smem:[#allocation23_spill]] %s7306_s4 }
  0x34   :  { %s7311_s12 = sld [smem:[%s8180_s0 + %s7139_s7]]   ;;  %s7143_s7 = smov 30  }
  0x35   :  { %s7316_s20 = sld [smem:[%s8180_s0 + %s7140_s15]]   ;;  %s7144_s15 = smov 31  }
  0x36   :  { %s7321_s27 = sld [smem:[%s8180_s0 + %s7141_s22]]   ;;  %s7145_s22 = smov 32  }
  0x37   :  { %s7326_s4 = sld [smem:[%s8180_s0 + %s7142_s28]]   ;;  %s7146_s28 = smov 33  }
  0x3a   :  { %8256 = sst [smem:[#allocation24_spill]] %s7311_s12 }
  0x3b   :  { %8257 = sst [smem:[#allocation25_spill]] %s7316_s20 }
  0x3c   :  { %8258 = sst [smem:[#allocation26_spill]] %s7321_s27 }
  0x3d   :  { %8259 = sst [smem:[#allocation27_spill]] %s7326_s4 }
  0x3e   :  { %s7331_s12 = sld [smem:[%s8180_s0 + %s7143_s7]]   ;;  %s7147_s7 = smov 34  }
  0x3f   :  { %s7336_s20 = sld [smem:[%s8180_s0 + %s7144_s15]]   ;;  %s7148_s15 = smov 35  }
  0x40   :  { %s7341_s27 = sld [smem:[%s8180_s0 + %s7145_s22]]   ;;  %s7149_s22 = smov 36  }
  0x41   :  { %s7346_s4 = sld [smem:[%s8180_s0 + %s7146_s28]]   ;;  %s7150_s28 = smov 37  }
  0x44   :  { %8260 = sst [smem:[#allocation28_spill]] %s7331_s12 }
  0x45   :  { %8261 = sst [smem:[#allocation29_spill]] %s7336_s20 }
  0x46   :  { %8262 = sst [smem:[#allocation30_spill]] %s7341_s27 }
  0x47   :  { %8263 = sst [smem:[#allocation31_spill]] %s7346_s4 }
  0x48   :  { %s7351_s12 = sld [smem:[%s8180_s0 + %s7147_s7]]   ;;  %s7151_s7 = smov 38  }
  0x49   :  { %s7356_s20 = sld [smem:[%s8180_s0 + %s7148_s15]]   ;;  %s7152_s15 = smov 39  }
  0x4a   :  { %s7361_s27 = sld [smem:[%s8180_s0 + %s7149_s22]]   ;;  %s7153_s22 = smov 40  }
  0x4b   :  { %s7366_s4 = sld [smem:[%s8180_s0 + %s7150_s28]]   ;;  %s7154_s28 = smov 41  }
  0x4e   :  { %8264 = sst [smem:[#allocation32_spill]] %s7351_s12 }
  0x4f   :  { %8265 = sst [smem:[#allocation33_spill]] %s7356_s20 }
  0x50   :  { %8266 = sst [smem:[#allocation34_spill]] %s7361_s27 }
  0x51   :  { %8267 = sst [smem:[#allocation35_spill]] %s7366_s4 }
  0x52   :  { %s7371_s12 = sld [smem:[%s8180_s0 + %s7151_s7]]   ;;  %s7155_s7 = smov 42  }
  0x53   :  { %s7376_s20 = sld [smem:[%s8180_s0 + %s7152_s15]]  }
  0x54   :  { %s7381_s27 = sld [smem:[%s8180_s0 + %s7153_s22]]  }
  0x55   :  { %s7386_s4 = sld [smem:[%s8180_s0 + %s7154_s28]]  }
  0x58   :  { %8268 = sst [smem:[#allocation36_spill]] %s7371_s12 }
  0x59   :  { %8269 = sst [smem:[#allocation37_spill]] %s7376_s20 }
  0x5a   :  { %8270 = sst [smem:[#allocation38_spill]] %s7381_s27 }
  0x5b   :  { %8271 = sst [smem:[#allocation39_spill]] %s7386_s4 }
  0x5c   :  { %s7391_s12 = sld [smem:[%s8180_s0 + %s7155_s7]]  }
  0x62   :  { %8272 = sst [smem:[#allocation40_spill]] %s7391_s12 }
  0x63   :  { %90 = vsyncpa [#allocation3], 0  ;;  %s7393_s15 = smov 0  }
  0x64 LB: > { %s8273_s3 = sld [smem:[#allocation11_spill]]  ;;  %s7399_s16 = sadd.s32 4294967295, %s7112_s15   ;;  %s7112_s15 = sphi %s7393_s15, %s96_s15  }
  0x65   : > { %s8274_s25 = sld [smem:[#allocation10_spill]]  ;;  %p5981_p0 = scmp.ge.s32.totalorder %s7112_s15, 1 }
  0x66   : > { %s8275_s21 = sld [smem:[#allocation9_spill]]  ;;  %p1029_p1 = scmp.lt.s32.totalorder %s7112_s15, 3 }
  0x67   : > { %8276 = sst [smem:[#allocation41_spill]] %s7112_s15  ;;  %p6844_p3 = scmp.eq.s32.totalorder %s7399_s16, 0 }
  0x68   : > { %p7403_p2 = pnand %p5981_p0, %p1029_p1  ;;  %s7156_s18 = smov [#allocation2]  }
  0x69   : > { %s1153_s22 = sshll.u32 %s7156_s18, 4  ;;  %s1154_s22 = int_to_ptr.vmem [resolvable:$true] %s1153_s22 }
  0x6a   : > { %p6840_p4 = pneg %p7403_p2  ;;  %s7087_s23 = scalar_lea.vmem %s1154_s22, 16 }
  0x6b   : > { %p7088_p7 = scmp.ne.s32.totalorder %s1154_s22, %s7087_s23  ;;  %s7094_s26 = scalar_lea.vmem %s1154_s22, 32 }
  0x6c   : > { %p6841_p5 = pnand %p6844_p3, %p6840_p4  ;;  %p7095_p10 = scmp.lt.s32.totalorder %s1154_s22, %s1154_s22 }
  0x6d   : > { %p7096_p11 = scmp.lt.s32.totalorder %s7094_s26, %s7087_s23 }
  0x6e   : > { %p7078_p6 = pneg %p6841_p5 }
  0x6f   : > { %p7097_p12 = por %p7096_p11, %p7095_p10 }
  0x70   : > { %p7090_p8 = pnand %p7088_p7, %p7078_p6 }
  0x72   : > { %p7091_p9 = pneg %p7090_p8 }
  0x74   : > { %p7098_p13 = pnand %p7097_p12, %p7091_p9 }
  0x76   : > { %7101 = shalt.err (!%p7098_p13)
}
  0x77   : > { %s8278_s4 = sld [smem:[#allocation39_spill]] }
  0x79   : > { %1194 = sbr.rel (%p7403_p2) target bundleno = 12097 (0x2f41), region = 188 }
  0x7d   : > { %6843 = dma.hbm_to_vmem [thread:$0]  (!%p6841_p5), %s8278_s4, 16, %s1154_s22, [#allocation3]  }
  0x7e   : > { %7107 = dma.done.wait (%p6844_p3), [#allocation3], 16  }
  0x7f   : > { %7109 = vsyncadd (%p6844_p3), [#allocation3], 4294967280  ;;  %s8279_s5 = sld [smem:[#allocation5_spill]]  ;;  %p1306_p0 = scmp.lt.s32.totalorder %s7399_s16, 1  ;;  %v7157_v0 = vmov 0.0   ;;  %vm7158_vm0 = vmmov 0  }
  0x80   : > { %6368 = vmatprep.subr.bf16.mxu1 %v7157_v0  ;;  %6372 = vmatprep.mubr.msk.bf16.mxu1 %vm7158_vm0, %v7157_v0  ;;  %v6913_v1 = vld [vmem:[%s8275_s21 + $0x8] sm:$0xff]   ;;  %v6914_v2 = vld [vmem:[%s8275_s21] sm:$0xff]   ;;  %vm1402_vm1 = vcmask 261120   ;;  %s8222_s2 = smov 120   ;;  %s8224_s7 = smov 96   ;;  %vm1450_vm2 = vcmask 64512  }
  0x81   : > { %s8334_s16 = smov (!%p1306_p0, %s7399_s16), 1  ;;  %6382 = vmatprep.subr.bf16.mxu0 %v7157_v0  ;;  %6384 = vmatprep.mubr.msk.bf16.mxu0 %vm7158_vm0, %v7157_v0  ;;  %v5991_v5 = vld [vmem:[%s8274_s25] ss:$0 sm:$0xff]  ;;  %s8220_s10 = smov 80   ;;  %vm1522_vm3 = vcmask 1043456   ;;  %vm1915_vm4 = vcmask 130048  }
  0x82   : > { %8280 = sst [smem:[#allocation42_spill]] %s8334_s16  ;;  %s8197_s28 = sshll.u32 %s8334_s16, 3  ;;  %6369 = vmatpush3.bf16.msra.mxu1 %v6913_v1  ;;  %vm1917_vm5 = vcmask 195584   ;;  %vm2780_vm6 = vcmask 523264  }
  0x83   : > { %6370 = vmatprep.subr.bf16.mxu1 %v7157_v0  ;;  %s8198_s11 = smov 88   ;;  %s8212_s0 = smov 72  }
  0x84   : > { %s8214_s18 = smov 112   ;;  %s8210_s22 = smov 104  }
  0x85   : > { %s1309_s1 = scalar_lea.vmem %s8279_s5, %s8197_s28  ;;  %s8281_s13 = sld [smem:[#allocation7_spill]] }
  0x86   : > { %v7435_v3 = vld [vmem:[%s1309_s1] sm:$0xff]  ;;  %6371 = vmatpush3.bf16.msra.mxu1 %v6914_v2  ;;  %s8204_s26 = smov 56   ;;  %s8206_s1 = smov 64  }
  0x87   : > { %v1383_v4 = vpack.c.bf16 %v7435_v3, %v7435_v3  ;;  %6376 = vmatprep.subr.bf16.mxu1 %v7157_v0  ;;  %s8200_s28 = smov 40   ;;  %s8283_s9 = sld [smem:[#allocation6_spill]] }
  0x88   : > { %s8284_s17 = sld [smem:[#allocation8_spill]]  ;;  %s8301_s15 = smov 72  }
  0x89   : > { %6373 = vmatmul.mubr.msk.bf16.vlgmr.msra.gmra.mxu1 %vm1402_vm1, %v1383_v4  ;;  %s8294_s4 = sld [smem:[#allocation19_spill]]  ;;  %s8302_s12 = smov 104  }
  0x8a   : > { %6378 = vmatprep.mubr.msk.bf16.mxu1 %vm7158_vm0, %v7157_v0  ;;  %s8295_s5 = sld [smem:[#allocation20_spill]]  ;;  %s8304_s20 = smov 56  }
  0x8b   : > { %s7484_s23 = scalar_lea.vmem %s8281_s13, %s8334_s16  ;;  %s8297_s13 = smov 96  }
  0x8c   : > { %8282 = sst [smem:[#allocation43_spill]] %s7484_s23  ;;  %v5996_v23 = vld [vmem:[%s7484_s23] ss:$0 sm:$0xff]  ;;  %s8305_s27 = smov 48  }
 0x149   : > { %v1440_v6 = vpop.f32.mrf.mxu1 }
 0x14a   : > { %v1441_v7 = vadd.f32 %v5991_v5, %v1440_v6 }
 0x14b   : > { %v6374_v8 = vpop.f32.mrf.mxu1 }
 0x14c   : > { %v7445_v9 = vpack.c.bf16 %v1441_v7, %v1441_v7 }
 0x14d   : > { %v1443_v10 = vpop.f32.mrf.mxu1 }
 0x14e   : > { %1566 = vrot.lane.b32.xlu1 %v7445_v9, %s8222_s2  ;;  %1448 = vrot.lane.b32.xlu0 %v7445_v9, %s8224_s7 }
 0x14f   : > { %v6375_v11 = vpop.f32.mrf.mxu1 }
 0x152   : > { %1680 = vrot.lane.b32.xlu1 %v7445_v9, %s8220_s10  ;;  %1568 = vrot.lane.b32.xlu0 %v7445_v9, %s8198_s11  ;;  %s8202_s11 = smov 48  }
 0x156   : > { %1792 = vrot.lane.b32.xlu1 %v7445_v9, %s8212_s0  ;;  %1678 = vrot.lane.b32.xlu0 %v7445_v9, %s8214_s18 }
 0x15a   : > { %1790 = vrot.lane.b32.xlu0 %v7445_v9, %s8210_s22 }
 0x1c0   : > { %v1449_v12 = vpop.permute.xlu0 %1448  ;;  %v1567_v15 = vpop.permute.xlu1 %1566 }
 0x1c1   : > { %v1455_v13 = vsel %vm1450_vm2, %v1449_v12, 0 }
 0x1c2   : > { %6377 = vmatpush3.bf16.xpose.msra.mxu1 %v1455_v13 }
 0x1c3   : > { %6388 = vmatprep.subr.bf16.mxu1 %v7157_v0 }
 0x1c4   : > { %v1569_v14 = vpop.permute.xlu0 %1568  ;;  %v1681_v17 = vpop.permute.xlu1 %1680 }
 0x1c5   : > { %v1574_v16 = vsel %vm1450_vm2, %v1569_v14, 0  ;;  %v1686_v18 = vsel %vm1450_vm2, %v1681_v17, 0 }
 0x1c8   : > { %v1793_v19 = vpop.permute.xlu1 %1792  ;;  %v1679_v20 = vpop.permute.xlu0 %1678 }
 0x1c9   : > { %6379 = vmatmul.mubr.msk.bf16.vlgmr.msra.gmra.mxu1 %vm1450_vm2, %v7445_v9  ;;  %v1798_v21 = vsel %vm1450_vm2, %v1793_v19, 0 }
 0x1ca   : > { %6389 = vmatpush3.bf16.xpose.msra.mxu1 %v1574_v16  ;;  %6390 = vmatprep.mubr.msk.bf16.mxu1 %vm7158_vm0, %v7157_v0 }
 0x1cb   : > { %6400 = vmatprep.subr.bf16.mxu1 %v7157_v0 }
 0x1cc   : > { %v1791_v22 = vpop.permute.xlu0 %1790 }
 0x1d1   : > { %6391 = vmatmul.mubr.msk.bf16.vlgmr.msra.gmra.mxu1 %vm1450_vm2, %v1567_v15 }
 0x1d2   : > { %6401 = vmatpush3.bf16.xpose.msra.mxu1 %v1686_v18  ;;  %6402 = vmatprep.mubr.msk.bf16.mxu1 %vm7158_vm0, %v7157_v0 }
 0x1d3   : > { %6412 = vmatprep.subr.bf16.mxu1 %v7157_v0 }
 0x1d9   : > { %6403 = vmatmul.mubr.msk.bf16.vlgmr.msra.gmra.mxu1 %vm1450_vm2, %v1679_v20 }
 0x1da   : > { %6413 = vmatpush3.bf16.xpose.msra.mxu1 %v1798_v21  ;;  %6414 = vmatprep.mubr.msk.bf16.mxu1 %vm7158_vm0, %v7157_v0 }
 0x1db   : > { %6424 = vmatprep.subr.bf16.mxu1 %v7157_v0 }
 0x1e1   : > { %6415 = vmatmul.mubr.msk.bf16.vlgmr.msra.gmra.mxu1 %vm1450_vm2, %v1791_v22 }
 0x1e2   : > { %6428 = vmatprep.mubr.msk.bf16.mxu1 %vm7158_vm0, %v7157_v0 }
 0x289   : > { %v1491_v24 = vpop.f32.mrf.mxu1 }
 0x28a   : > { %v1497_v25 = vmul.f32 0.35355338, %v1491_v24 }
 0x28b   : > { %v6380_v26 = vpop.f32.mrf.mxu1 }
 0x28c   : > { %v1504_v27 = vadd.f32 %v5996_v23, %v1497_v25 }
 0x28d   : > { %v1494_v28 = vpop.f32.mrf.mxu1 }
 0x28e   : > { %v1505_v29 = vsel %vm1450_vm2, %v1504_v27, -inf }
 0x28f   : > { %1506 = vmax.xlane.f32.xlu1 %v1505_v29  ;;  %v6381_v30 = vpop.f32.mrf.mxu1 }
 0x291   : > { %v1610_v31 = vpop.f32.mrf.mxu1 }
 0x292   : > { %v1616_v32 = vmul.f32 0.35355338, %v1610_v31 }
 0x293   : > { %v6392_v33 = vpop.f32.mrf.mxu1 }
 0x294   : > { %v1617_v34 = vadd.f32 %v5996_v23, %v1616_v32 }
 0x295   : > { %v1613_v35 = vpop.f32.mrf.mxu1 }
 0x296   : > { %v1618_v36 = vsel %vm1450_vm2, %v1617_v34, -inf }
 0x297   : > { %1619 = vmax.xlane.f32.xlu0 %v1618_v36  ;;  %v6393_v37 = vpop.f32.mrf.mxu1 }
 0x299   : > { %v1722_v38 = vpop.f32.mrf.mxu1 }
 0x29a   : > { %v1728_v39 = vmul.f32 0.35355338, %v1722_v38 }
 0x29b   : > { %v6404_v40 = vpop.f32.mrf.mxu1 }
 0x29c   : > { %v1729_v41 = vadd.f32 %v5996_v23, %v1728_v39 }
 0x29d   : > { %v1725_v42 = vpop.f32.mrf.mxu1 }
 0x29e   : > { %v1730_v43 = vsel %vm1450_vm2, %v1729_v41, -inf  ;;  %v6915_v42 = vld [vmem:[%s7211_s29 + $0x8] sm:$0xff]  }
 0x29f   : > { %1731 = vmax.xlane.f32.xlu0 %v1730_v43  ;;  %v6405_v44 = vpop.f32.mrf.mxu1  ;;  %6425 = vmatpush3.bf16.msra.mxu1 %v6915_v42  ;;  %v6916_v43 = vld [vmem:[%s7211_s29] sm:$0xff]  }
 0x2a0   : > { %6426 = vmatprep.subr.bf16.mxu1 %v7157_v0 }
 0x2a1   : > { %v1834_v45 = vpop.f32.mrf.mxu1 }
 0x2a2   : > { %v1840_v46 = vmul.f32 0.35355338, %v1834_v45 }
 0x2a3   : > { %v6416_v47 = vpop.f32.mrf.mxu1  ;;  %6427 = vmatpush3.bf16.msra.mxu1 %v6916_v43 }
 0x2a4   : > { %v1841_v48 = vadd.f32 %v5996_v23, %v1840_v46  ;;  %6440 = vmatprep.subr.bf16.mxu1 %v7157_v0 }
 0x2a5   : > { %v1837_v49 = vpop.f32.mrf.mxu1 }
 0x2a6   : > { %v1842_v50 = vsel %vm1450_vm2, %v1841_v48, -inf }
 0x2a7   : > { %1843 = vmax.xlane.f32.xlu1 %v1842_v50  ;;  %v6417_v51 = vpop.f32.mrf.mxu1 }
 0x318   : > { %v1507_v52 = vpop.xlane.xlu1 %1506 }
 0x319   : > { %v1508_v53 = vsub.f32 %v1504_v27, %v1507_v52 }
 0x31b   : > { %v1509_v54 = vmul.f32 1.442695, %v1508_v53 }
 0x31d   : > { %6961 = vpow2.f32 %v1509_v54 }
 0x320   : > { %v1620_v55 = vpop.xlane.xlu0 %1619 }
 0x321   : > { %v1621_v56 = vsub.f32 %v1617_v34, %v1620_v55 }
 0x323   : > { %v1622_v57 = vmul.f32 1.442695, %v1621_v56 }
 0x325   : > { %6963 = vpow2.f32 %v1622_v57 }
 0x328   : > { %v1732_v58 = vpop.xlane.xlu0 %1731 }
 0x329   : > { %v1733_v59 = vsub.f32 %v1729_v41, %v1732_v58 }
 0x32a   : > { %v6962_v60 = vpop.eup %6961 }
 0x32b   : > { %v1734_v61 = vmul.f32 1.442695, %v1733_v59  ;;  %v1511_v62 = vsel %vm1450_vm2, %v6962_v60, 0.0  ;;  %v6004_v59 = vld [vmem:[%s8273_s3] ss:$0 sm:$0xff] }
 0x32c   : > { %1512 = vadd.xlane.f32.xlu0 %v1511_v62 }
 0x32d   : > { %6965 = vpow2.f32 %v1734_v61 }
 0x330   : > { %v1844_v5 = vpop.xlane.xlu1 %1843 }
 0x331   : > { %v1845_v6 = vsub.f32 %v1841_v48, %v1844_v5 }
 0x332   : > { %v6964_v63 = vpop.eup %6963 }
 0x333   : > { %v1624_v1 = vsel %vm1450_vm2, %v6964_v63, 0.0  ;;  %v1846_v7 = vmul.f32 1.442695, %v1845_v6 }
 0x334   : > { %1625 = vadd.xlane.f32.xlu1 %v1624_v1 }
 0x335   : > { %6967 = vpow2.f32 %v1846_v7 }
 0x33a   : > { %v6966_v2 = vpop.eup %6965 }
 0x33b   : > { %v1736_v4 = vsel %vm1450_vm2, %v6966_v2, 0.0 }
 0x33c   : > { %1737 = vadd.xlane.f32.xlu0 %v1736_v4 }
 0x342   : > { %v6968_v8 = vpop.eup %6967 }
 0x343   : > { %v1848_v10 = vsel %vm1450_vm2, %v6968_v8, 0.0 }
 0x345   : > { %1630 = vrot.lane.b32.xlu1 %v7445_v9, %s8204_s26  ;;  %s8208_s26 = smov 24  }
 0x352   : > { %1517 = vrot.lane.b32.xlu0 %v7445_v9, %s8206_s1  ;;  %s5987_s1 = sshll.u32 %s8334_s16, 2 }
 0x356   : > { %1854 = vrot.lane.b32.xlu0 %v7445_v9, %s8200_s28  ;;  %s8218_s28 = smov 8  }
 0x369   : > { %1849 = vadd.xlane.f32.xlu1 %v1848_v10 }
 0x37a   : > { %1742 = vrot.lane.b32.xlu1 %v7445_v9, %s8202_s11  ;;  %s8216_s11 = smov 16  }
 0x3b5   : > { %v1513_v11 = vpop.xlane.xlu0 %1512 }
 0x3b6   : > { %6969 = vrcp.f32 %v1513_v11  ;;  %v6917_v11 = vld [vmem:[%s7241_s30 + $0x8] sm:$0xff]  }
 0x3bd   : > { %v1626_v12 = vpop.xlane.xlu1 %1625 }
 0x3be   : > { %6971 = vrcp.f32 %v1626_v12 }
 0x3c1   : > { %v1631_v18 = vpop.permute.xlu1 %1630 }
 0x3c2   : > { %v1636_v21 = vsel %vm1522_vm3, %v1631_v18, 0 }
 0x3c3   : > { %v6970_v13 = vpop.eup %6969 }
 0x3c4   : > { %v1515_v15 = vmul.f32 %v6970_v13, %v6962_v60  ;;  %v6919_v13 = vld [vmem:[%s7231_s19 + $0x8] sm:$0xff]  }
 0x3c5   : > { %v1738_v14 = vpop.xlane.xlu0 %1737 }
 0x3c6   : > { %v1516_v19 = vpack.c.bf16 %v1515_v15, %v1515_v15  ;;  %6973 = vrcp.f32 %v1738_v14  ;;  %v6920_v14 = vld [vmem:[%s7231_s19] sm:$0xff]  }
 0x3c9   : > { %v1518_v16 = vpop.permute.xlu0 %1517 }
 0x3ca   : > { %v1524_v17 = vsel %vm1522_vm3, %v1518_v16, 0 }
 0x3cb   : > { %6383 = vmatpush3.bf16.msra.mxu0 %v1524_v17  ;;  %v6972_v20 = vpop.eup %6971 }
 0x3cc   : > { %6394 = vmatprep.subr.bf16.mxu0 %v7157_v0  ;;  %v1628_v9 = vmul.f32 %v6972_v20, %v6964_v63 }
 0x3cd   : > { %v1855_v28 = vpop.permute.xlu0 %1854 }
 0x3ce   : > { %6385 = vmatmul.mubr.msk.bf16.vlgmr.msra.gmra.mxu0 %vm1450_vm2, %v1516_v19  ;;  %v1629_v22 = vpack.c.bf16 %v1628_v9, %v1628_v9  ;;  %v1860_v30 = vsel %vm1522_vm3, %v1855_v28, 0  ;;  %v6008_v19 = vld [vmem:[%s7221_s8] ss:$0 sm:$0xff] }
 0x3cf   : > { %6395 = vmatpush3.bf16.msra.mxu0 %v1636_v21  ;;  %6396 = vmatprep.mubr.msk.bf16.mxu0 %vm7158_vm0, %v7157_v0  ;;  %v6009_v21 = vld [vmem:[%s7226_s14] ss:$0 sm:$0xff] }
 0x3d0   : > { %6406 = vmatprep.subr.bf16.mxu0 %v7157_v0 }
 0x3d3   : > { %v6974_v23 = vpop.eup %6973 }
 0x3d4   : > { %v1740_v25 = vmul.f32 %v6974_v23, %v6966_v2 }
 0x3d6   : > { %6397 = vmatmul.mubr.msk.bf16.vlgmr.msra.gmra.mxu0 %vm1450_vm2, %v1629_v22  ;;  %v1741_v29 = vpack.c.bf16 %v1740_v25, %v1740_v25 }
 0x3d7   : > { %6408 = vmatprep.mubr.msk.bf16.mxu0 %vm7158_vm0, %v7157_v0 }
 0x3f2   : > { %v1850_v24 = vpop.xlane.xlu1 %1849 }
 0x3f3   : > { %6975 = vrcp.f32 %v1850_v24  ;;  %v6014_v24 = vld [vmem:[%s7246_s6] ss:$0 sm:$0xff] }
 0x3f6   : > { %v1743_v26 = vpop.permute.xlu1 %1742 }
 0x3f7   : > { %v1748_v27 = vsel %vm1522_vm3, %v1743_v26, 0 }
 0x3f8   : > { %6407 = vmatpush3.bf16.msra.mxu0 %v1748_v27 }
 0x3f9   : > { %6418 = vmatprep.subr.bf16.mxu0 %v7157_v0 }
 0x3fb   : > { %6409 = vmatmul.mubr.msk.bf16.vlgmr.msra.gmra.mxu0 %vm1450_vm2, %v1741_v29 }
 0x3fc   : > { %6419 = vmatpush3.bf16.msra.mxu0 %v1860_v30  ;;  %6420 = vmatprep.mubr.msk.bf16.mxu0 %vm7158_vm0, %v7157_v0 }
 0x3fd   : > { %6432 = vmatprep.subr.bf16.mxu0 %v7157_v0 }
 0x400   : > { %v6976_v31 = vpop.eup %6975 }
 0x401   : > { %v1852_v32 = vmul.f32 %v6976_v31, %v6968_v8 }
 0x403   : > { %v1853_v33 = vpack.c.bf16 %v1852_v32, %v1852_v32  ;;  %v6010_v32 = vld [vmem:[%s7236_s24] ss:$0 sm:$0xff] }
 0x405   : > { %6421 = vmatmul.mubr.msk.bf16.vlgmr.msra.gmra.mxu0 %vm1450_vm2, %v1853_v33 }
 0x406   : > { %6436 = vmatprep.mubr.msk.bf16.mxu0 %vm7158_vm0, %v7157_v0  ;;  %6433 = vmatpush3.bf16.msra.mxu0 %v6919_v13 }
 0x407   : > { %6434 = vmatprep.subr.bf16.mxu0 %v7157_v0 }
 0x40a   : > { %6435 = vmatpush3.bf16.msra.mxu0 %v6920_v14 }
 0x40b   : > { %6448 = vmatprep.subr.bf16.mxu0 %v7157_v0 }
 0x48e   : > { %v1560_v34 = vpop.f32.mrf.mxu0 }
 0x490   : > { %v6386_v35 = vpop.f32.mrf.mxu0 }
 0x492   : > { %v1563_v36 = vpop.f32.mrf.mxu0 }
 0x494   : > { %v6387_v37 = vpop.f32.mrf.mxu0 }
 0x496   : > { %v1672_v38 = vpop.f32.mrf.mxu0 }
 0x497   : > { %1903 = vrot.lane.b32.xlu1 %v1672_v38, %s8218_s28 }
 0x498   : > { %v6398_v39 = vpop.f32.mrf.mxu0 }
 0x49a   : > { %v1675_v40 = vpop.f32.mrf.mxu0 }
 0x49c   : > { %v6399_v41 = vpop.f32.mrf.mxu0 }
 0x4bb   : > { %v1784_v44 = vpop.f32.mrf.mxu0 }
 0x4bc   : > { %1907 = vrot.lane.b32.xlu0 %v1784_v44, %s8216_s11 }
 0x4bd   : > { %v6410_v45 = vpop.f32.mrf.mxu0 }
 0x4bf   : > { %v1787_v46 = vpop.f32.mrf.mxu0 }
 0x4c1   : > { %v6411_v47 = vpop.f32.mrf.mxu0 }
 0x4c5   : > { %v1896_v48 = vpop.f32.mrf.mxu0 }
 0x4c6   : > { %1911 = vrot.lane.b32.xlu1 %v1896_v48, %s8208_s26  ;;  %s7545_s26 = scalar_lea.vmem %s8283_s9, %s5987_s1  ;;  %s6193_s1 = sshll.u32 %s8334_s16, 4 }
 0x4c7   : > { %v6422_v49 = vpop.f32.mrf.mxu0  ;;  %v1328_v12 = vld [vmem:[%s7545_s26] sm:$0xf]  ;;  %s8296_s9 = sld [smem:[#allocation21_spill]]  ;;  %s8303_s16 = smov 64  }
 0x4c9   : > { %v1899_v50 = vpop.f32.mrf.mxu0 }
 0x4cb   : > { %v6423_v51 = vpop.f32.mrf.mxu0 }
 0x509   : > { %v1904_v52 = vpop.permute.xlu1 %1903 }
 0x50a   : > { %v1914_v54 = vsel %vm1450_vm2, %v1560_v34, %v1904_v52 }
 0x52e   : > { %v1908_v53 = vpop.permute.xlu0 %1907 }
 0x52f   : > { %v1916_v55 = vsel %vm1915_vm4, %v1914_v54, %v1908_v53 }
 0x538   : > { %v1912_v56 = vpop.permute.xlu1 %1911 }
 0x539   : > { %v1918_v57 = vsel %vm1917_vm5, %v1916_v55, %v1912_v56 }
 0x53a   : > { %v1919_v58 = vpack.c.bf16 %v1918_v57, %v1918_v57 }
 0x53c   : > { %6429 = vmatmul.mubr.msk.bf16.vlgmr.msra.gmra.mxu1 %vm1402_vm1, %v1919_v58 }
 0x53d   : > { %6444 = vmatprep.mubr.msk.bf16.mxu1 %vm7158_vm0, %v7157_v0  ;;  %6441 = vmatpush3.bf16.msra.mxu1 %v6917_v11 }
 0x53e   : > { %6442 = vmatprep.subr.bf16.mxu1 %v7157_v0 }
 0x5fc   : > { %v1975_v60 = vpop.f32.mrf.mxu1 }
 0x5fd   : > { %v1976_v61 = vadd.f32 %v6004_v59, %v1975_v60 }
 0x5fe   : > { %v6430_v62 = vpop.f32.mrf.mxu1 }
 0x5ff   : > { %v1981_v63 = vadd.f32 %v1976_v61, %v7435_v3  ;;  %v6918_v3 = vld [vmem:[%s7241_s30] sm:$0xff]  }
 0x600   : > { %v1978_v1 = vpop.f32.mrf.mxu1  ;;  %6443 = vmatpush3.bf16.msra.mxu1 %v6918_v3 }
 0x601   : > { %v1982_v2 = vsel %vm1402_vm1, %v1981_v63, 0.0  ;;  %6454 = vmatprep.subr.bf16.mxu1 %v7157_v0 }
 0x602   : > { %1983 = vadd.xlane.f32.xlu0 %v1982_v2  ;;  %v6431_v4 = vpop.f32.mrf.mxu1 }
 0x603   : > { %6445 = vmatmul.mubr.msk.bf16.vlgmr.msra.gmra.mxu1 %vm1402_vm1, %v1328_v12 }
 0x604   : > { %6456 = vmatprep.mubr.msk.bf16.mxu1 %vm7158_vm0, %v7157_v0 }
 0x68b   : > { %v1984_v5 = vpop.xlane.xlu0 %1983 }
 0x68c   : > { %v1986_v6 = vmul.f32 0.03125, %v1984_v5 }
 0x68e   : > { %v1987_v7 = vsub.f32 %v1981_v63, %v1986_v6 }
 0x690   : > { %v1988_v8 = vmul.f32 %v1987_v7, %v1987_v7 }
 0x692   : > { %v1989_v10 = vsel %vm1402_vm1, %v1988_v8, 0.0 }
 0x693   : > { %1990 = vadd.xlane.f32.xlu1 %v1989_v10 }
 0x6c3   : > { %v2127_v25 = vpop.f32.mrf.mxu1 }
 0x6c4   : > { %v2128_v26 = vadd.f32 %v6014_v24, %v2127_v25 }
 0x6c5   : > { %v6446_v27 = vpop.f32.mrf.mxu1 }
 0x6c6   : > { %v7566_v28 = vpack.c.bf16 %v2128_v26, %v2128_v26 }
 0x6c7   : > { %v2130_v29 = vpop.f32.mrf.mxu1 }
 0x6c8   : > { %2247 = vrot.lane.b32.xlu0 %v7566_v28, %s8222_s2  ;;  %v2139_v30 = vsel %vm1450_vm2, %v7566_v28, 0 }
 0x6c9   : > { %v6447_v31 = vpop.f32.mrf.mxu1 }
 0x6cc   : > { %2359 = vrot.lane.b32.xlu0 %v7566_v28, %s8214_s18 }
 0x6d0   : > { %2471 = vrot.lane.b32.xlu0 %v7566_v28, %s8210_s22 }
 0x71c   : > { %v1991_v15 = vpop.xlane.xlu1 %1990 }
 0x71d   : > { %v1992_v16 = vmul.f32 0.03125, %v1991_v15 }
 0x71f   : > { %v1993_v17 = vadd.f32 1e-05, %v1992_v16 }
 0x721   : > { %6977 = vrsqrt.f32 %v1993_v17 }
 0x72e   : > { %v6978_v18 = vpop.eup %6977 }
 0x72f   : > { %v1995_v20 = vmul.f32 %v6978_v18, %v1987_v7 }
 0x731   : > { %v2002_v9 = vmul.f32 %v6008_v19, %v1995_v20 }
 0x733   : > { %v7558_v22 = vadd.f32 %v6009_v21, %v2002_v9 }
 0x735   : > { %v2010_v23 = vpack.c.bf16 %v7558_v22, %v7558_v22 }
 0x737   : > { %6437 = vmatmul.mubr.msk.bf16.vlgmr.msra.gmra.mxu0 %vm1402_vm1, %v2010_v23 }
 0x738   : > { %6450 = vmatprep.mubr.msk.bf16.mxu0 %vm7158_vm0, %v7157_v0  ;;  %6449 = vmatpush3.bf16.xpose.msra.mxu0 %v2139_v30 }
 0x739   : > { %6460 = vmatprep.subr.bf16.mxu0 %v7157_v0 }
 0x73a   : > { %v2248_v36 = vpop.permute.xlu0 %2247 }
 0x73b   : > { %v2253_v38 = vsel %vm1450_vm2, %v2248_v36, 0 }
 0x73e   : > { %v2360_v41 = vpop.permute.xlu0 %2359 }
 0x73f   : > { %v2365_v43 = vsel %vm1450_vm2, %v2360_v41, 0 }
 0x742   : > { %v2472_v44 = vpop.permute.xlu0 %2471 }
 0x743   : > { %v2477_v46 = vsel %vm1450_vm2, %v2472_v44, 0 }
 0x7f7   : > { %v2066_v33 = vpop.f32.mrf.mxu0 }
 0x7f8   : > { %v2067_v34 = vadd.f32 %v6010_v32, %v2066_v33 }
 0x7f9   : > { %v6438_v35 = vpop.f32.mrf.mxu0 }
 0x7fa   : > { %v2133_v37 = vpack.c.bf16 %v2067_v34, %v2067_v34 }
 0x7fb   : > { %v2069_v39 = vpop.f32.mrf.mxu0 }
 0x7fc   : > { %2245 = vrot.lane.b32.xlu1 %v2133_v37, %s8222_s2  ;;  %6451 = vmatmul.mubr.msk.bf16.vlgmr.msra.gmra.mxu0 %vm1450_vm2, %v2133_v37  ;;  %s8292_s2 = sld [smem:[#allocation15_spill]] }
 0x7fd   : > { %v6439_v40 = vpop.f32.mrf.mxu0  ;;  %6461 = vmatpush3.bf16.xpose.msra.mxu0 %v2253_v38  ;;  %6462 = vmatprep.mubr.msk.bf16.mxu0 %vm7158_vm0, %v7157_v0 }
 0x7fe   : > { %6472 = vmatprep.subr.bf16.mxu0 %v7157_v0 }
 0x800   : > { %2357 = vrot.lane.b32.xlu1 %v2133_v37, %s8214_s18  ;;  %s8288_s18 = smov 24  }
 0x804   : > { %2469 = vrot.lane.b32.xlu1 %v2133_v37, %s8210_s22  ;;  %s1321_s22 = scalar_lea.vmem %s8284_s17, %s6193_s1  ;;  %s8286_s1 = sld [smem:[#allocation12_spill]] }
 0x805   : > { %v6195_v48 = vld [vmem:[%s1321_s22] sm:$0xff]   ;;  %v6202_v63 = vld [vmem:[%s1321_s22 + $0x8] sm:$0xff]   ;;  %s8285_s22 = smov 88   ;;  %s8298_s17 = smov 120  }
 0x806   : > { %v7601_v49 = vunpack.c.l.bf16 %v6195_v48  ;;  %v7605_v57 = vunpack.c.h.bf16 %v6195_v48  ;;  %v7609_v4 = vunpack.c.l.bf16 %v6202_v63  ;;  %v7613_v12 = vunpack.c.h.bf16 %v6202_v63 }
 0x86e   : > { %v2246_v42 = vpop.permute.xlu1 %2245 }
 0x86f   : > { %6463 = vmatmul.mubr.msk.bf16.vlgmr.msra.gmra.mxu0 %vm1450_vm2, %v2246_v42 }
 0x870   : > { %6473 = vmatpush3.bf16.xpose.msra.mxu0 %v2365_v43  ;;  %6474 = vmatprep.mubr.msk.bf16.mxu0 %vm7158_vm0, %v7157_v0 }
 0x871   : > { %6484 = vmatprep.subr.bf16.mxu0 %v7157_v0 }
 0x872   : > { %v2358_v45 = vpop.permute.xlu1 %2357 }
 0x876   : > { %v2470_v47 = vpop.permute.xlu1 %2469 }
 0x877   : > { %6475 = vmatmul.mubr.msk.bf16.vlgmr.msra.gmra.mxu0 %vm1450_vm2, %v2358_v45 }
 0x878   : > { %6485 = vmatpush3.bf16.xpose.msra.mxu0 %v2477_v46  ;;  %6486 = vmatprep.mubr.msk.bf16.mxu0 %vm7158_vm0, %v7157_v0 }
 0x879   : > { %6496 = vmatprep.subr.bf16.mxu0 %v7157_v0 }
 0x87f   : > { %6487 = vmatmul.mubr.msk.bf16.vlgmr.msra.gmra.mxu0 %vm1450_vm2, %v2470_v47 }
 0x880   : > { %6500 = vmatprep.mubr.msk.bf16.mxu0 %vm7158_vm0, %v7157_v0 }
 0x8bc   : > { %v2175_v50 = vpop.f32.mrf.mxu0 }
 0x8bd   : > { %v2181_v51 = vmul.f32 0.35355338, %v2175_v50 }
 0x8be   : > { %v6452_v52 = vpop.f32.mrf.mxu0 }
 0x8bf   : > { %v2182_v53 = vadd.f32 %v7601_v49, %v2181_v51 }
 0x8c0   : > { %v2178_v54 = vpop.f32.mrf.mxu0 }
 0x8c1   : > { %v2183_v55 = vsel %vm1450_vm2, %v2182_v53, -inf }
 0x8c2   : > { %2184 = vmax.xlane.f32.xlu0 %v2183_v55  ;;  %v6453_v56 = vpop.f32.mrf.mxu0 }
 0x92f   : > { %v2289_v58 = vpop.f32.mrf.mxu0 }
 0x930   : > { %v2295_v59 = vmul.f32 0.35355338, %v2289_v58 }
 0x931   : > { %v6464_v60 = vpop.f32.mrf.mxu0 }
 0x932   : > { %v2296_v61 = vadd.f32 %v7605_v57, %v2295_v59 }
 0x933   : > { %v2292_v62 = vpop.f32.mrf.mxu0 }
 0x934   : > { %v2297_v1 = vsel %vm1450_vm2, %v2296_v61, -inf }
 0x935   : > { %2298 = vmax.xlane.f32.xlu1 %v2297_v1  ;;  %v6465_v2 = vpop.f32.mrf.mxu0 }
 0x937   : > { %v2401_v5 = vpop.f32.mrf.mxu0 }
 0x938   : > { %v2407_v6 = vmul.f32 0.35355338, %v2401_v5 }
 0x939   : > { %v6476_v7 = vpop.f32.mrf.mxu0 }
 0x93a   : > { %v2408_v8 = vadd.f32 %v7609_v4, %v2407_v6 }
 0x93b   : > { %v2404_v10 = vpop.f32.mrf.mxu0 }
 0x93c   : > { %v2409_v11 = vsel %vm1450_vm2, %v2408_v8, -inf  ;;  %v6921_v10 = vld [vmem:[%s8286_s1 + $0x8] sm:$0xff]  }
 0x93d   : > { %2410 = vmax.xlane.f32.xlu0 %v2409_v11  ;;  %v6477_v3 = vpop.f32.mrf.mxu0  ;;  %6497 = vmatpush3.bf16.msra.mxu0 %v6921_v10 }
 0x93e   : > { %6498 = vmatprep.subr.bf16.mxu0 %v7157_v0 }
 0x93f   : > { %v2513_v13 = vpop.f32.mrf.mxu0 }
 0x940   : > { %v2519_v14 = vmul.f32 0.35355338, %v2513_v13  ;;  %v6922_v13 = vld [vmem:[%s8286_s1] sm:$0xff]  }
 0x941   : > { %v6488_v15 = vpop.f32.mrf.mxu0  ;;  %6499 = vmatpush3.bf16.msra.mxu0 %v6922_v13 }
 0x942   : > { %v2520_v16 = vadd.f32 %v7613_v12, %v2519_v14  ;;  %6512 = vmatprep.subr.bf16.mxu0 %v7157_v0 }
 0x943   : > { %v2516_v17 = vpop.f32.mrf.mxu0 }
 0x944   : > { %v2521_v18 = vsel %vm1450_vm2, %v2520_v16, -inf }
 0x945   : > { %2522 = vmax.xlane.f32.xlu0 %v2521_v18  ;;  %v6489_v19 = vpop.f32.mrf.mxu0 }
 0x94b   : > { %v2185_v20 = vpop.xlane.xlu0 %2184 }
 0x94c   : > { %v2186_v21 = vsub.f32 %v2182_v53, %v2185_v20 }
 0x94e   : > { %v2187_v9 = vmul.f32 1.442695, %v2186_v21 }
 0x950   : > { %6979 = vpow2.f32 %v2187_v9 }
 0x95d   : > { %v6980_v23 = vpop.eup %6979 }
 0x95e   : > { %v2189_v24 = vsel %vm1450_vm2, %v6980_v23, 0.0 }
 0x95f   : > { %2190 = vadd.xlane.f32.xlu1 %v2189_v24 }
 0x970   : > { %2196 = vrot.lane.b32.xlu1 %v7566_v28, %s8224_s7  ;;  %s8293_s7 = sld [smem:[#allocation17_spill]] }
 0x9be   : > { %v2299_v25 = vpop.xlane.xlu1 %2298 }
 0x9bf   : > { %v2300_v26 = vsub.f32 %v2296_v61, %v2299_v25 }
 0x9c1   : > { %v2301_v27 = vmul.f32 1.442695, %v2300_v26 }
 0x9c3   : > { %6981 = vpow2.f32 %v2301_v27 }
 0x9c6   : > { %v2411_v29 = vpop.xlane.xlu0 %2410 }
 0x9c7   : > { %v2412_v30 = vsub.f32 %v2408_v8, %v2411_v29 }
 0x9c9   : > { %v2413_v31 = vmul.f32 1.442695, %v2412_v30 }
 0x9cb   : > { %6983 = vpow2.f32 %v2413_v31 }
 0x9ce   : > { %v2523_v32 = vpop.xlane.xlu0 %2522 }
 0x9cf   : > { %v2524_v33 = vsub.f32 %v2520_v16, %v2523_v32 }
 0x9d0   : > { %v6982_v34 = vpop.eup %6981 }
 0x9d1   : > { %v2525_v35 = vmul.f32 1.442695, %v2524_v33  ;;  %v2303_v36 = vsel %vm1450_vm2, %v6982_v34, 0.0 }
 0x9d2   : > { %2304 = vadd.xlane.f32.xlu0 %v2303_v36 }
 0x9d3   : > { %6985 = vpow2.f32 %v2525_v35 }
 0x9d8   : > { %v6984_v37 = vpop.eup %6983 }
 0x9d9   : > { %v2415_v38 = vsel %vm1450_vm2, %v6984_v37, 0.0 }
 0x9da   : > { %2416 = vadd.xlane.f32.xlu1 %v2415_v38 }
 0x9e0   : > { %v6986_v39 = vpop.eup %6985 }
 0x9e1   : > { %v2527_v40 = vsel %vm1450_vm2, %v6986_v39, 0.0 }
 0x9e2   : > { %2528 = vadd.xlane.f32.xlu0 %v2527_v40 }
 0x9e8   : > { %v2191_v41 = vpop.xlane.xlu1 %2190 }
 0x9e9   : > { %6987 = vrcp.f32 %v2191_v41 }
 0x9eb   : > { %2421 = vrot.lane.b32.xlu1 %v7566_v28, %s8220_s10  ;;  %s8291_s10 = sld [smem:[#allocation14_spill]] }
 0x9ec   : > { %v2197_v42 = vpop.permute.xlu1 %2196 }
 0x9ed   : > { %v2202_v43 = vsel %vm1522_vm3, %v2197_v42, 0 }
 0x9ee   : > { %6455 = vmatpush3.bf16.msra.mxu1 %v2202_v43 }
 0x9ef   : > { %2533 = vrot.lane.b32.xlu1 %v7566_v28, %s8212_s0  ;;  %6466 = vmatprep.subr.bf16.mxu1 %v7157_v0  ;;  %s8287_s0 = sld [smem:[#allocation13_spill]] }
 0x9f5   : > { %v6026_v32 = vld [vmem:[%s8287_s0] ss:$0 sm:$0xff] }
 0x9f6   : > { %v6988_v44 = vpop.eup %6987 }
 0x9f7   : > { %v2193_v45 = vmul.f32 %v6988_v44, %v6980_v23 }
 0x9f8   : > { %2309 = vrot.lane.b32.xlu0 %v7566_v28, %s8285_s22 }
 0x9f9   : > { %v2194_v46 = vpack.c.bf16 %v2193_v45, %v2193_v45 }
 0x9fb   : > { %6457 = vmatmul.mubr.msk.bf16.vlgmr.msra.gmra.mxu1 %vm1450_vm2, %v2194_v46 }
 0x9fc   : > { %6468 = vmatprep.mubr.msk.bf16.mxu1 %vm7158_vm0, %v7157_v0 }
 0xa5b   : > { %v2305_v47 = vpop.xlane.xlu0 %2304 }
 0xa5c   : > { %6989 = vrcp.f32 %v2305_v47 }
 0xa63   : > { %v2417_v48 = vpop.xlane.xlu1 %2416 }
 0xa64   : > { %6991 = vrcp.f32 %v2417_v48 }
 0xa67   : > { %v2422_v55 = vpop.permute.xlu1 %2421 }
 0xa68   : > { %v2427_v58 = vsel %vm1522_vm3, %v2422_v55, 0  ;;  %v6031_v55 = vld [vmem:[%s8292_s2] ss:$0 sm:$0xff] }
 0xa69   : > { %v6990_v50 = vpop.eup %6989 }
 0xa6a   : > { %v2307_v52 = vmul.f32 %v6990_v50, %v6982_v34 }
 0xa6b   : > { %v2529_v51 = vpop.xlane.xlu0 %2528  ;;  %v2534_v60 = vpop.permute.xlu1 %2533 }
 0xa6c   : > { %6993 = vrcp.f32 %v2529_v51  ;;  %v2308_v28 = vpack.c.bf16 %v2307_v52, %v2307_v52  ;;  %v2539_v63 = vsel %vm1522_vm3, %v2534_v60, 0 }
 0xa6f   : > { %v2310_v53 = vpop.permute.xlu0 %2309 }
 0xa70   : > { %v2315_v54 = vsel %vm1522_vm3, %v2310_v53, 0  ;;  %v6030_v53 = vld [vmem:[%s8291_s10] ss:$0 sm:$0xff] }
 0xa71   : > { %6467 = vmatpush3.bf16.msra.mxu1 %v2315_v54  ;;  %v6992_v56 = vpop.eup %6991 }
 0xa72   : > { %6478 = vmatprep.subr.bf16.mxu1 %v7157_v0  ;;  %v2419_v59 = vmul.f32 %v6992_v56, %v6984_v37 }
 0xa74   : > { %6469 = vmatmul.mubr.msk.bf16.vlgmr.msra.gmra.mxu1 %vm1450_vm2, %v2308_v28  ;;  %v2420_v61 = vpack.c.bf16 %v2419_v59, %v2419_v59 }
 0xa75   : > { %6479 = vmatpush3.bf16.msra.mxu1 %v2427_v58  ;;  %6480 = vmatprep.mubr.msk.bf16.mxu1 %vm7158_vm0, %v7157_v0 }
 0xa76   : > { %6490 = vmatprep.subr.bf16.mxu1 %v7157_v0 }
 0xa79   : > { %v6994_v62 = vpop.eup %6993 }
 0xa7a   : > { %v2531_v1 = vmul.f32 %v6994_v62, %v6986_v39 }
 0xa7c   : > { %6481 = vmatmul.mubr.msk.bf16.vlgmr.msra.gmra.mxu1 %vm1450_vm2, %v2420_v61  ;;  %v2532_v2 = vpack.c.bf16 %v2531_v1, %v2531_v1  ;;  %v6032_v61 = vld [vmem:[%s8293_s7] ss:$0 sm:$0xff] }
 0xa7d   : > { %6491 = vmatpush3.bf16.msra.mxu1 %v2539_v63  ;;  %6492 = vmatprep.mubr.msk.bf16.mxu1 %vm7158_vm0, %v7157_v0 }
 0xa7e   : > { %6504 = vmatprep.subr.bf16.mxu1 %v7157_v0 }
 0xa84   : > { %6493 = vmatmul.mubr.msk.bf16.vlgmr.msra.gmra.mxu1 %vm1450_vm2, %v2532_v2 }
 0xa85   : > { %6508 = vmatprep.mubr.msk.bf16.mxu1 %vm7158_vm0, %v7157_v0 }
 0xabb   : > { %v2238_v5 = vpop.f32.mrf.mxu1 }
 0xabd   : > { %v6458_v6 = vpop.f32.mrf.mxu1 }
 0xabf   : > { %v2241_v7 = vpop.f32.mrf.mxu1 }
 0xac1   : > { %v6459_v8 = vpop.f32.mrf.mxu1 }
 0xac2   : > { %v6036_v8 = vld [vmem:[%s8294_s4] ss:$0 sm:$0xff] }
 0xb34   : > { %v2351_v11 = vpop.f32.mrf.mxu1 }
 0xb35   : > { %2582 = vrot.lane.b32.xlu0 %v2351_v11, %s8218_s28  ;;  %s8290_s28 = sld [smem:[#allocation18_spill]] }
 0xb36   : > { %v6470_v3 = vpop.f32.mrf.mxu1 }
 0xb38   : > { %v2354_v14 = vpop.f32.mrf.mxu1 }
 0xb3a   : > { %v6471_v15 = vpop.f32.mrf.mxu1 }
 0xb3b   : > { %v6926_v47 = vld [vmem:[%s8290_s28 + $0x10] sm:$0xff]   ;;  %v6927_v59 = vld [vmem:[%s8290_s28 + $0x8] sm:$0xff]   ;;  %v6928_v60 = vld [vmem:[%s8290_s28] sm:$0xff]  }
 0xb3c   : > { %v2463_v16 = vpop.f32.mrf.mxu1 }
 0xb3d   : > { %2586 = vrot.lane.b32.xlu1 %v2463_v16, %s8216_s11  ;;  %s8289_s11 = sld [smem:[#allocation16_spill]] }
 0xb3e   : > { %v6482_v17 = vpop.f32.mrf.mxu1 }
 0xb40   : > { %v2466_v18 = vpop.f32.mrf.mxu1 }
 0xb42   : > { %v6483_v19 = vpop.f32.mrf.mxu1 }
 0xb43   : > { %v6923_v45 = vld [vmem:[%s8289_s11 + $0x8] sm:$0xff]   ;;  %v6924_v46 = vld [vmem:[%s8289_s11] sm:$0xff]  }
 0xb44   : > { %v2575_v20 = vpop.f32.mrf.mxu1  ;;  %6505 = vmatpush3.bf16.msra.mxu1 %v6923_v45 }
 0xb45   : > { %2590 = vrot.lane.b32.xlu0 %v2575_v20, %s8288_s18  ;;  %6506 = vmatprep.subr.bf16.mxu1 %v7157_v0 }
 0xb46   : > { %v6494_v21 = vpop.f32.mrf.mxu1 }
 0xb48   : > { %v2578_v9 = vpop.f32.mrf.mxu1  ;;  %6507 = vmatpush3.bf16.msra.mxu1 %v6924_v46 }
 0xb49   : > { %6524 = vmatprep.subr.bf16.mxu1 %v7157_v0  ;;  %v6929_v9 = vld [vmem:[%s8275_s21 + $0x18] sm:$0xff]  }
 0xb4a   : > { %v6495_v23 = vpop.f32.mrf.mxu1 }
 0xb4b   : > { %v6930_v23 = vld [vmem:[%s8275_s21 + $0x10] sm:$0xff]   ;;  %s8299_s21 = smov 80  }
 0xba7   : > { %v2583_v24 = vpop.permute.xlu0 %2582 }
 0xba8   : > { %v2593_v26 = vsel %vm1450_vm2, %v2238_v5, %v2583_v24 }
 0xbaf   : > { %v2587_v25 = vpop.permute.xlu1 %2586 }
 0xbb0   : > { %v2594_v27 = vsel %vm1915_vm4, %v2593_v26, %v2587_v25 }
 0xbb7   : > { %v2591_v29 = vpop.permute.xlu0 %2590 }
 0xbb8   : > { %v2595_v30 = vsel %vm1917_vm5, %v2594_v27, %v2591_v29  ;;  %v6042_v29 = vld [vmem:[%s8295_s5] ss:$0 sm:$0xff] }
 0xbb9   : > { %v2596_v31 = vpack.c.bf16 %v2595_v30, %v2595_v30 }
 0xbbb   : > { %6501 = vmatmul.mubr.msk.bf16.vlgmr.msra.gmra.mxu0 %vm1402_vm1, %v2596_v31  ;;  %v6043_v31 = vld [vmem:[%s8296_s9] ss:$0 sm:$0xff] }
 0xbbc   : > { %6520 = vmatprep.mubr.msk.bf16.mxu0 %vm7158_vm0, %v7157_v0 }
 0xc7b   : > { %v2652_v33 = vpop.f32.mrf.mxu0 }
 0xc7c   : > { %v2653_v34 = vadd.f32 %v6026_v32, %v2652_v33 }
 0xc7d   : > { %v6502_v35 = vpop.f32.mrf.mxu0 }
 0xc7e   : > { %v2658_v36 = vadd.f32 %v2653_v34, %v7558_v22  ;;  %v6925_v22 = vld [vmem:[%s8290_s28 + $0x18] sm:$0xff]   ;;  %v6089_v35 = vld [vmem:[%s8274_s25 + $0x1] ss:$0 sm:$0xff]  ;;  %s8300_s25 = smov 112  }
 0xc7f   : > { %v2655_v37 = vpop.f32.mrf.mxu0  ;;  %6513 = vmatpush3.bf16.msra.mxu0 %v6925_v22 }
 0xc80   : > { %v2659_v38 = vsel %vm1402_vm1, %v2658_v36, 0.0  ;;  %6514 = vmatprep.subr.bf16.mxu0 %v7157_v0 }
 0xc81   : > { %2660 = vadd.xlane.f32.xlu1 %v2659_v38  ;;  %v6503_v39 = vpop.f32.mrf.mxu0 }
 0xc83   : > { %6515 = vmatpush3.bf16.msra.mxu0 %v6926_v47 }
 0xc84   : > { %6516 = vmatprep.subr.bf16.mxu0 %v7157_v0 }
 0xc87   : > { %6517 = vmatpush3.bf16.msra.mxu0 %v6927_v59 }
 0xc88   : > { %6518 = vmatprep.subr.bf16.mxu0 %v7157_v0 }
 0xc8b   : > { %6519 = vmatpush3.bf16.msra.mxu0 %v6928_v60 }
 0xc8c   : > { %6538 = vmatprep.subr.bf16.mxu0 %v7157_v0 }
 0xd0a   : > { %v2661_v40 = vpop.xlane.xlu1 %2660 }
 0xd0b   : > { %v2662_v41 = vmul.f32 0.03125, %v2661_v40 }
 0xd0d   : > { %v2663_v42 = vsub.f32 %v2658_v36, %v2662_v41 }
 0xd0f   : > { %v2664_v43 = vmul.f32 %v2663_v42, %v2663_v42 }
 0xd11   : > { %v2665_v44 = vsel %vm1402_vm1, %v2664_v43, 0.0 }
 0xd12   : > { %2666 = vadd.xlane.f32.xlu0 %v2665_v44 }
 0xd9b   : > { %v2667_v48 = vpop.xlane.xlu0 %2666 }
 0xd9c   : > { %v2668_v50 = vmul.f32 0.03125, %v2667_v48 }
 0xd9e   : > { %v2669_v51 = vadd.f32 1e-05, %v2668_v50 }
 0xda0   : > { %6995 = vrsqrt.f32 %v2669_v51 }
 0xdad   : > { %v6996_v52 = vpop.eup %6995 }
 0xdae   : > { %v2671_v54 = vmul.f32 %v6996_v52, %v2663_v42 }
 0xdb0   : > { %v2678_v28 = vmul.f32 %v6030_v53, %v2671_v54 }
 0xdb2   : > { %v2685_v56 = vadd.f32 %v6031_v55, %v2678_v28  ;;  %v7742_v28 = vld [vmem:[%s7484_s23] ss:$0 sm:$0xff]  ;;  %s8306_s23 = smov 40  }
 0xdb4   : > { %v2686_v58 = vpack.c.bf16 %v2685_v56, %v2685_v56 }
 0xdb6   : > { %6509 = vmatmul.mubr.msk.bf16.vlgmr.msra.gmra.mxu1 %vm1402_vm1, %v2686_v58 }
 0xdb7   : > { %6528 = vmatprep.mubr.msk.bf16.mxu1 %vm7158_vm0, %v7157_v0  ;;  %6525 = vmatpush3.bf16.msra.mxu1 %v6929_v9 }
 0xdb8   : > { %6526 = vmatprep.subr.bf16.mxu1 %v7157_v0 }
 0xdbb   : > { %6527 = vmatpush3.bf16.msra.mxu1 %v6930_v23 }
 0xdbc   : > { %6532 = vmatprep.subr.bf16.mxu1 %v7157_v0 }
 0xe76   : > { %v2742_v62 = vpop.f32.mrf.mxu1 }
 0xe77   : > { %v2743_v63 = vadd.f32 %v6032_v61, %v2742_v62 }
 0xe78   : > { %v6510_v1 = vpop.f32.mrf.mxu1 }
 0xe79   : > { %v2748_v2 = vmax.f32 %v2743_v63, 0.0 }
 0xe7a   : > { %v2745_v5 = vpop.f32.mrf.mxu1 }
 0xe7b   : > { %v2749_v6 = vpack.c.bf16 %v2748_v2, %v2748_v2 }
 0xe7c   : > { %v6511_v7 = vpop.f32.mrf.mxu1 }
 0xe7d   : > { %6521 = vmatmul.mubr.msk.bf16.vlgmr.msra.gmra.mxu0 %vm2780_vm6, %v2749_v6 }
 0xe7e   : > { %6540 = vmatprep.mubr.msk.bf16.mxu0 %vm7158_vm0, %v7157_v0 }
 0xf3d   : > { %v2818_v10 = vpop.f32.mrf.mxu0 }
 0xf3e   : > { %v2819_v11 = vadd.f32 %v6036_v8, %v2818_v10 }
 0xf3f   : > { %v6522_v3 = vpop.f32.mrf.mxu0 }
 0xf40   : > { %v2824_v13 = vadd.f32 %v2819_v11, %v2685_v56 }
 0xf41   : > { %v2821_v14 = vpop.f32.mrf.mxu0 }
 0xf42   : > { %v2825_v15 = vsel %vm1402_vm1, %v2824_v13, 0.0 }
 0xf43   : > { %2826 = vadd.xlane.f32.xlu0 %v2825_v15  ;;  %v6523_v16 = vpop.f32.mrf.mxu0 }
 0xfcc   : > { %v2827_v17 = vpop.xlane.xlu0 %2826 }
 0xfcd   : > { %v2828_v18 = vmul.f32 0.03125, %v2827_v17 }
 0xfcf   : > { %v2829_v19 = vsub.f32 %v2824_v13, %v2828_v18 }
 0xfd1   : > { %v2830_v20 = vmul.f32 %v2829_v19, %v2829_v19 }
 0xfd3   : > { %v2831_v21 = vsel %vm1402_vm1, %v2830_v20, 0.0 }
 0xfd4   : > { %2832 = vadd.xlane.f32.xlu1 %v2831_v21 }
0x105d   : > { %v2833_v24 = vpop.xlane.xlu1 %2832 }
0x105e   : > { %v2834_v25 = vmul.f32 0.03125, %v2833_v24 }
0x1060   : > { %v2835_v26 = vadd.f32 1e-05, %v2834_v25 }
0x1062   : > { %6997 = vrsqrt.f32 %v2835_v26 }
0x106f   : > { %v6998_v27 = vpop.eup %6997 }
0x1070   : > { %v2837_v30 = vmul.f32 %v6998_v27, %v2829_v19 }
0x1072   : > { %v2844_v32 = vmul.f32 %v6042_v29, %v2837_v30 }
0x1074   : > { %v7696_v33 = vadd.f32 %v6043_v31, %v2844_v32 }
0x1076   : > { %v2917_v34 = vpack.c.bf16 %v7696_v33, %v7696_v33 }
0x1078   : > { %6529 = vmatmul.mubr.msk.bf16.vlgmr.msra.gmra.mxu1 %vm1402_vm1, %v2917_v34 }
0x1079   : > { %6534 = vmatprep.mubr.msk.bf16.mxu1 %vm7158_vm0, %v7157_v0 }
0x1138   : > { %v2973_v36 = vpop.f32.mrf.mxu1 }
0x1139   : > { %v2974_v37 = vadd.f32 %v6089_v35, %v2973_v36 }
0x113a   : > { %v6530_v38 = vpop.f32.mrf.mxu1 }
0x113b   : > { %v7704_v39 = vpack.c.bf16 %v2974_v37, %v2974_v37 }
0x113c   : > { %v2976_v40 = vpop.f32.mrf.mxu1 }
0x113d   : > { %3093 = vrot.lane.b32.xlu1 %v7704_v39, %s8285_s22  ;;  %2981 = vrot.lane.b32.xlu0 %v7704_v39, %s8297_s13 }
0x113e   : > { %v6531_v41 = vpop.f32.mrf.mxu1 }
0x1141   : > { %3091 = vrot.lane.b32.xlu1 %v7704_v39, %s8298_s17  ;;  %3205 = vrot.lane.b32.xlu0 %v7704_v39, %s8299_s21 }
0x1145   : > { %3203 = vrot.lane.b32.xlu1 %v7704_v39, %s8300_s25  ;;  %3317 = vrot.lane.b32.xlu0 %v7704_v39, %s8301_s15 }
0x1149   : > { %3315 = vrot.lane.b32.xlu1 %v7704_v39, %s8302_s12 }
0x11af   : > { %v2982_v42 = vpop.permute.xlu0 %2981  ;;  %v3094_v44 = vpop.permute.xlu1 %3093 }
0x11b0   : > { %v2987_v43 = vsel %vm1450_vm2, %v2982_v42, 0  ;;  %v3099_v45 = vsel %vm1450_vm2, %v3094_v44, 0 }
0x11b1   : > { %6533 = vmatpush3.bf16.xpose.msra.mxu1 %v2987_v43 }
0x11b2   : > { %6544 = vmatprep.subr.bf16.mxu1 %v7157_v0 }
0x11b3   : > { %v3206_v46 = vpop.permute.xlu0 %3205  ;;  %v3092_v22 = vpop.permute.xlu1 %3091 }
0x11b4   : > { %v3211_v47 = vsel %vm1450_vm2, %v3206_v46, 0 }
0x11b7   : > { %v3318_v48 = vpop.permute.xlu0 %3317  ;;  %v3204_v50 = vpop.permute.xlu1 %3203 }
0x11b8   : > { %6535 = vmatmul.mubr.msk.bf16.vlgmr.msra.gmra.mxu1 %vm1450_vm2, %v7704_v39  ;;  %v3323_v51 = vsel %vm1450_vm2, %v3318_v48, 0 }
0x11b9   : > { %6545 = vmatpush3.bf16.xpose.msra.mxu1 %v3099_v45  ;;  %6546 = vmatprep.mubr.msk.bf16.mxu1 %vm7158_vm0, %v7157_v0 }
0x11ba   : > { %6556 = vmatprep.subr.bf16.mxu1 %v7157_v0 }
0x11bb   : > { %v3316_v52 = vpop.permute.xlu1 %3315 }
0x11c0   : > { %6547 = vmatmul.mubr.msk.bf16.vlgmr.msra.gmra.mxu1 %vm1450_vm2, %v3092_v22 }
0x11c1   : > { %6557 = vmatpush3.bf16.xpose.msra.mxu1 %v3211_v47  ;;  %6558 = vmatprep.mubr.msk.bf16.mxu1 %vm7158_vm0, %v7157_v0 }
0x11c2   : > { %6568 = vmatprep.subr.bf16.mxu1 %v7157_v0 }
0x11c8   : > { %6559 = vmatmul.mubr.msk.bf16.vlgmr.msra.gmra.mxu1 %vm1450_vm2, %v3204_v50 }
0x11c9   : > { %6569 = vmatpush3.bf16.xpose.msra.mxu1 %v3323_v51  ;;  %6570 = vmatprep.mubr.msk.bf16.mxu1 %vm7158_vm0, %v7157_v0 }
0x11ca   : > { %6580 = vmatprep.subr.bf16.mxu1 %v7157_v0 }
0x11d0   : > { %6571 = vmatmul.mubr.msk.bf16.vlgmr.msra.gmra.mxu1 %vm1450_vm2, %v3316_v52 }
0x11d1   : > { %6584 = vmatprep.mubr.msk.bf16.mxu1 %vm7158_vm0, %v7157_v0 }
0x1278   : > { %v3023_v53 = vpop.f32.mrf.mxu1 }
0x1279   : > { %v3029_v54 = vmul.f32 0.35355338, %v3023_v53 }
0x127a   : > { %v6536_v55 = vpop.f32.mrf.mxu1 }
0x127b   : > { %v3030_v56 = vadd.f32 %v7742_v28, %v3029_v54 }
0x127c   : > { %v3026_v58 = vpop.f32.mrf.mxu1 }
0x127d   : > { %v3031_v59 = vsel %vm1450_vm2, %v3030_v56, -inf }
0x127e   : > { %3032 = vmax.xlane.f32.xlu0 %v3031_v59  ;;  %v6537_v60 = vpop.f32.mrf.mxu1 }
0x1280   : > { %v3135_v61 = vpop.f32.mrf.mxu1 }
0x1281   : > { %v3141_v62 = vmul.f32 0.35355338, %v3135_v61 }
0x1282   : > { %v6548_v63 = vpop.f32.mrf.mxu1 }
0x1283   : > { %v3142_v1 = vadd.f32 %v7742_v28, %v3141_v62 }
0x1284   : > { %v3138_v2 = vpop.f32.mrf.mxu1 }
0x1285   : > { %v3143_v5 = vsel %vm1450_vm2, %v3142_v1, -inf }
0x1286   : > { %3144 = vmax.xlane.f32.xlu1 %v3143_v5  ;;  %v6549_v6 = vpop.f32.mrf.mxu1 }
0x1288   : > { %v3247_v7 = vpop.f32.mrf.mxu1 }
0x1289   : > { %v3253_v8 = vmul.f32 0.35355338, %v3247_v7 }
0x128a   : > { %v6560_v10 = vpop.f32.mrf.mxu1 }
0x128b   : > { %v3254_v11 = vadd.f32 %v7742_v28, %v3253_v8 }
0x128c   : > { %v3250_v3 = vpop.f32.mrf.mxu1 }
0x128d   : > { %v3255_v13 = vsel %vm1450_vm2, %v3254_v11, -inf }
0x128e   : > { %3256 = vmax.xlane.f32.xlu0 %v3255_v13  ;;  %v6561_v14 = vpop.f32.mrf.mxu1 }
0x1290   : > { %v3359_v15 = vpop.f32.mrf.mxu1 }
0x1291   : > { %v3365_v16 = vmul.f32 0.35355338, %v3359_v15 }
0x1292   : > { %v6572_v17 = vpop.f32.mrf.mxu1 }
0x1293   : > { %v3366_v18 = vadd.f32 %v7742_v28, %v3365_v16  ;;  %v6931_v17 = vld [vmem:[%s7211_s29 + $0x18] sm:$0xff]  }
0x1294   : > { %v3362_v19 = vpop.f32.mrf.mxu1  ;;  %6581 = vmatpush3.bf16.msra.mxu1 %v6931_v17 }
0x1295   : > { %v3367_v20 = vsel %vm1450_vm2, %v3366_v18, -inf  ;;  %6582 = vmatprep.subr.bf16.mxu1 %v7157_v0 }
0x1296   : > { %3368 = vmax.xlane.f32.xlu0 %v3367_v20  ;;  %v6573_v21 = vpop.f32.mrf.mxu1 }
0x1307   : > { %v3033_v9 = vpop.xlane.xlu0 %3032 }
0x1308   : > { %v3034_v23 = vsub.f32 %v3030_v56, %v3033_v9 }
0x130a   : > { %v3035_v24 = vmul.f32 1.442695, %v3034_v23 }
0x130c   : > { %6999 = vpow2.f32 %v3035_v24 }
0x130f   : > { %v3145_v25 = vpop.xlane.xlu1 %3144 }
0x1310   : > { %v3146_v26 = vsub.f32 %v3142_v1, %v3145_v25 }
0x1312   : > { %v3147_v27 = vmul.f32 1.442695, %v3146_v26 }
0x1314   : > { %7001 = vpow2.f32 %v3147_v27 }
0x1317   : > { %v3257_v31 = vpop.xlane.xlu0 %3256 }
0x1318   : > { %v3258_v41 = vsub.f32 %v3254_v11, %v3257_v31 }
0x1319   : > { %v7000_v29 = vpop.eup %6999 }
0x131a   : > { %v3037_v30 = vsel %vm1450_vm2, %v7000_v29, 0.0  ;;  %v3259_v42 = vmul.f32 1.442695, %v3258_v41 }
0x131b   : > { %3038 = vadd.xlane.f32.xlu1 %v3037_v30 }
0x131f   : > { %v3369_v32 = vpop.xlane.xlu0 %3368 }
0x1320   : > { %v3370_v34 = vsub.f32 %v3366_v18, %v3369_v32  ;;  %v6932_v18 = vld [vmem:[%s7211_s29 + $0x10] sm:$0xff]  }
0x1321   : > { %v7002_v35 = vpop.eup %7001  ;;  %6583 = vmatpush3.bf16.msra.mxu1 %v6932_v18 }
0x1322   : > { %v3371_v36 = vmul.f32 1.442695, %v3370_v34  ;;  %v3149_v37 = vsel %vm1450_vm2, %v7002_v35, 0.0  ;;  %6596 = vmatprep.subr.bf16.mxu1 %v7157_v0 }
0x1323   : > { %3150 = vadd.xlane.f32.xlu0 %v3149_v37 }
0x1324   : > { %7003 = vpow2.f32 %v3371_v36  ;;  %v6101_v36 = vld [vmem:[%s8273_s3 + $0x1] ss:$0 sm:$0xff]  ;;  %s8320_s3 = sld [smem:[#allocation31_spill]] }
0x1325   : > { %7005 = vpow2.f32 %v3259_v42 }
0x132c   : > { %3043 = vrot.lane.b32.xlu1 %v7704_v39, %s8303_s16 }
0x1331   : > { %v7004_v38 = vpop.eup %7003 }
0x1332   : > { %v3373_v40 = vsel %vm1450_vm2, %v7004_v38, 0.0  ;;  %v7006_v43 = vpop.eup %7005 }
0x1333   : > { %3374 = vadd.xlane.f32.xlu0 %v3373_v40  ;;  %v3261_v44 = vsel %vm1450_vm2, %v7006_v43, 0.0 }
0x1349   : > { %3155 = vrot.lane.b32.xlu0 %v7704_v39, %s8304_s20 }
0x1350   : > { %3262 = vadd.xlane.f32.xlu1 %v3261_v44 }
0x1361   : > { %3267 = vrot.lane.b32.xlu1 %v7704_v39, %s8305_s27  ;;  %s8307_s27 = smov 8  }
0x1365   : > { %3379 = vrot.lane.b32.xlu1 %v7704_v39, %s8306_s23  ;;  %s8308_s23 = smov 16  }
0x13a4   : > { %v3039_v45 = vpop.xlane.xlu1 %3038 }
0x13a5   : > { %7007 = vrcp.f32 %v3039_v45 }
0x13a8   : > { %v3044_v46 = vpop.permute.xlu1 %3043 }
0x13a9   : > { %v3049_v22 = vsel %vm1522_vm3, %v3044_v46, 0 }
0x13aa   : > { %6539 = vmatpush3.bf16.msra.mxu0 %v3049_v22 }
0x13ab   : > { %6550 = vmatprep.subr.bf16.mxu0 %v7157_v0 }
0x13ac   : > { %v3151_v47 = vpop.xlane.xlu0 %3150 }
0x13ad   : > { %7009 = vrcp.f32 %v3151_v47 }
0x13b2   : > { %v7008_v48 = vpop.eup %7007 }
0x13b3   : > { %v3041_v50 = vmul.f32 %v7008_v48, %v7000_v29 }
0x13b5   : > { %v3042_v51 = vpack.c.bf16 %v3041_v50, %v3041_v50  ;;  %v6933_v50 = vld [vmem:[%s7241_s30 + $0x18] sm:$0xff]  }
0x13b7   : > { %6541 = vmatmul.mubr.msk.bf16.vlgmr.msra.gmra.mxu0 %vm1450_vm2, %v3042_v51  ;;  %v7806_v51 = vld [vmem:[%s7545_s26] sm:$0xf]  ;;  %s8309_s26 = sld [smem:[#allocation22_spill]] }
0x13b8   : > { %6552 = vmatprep.mubr.msk.bf16.mxu0 %vm7158_vm0, %v7157_v0 }
0x13ba   : > { %v7010_v52 = vpop.eup %7009 }
0x13bb   : > { %v3153_v53 = vmul.f32 %v7010_v52, %v7002_v35  ;;  %v6935_v52 = vld [vmem:[%s7231_s19 + $0x18] sm:$0xff]  }
0x13bc   : > { %v3375_v39 = vpop.xlane.xlu0 %3374 }
0x13bd   : > { %v3154_v56 = vpack.c.bf16 %v3153_v53, %v3153_v53 }
0x13c0   : > { %v3156_v54 = vpop.permute.xlu0 %3155 }
0x13c1   : > { %v3161_v55 = vsel %vm1522_vm3, %v3156_v54, 0 }
0x13c2   : > { %6551 = vmatpush3.bf16.msra.mxu0 %v3161_v55 }
0x13c3   : > { %6562 = vmatprep.subr.bf16.mxu0 %v7157_v0 }
0x13c5   : > { %6553 = vmatmul.mubr.msk.bf16.vlgmr.msra.gmra.mxu0 %vm1450_vm2, %v3154_v56 }
0x13c6   : > { %6564 = vmatprep.mubr.msk.bf16.mxu0 %vm7158_vm0, %v7157_v0 }
0x13d9   : > { %v3263_v58 = vpop.xlane.xlu1 %3262 }
0x13da   : > { %7011 = vrcp.f32 %v3263_v58  ;;  %v6105_v58 = vld [vmem:[%s7221_s8 + $0x1] ss:$0 sm:$0xff] }
0x13db   : > { %7013 = vrcp.f32 %v3375_v39  ;;  %v6936_v39 = vld [vmem:[%s7231_s19 + $0x10] sm:$0xff]  }
0x13dd   : > { %v3268_v59 = vpop.permute.xlu1 %3267 }
0x13de   : > { %v3273_v60 = vsel %vm1522_vm3, %v3268_v59, 0 }
0x13df   : > { %6563 = vmatpush3.bf16.msra.mxu0 %v3273_v60  ;;  %v6106_v60 = vld [vmem:[%s7226_s14 + $0x1] ss:$0 sm:$0xff] }
0x13e0   : > { %6574 = vmatprep.subr.bf16.mxu0 %v7157_v0 }
0x13e1   : > { %v3380_v63 = vpop.permute.xlu1 %3379 }
0x13e2   : > { %v3385_v5 = vsel %vm1522_vm3, %v3380_v63, 0 }
0x13e7   : > { %v7012_v61 = vpop.eup %7011 }
0x13e8   : > { %v3265_v62 = vmul.f32 %v7012_v61, %v7006_v43  ;;  %v7014_v2 = vpop.eup %7013 }
0x13e9   : > { %v3377_v6 = vmul.f32 %v7014_v2, %v7004_v38 }
0x13ea   : > { %v3266_v1 = vpack.c.bf16 %v3265_v62, %v3265_v62 }
0x13eb   : > { %v3378_v7 = vpack.c.bf16 %v3377_v6, %v3377_v6 }
0x13ec   : > { %6565 = vmatmul.mubr.msk.bf16.vlgmr.msra.gmra.mxu0 %vm1450_vm2, %v3266_v1  ;;  %v6111_v1 = vld [vmem:[%s7246_s6 + $0x1] ss:$0 sm:$0xff] }
0x13ed   : > { %6575 = vmatpush3.bf16.msra.mxu0 %v3385_v5  ;;  %6576 = vmatprep.mubr.msk.bf16.mxu0 %vm7158_vm0, %v7157_v0 }
0x13ee   : > { %6588 = vmatprep.subr.bf16.mxu0 %v7157_v0 }
0x13f4   : > { %6577 = vmatmul.mubr.msk.bf16.vlgmr.msra.gmra.mxu0 %vm1450_vm2, %v3378_v7 }
0x13f5   : > { %6592 = vmatprep.mubr.msk.bf16.mxu0 %vm7158_vm0, %v7157_v0  ;;  %6589 = vmatpush3.bf16.msra.mxu0 %v6935_v52 }
0x13f6   : > { %6590 = vmatprep.subr.bf16.mxu0 %v7157_v0 }
0x13f9   : > { %6591 = vmatpush3.bf16.msra.mxu0 %v6936_v39 }
0x13fa   : > { %6604 = vmatprep.subr.bf16.mxu0 %v7157_v0 }
0x1477   : > { %v3085_v8 = vpop.f32.mrf.mxu0 }
0x1479   : > { %v6542_v10 = vpop.f32.mrf.mxu0 }
0x147b   : > { %v3088_v11 = vpop.f32.mrf.mxu0 }
0x147d   : > { %v6543_v3 = vpop.f32.mrf.mxu0 }
0x147e   : > { %v6107_v3 = vld [vmem:[%s7236_s24 + $0x1] ss:$0 sm:$0xff] }
0x1485   : > { %v3197_v13 = vpop.f32.mrf.mxu0 }
0x1486   : > { %3428 = vrot.lane.b32.xlu0 %v3197_v13, %s8307_s27 }
0x1487   : > { %v6554_v14 = vpop.f32.mrf.mxu0 }
0x1489   : > { %v3200_v15 = vpop.f32.mrf.mxu0 }
0x148b   : > { %v6555_v16 = vpop.f32.mrf.mxu0 }
0x14ac   : > { %v3309_v19 = vpop.f32.mrf.mxu0 }
0x14ad   : > { %3432 = vrot.lane.b32.xlu1 %v3309_v19, %s8308_s23 }
0x14ae   : > { %v6566_v20 = vpop.f32.mrf.mxu0 }
0x14b0   : > { %v3312_v21 = vpop.f32.mrf.mxu0 }
0x14b2   : > { %v6567_v9 = vpop.f32.mrf.mxu0 }
0x14b4   : > { %v3421_v23 = vpop.f32.mrf.mxu0 }
0x14b5   : > { %3436 = vrot.lane.b32.xlu0 %v3421_v23, %s8288_s18 }
0x14b6   : > { %v6578_v24 = vpop.f32.mrf.mxu0 }
0x14b8   : > { %v3424_v25 = vpop.f32.mrf.mxu0 }
0x14ba   : > { %v6579_v26 = vpop.f32.mrf.mxu0 }
0x14f8   : > { %v3429_v27 = vpop.permute.xlu0 %3428 }
0x14f9   : > { %v3439_v30 = vsel %vm1450_vm2, %v3085_v8, %v3429_v27 }
0x151f   : > { %v3433_v29 = vpop.permute.xlu1 %3432 }
0x1520   : > { %v3440_v31 = vsel %vm1915_vm4, %v3439_v30, %v3433_v29 }
0x1527   : > { %v3437_v32 = vpop.permute.xlu0 %3436 }
0x1528   : > { %v3441_v34 = vsel %vm1917_vm5, %v3440_v31, %v3437_v32 }
0x1529   : > { %v3442_v35 = vpack.c.bf16 %v3441_v34, %v3441_v34 }
0x152b   : > { %6585 = vmatmul.mubr.msk.bf16.vlgmr.msra.gmra.mxu1 %vm1402_vm1, %v3442_v35 }
0x152c   : > { %6600 = vmatprep.mubr.msk.bf16.mxu1 %vm7158_vm0, %v7157_v0  ;;  %6597 = vmatpush3.bf16.msra.mxu1 %v6933_v50 }
0x152d   : > { %6598 = vmatprep.subr.bf16.mxu1 %v7157_v0 }
0x15eb   : > { %v3498_v37 = vpop.f32.mrf.mxu1 }
0x15ec   : > { %v3499_v38 = vadd.f32 %v6101_v36, %v3498_v37 }
0x15ed   : > { %v6586_v40 = vpop.f32.mrf.mxu1 }
0x15ee   : > { %v3504_v41 = vadd.f32 %v3499_v38, %v7696_v33  ;;  %v6934_v33 = vld [vmem:[%s7241_s30 + $0x10] sm:$0xff]  }
0x15ef   : > { %v3501_v42 = vpop.f32.mrf.mxu1  ;;  %6599 = vmatpush3.bf16.msra.mxu1 %v6934_v33 }
0x15f0   : > { %v3505_v43 = vsel %vm1402_vm1, %v3504_v41, 0.0  ;;  %6610 = vmatprep.subr.bf16.mxu1 %v7157_v0 }
0x15f1   : > { %3506 = vadd.xlane.f32.xlu1 %v3505_v43  ;;  %v6587_v44 = vpop.f32.mrf.mxu1 }
0x15f2   : > { %6601 = vmatmul.mubr.msk.bf16.vlgmr.msra.gmra.mxu1 %vm1402_vm1, %v7806_v51 }
0x15f3   : > { %6612 = vmatprep.mubr.msk.bf16.mxu1 %vm7158_vm0, %v7157_v0 }
0x167a   : > { %v3507_v45 = vpop.xlane.xlu1 %3506 }
0x167b   : > { %v3508_v46 = vmul.f32 0.03125, %v3507_v45 }
0x167d   : > { %v3509_v22 = vsub.f32 %v3504_v41, %v3508_v46 }
0x167f   : > { %v3510_v47 = vmul.f32 %v3509_v22, %v3509_v22 }
0x1681   : > { %v3511_v48 = vsel %vm1402_vm1, %v3510_v47, 0.0 }
0x1682   : > { %3512 = vadd.xlane.f32.xlu0 %v3511_v48 }
0x16b2   : > { %v3646_v2 = vpop.f32.mrf.mxu1 }
0x16b3   : > { %v3647_v5 = vadd.f32 %v6111_v1, %v3646_v2 }
0x16b4   : > { %v6602_v6 = vpop.f32.mrf.mxu1 }
0x16b5   : > { %v7826_v7 = vpack.c.bf16 %v3647_v5, %v3647_v5 }
0x16b6   : > { %v3649_v8 = vpop.f32.mrf.mxu1 }
0x16b7   : > { %3766 = vrot.lane.b32.xlu0 %v7826_v7, %s8298_s17  ;;  %v3658_v10 = vsel %vm1450_vm2, %v7826_v7, 0 }
0x16b8   : > { %v6603_v11 = vpop.f32.mrf.mxu1 }
0x170b   : > { %v3513_v53 = vpop.xlane.xlu0 %3512 }
0x170c   : > { %v3514_v54 = vmul.f32 0.03125, %v3513_v53 }
0x170e   : > { %v3515_v55 = vadd.f32 1e-05, %v3514_v54 }
0x1710   : > { %7015 = vrsqrt.f32 %v3515_v55 }
0x171d   : > { %v7016_v56 = vpop.eup %7015 }
0x171e   : > { %v3517_v59 = vmul.f32 %v7016_v56, %v3509_v22 }
0x1720   : > { %v3524_v61 = vmul.f32 %v6105_v58, %v3517_v59 }
0x1722   : > { %v7818_v62 = vadd.f32 %v6106_v60, %v3524_v61 }
0x1724   : > { %v3532_v63 = vpack.c.bf16 %v7818_v62, %v7818_v62 }
0x1726   : > { %6593 = vmatmul.mubr.msk.bf16.vlgmr.msra.gmra.mxu0 %vm1402_vm1, %v3532_v63 }
0x1727   : > { %6606 = vmatprep.mubr.msk.bf16.mxu0 %vm7158_vm0, %v7157_v0  ;;  %6605 = vmatpush3.bf16.xpose.msra.mxu0 %v3658_v10 }
0x1728   : > { %6616 = vmatprep.subr.bf16.mxu0 %v7157_v0 }
0x1729   : > { %v3767_v15 = vpop.permute.xlu0 %3766 }
0x172a   : > { %v3772_v19 = vsel %vm1450_vm2, %v3767_v15, 0 }
0x17e6   : > { %v3588_v13 = vpop.f32.mrf.mxu0 }
0x17e7   : > { %v3589_v14 = vadd.f32 %v6107_v3, %v3588_v13 }
0x17e8   : > { %v6594_v16 = vpop.f32.mrf.mxu0 }
0x17e9   : > { %v3652_v17 = vpack.c.bf16 %v3589_v14, %v3589_v14 }
0x17ea   : > { %v3591_v18 = vpop.f32.mrf.mxu0 }
0x17eb   : > { %3764 = vrot.lane.b32.xlu1 %v3652_v17, %s8298_s17  ;;  %3876 = vrot.lane.b32.xlu0 %v3652_v17, %s8300_s25 }
0x17ec   : > { %6607 = vmatmul.mubr.msk.bf16.vlgmr.msra.gmra.mxu0 %vm1450_vm2, %v3652_v17  ;;  %v6595_v20 = vpop.f32.mrf.mxu0 }
0x17ed   : > { %6617 = vmatpush3.bf16.xpose.msra.mxu0 %v3772_v19  ;;  %6618 = vmatprep.mubr.msk.bf16.mxu0 %vm7158_vm0, %v7157_v0 }
0x17ee   : > { %6628 = vmatprep.subr.bf16.mxu0 %v7157_v0 }
0x17ef   : > { %3878 = vrot.lane.b32.xlu1 %v7826_v7, %s8300_s25  ;;  %3988 = vrot.lane.b32.xlu0 %v3652_v17, %s8302_s12 }
0x17f3   : > { %3990 = vrot.lane.b32.xlu1 %v7826_v7, %s8302_s12 }
0x185d   : > { %v3765_v21 = vpop.permute.xlu1 %3764  ;;  %v3877_v25 = vpop.permute.xlu0 %3876 }
0x185e   : > { %6619 = vmatmul.mubr.msk.bf16.vlgmr.msra.gmra.mxu0 %vm1450_vm2, %v3765_v21 }
0x185f   : > { %6630 = vmatprep.mubr.msk.bf16.mxu0 %vm7158_vm0, %v7157_v0 }
0x1861   : > { %v3879_v9 = vpop.permute.xlu1 %3878  ;;  %v3989_v27 = vpop.permute.xlu0 %3988 }
0x1862   : > { %v3884_v23 = vsel %vm1450_vm2, %v3879_v9, 0 }
0x1863   : > { %6629 = vmatpush3.bf16.xpose.msra.mxu0 %v3884_v23 }
0x1864   : > { %6640 = vmatprep.subr.bf16.mxu0 %v7157_v0 }
0x1865   : > { %v3991_v24 = vpop.permute.xlu1 %3990 }
0x1866   : > { %v3996_v26 = vsel %vm1450_vm2, %v3991_v24, 0 }
0x186a   : > { %6631 = vmatmul.mubr.msk.bf16.vlgmr.msra.gmra.mxu0 %vm1450_vm2, %v3877_v25 }
0x186b   : > { %6641 = vmatpush3.bf16.xpose.msra.mxu0 %v3996_v26  ;;  %6642 = vmatprep.mubr.msk.bf16.mxu0 %vm7158_vm0, %v7157_v0 }
0x186c   : > { %6652 = vmatprep.subr.bf16.mxu0 %v7157_v0 }
0x1872   : > { %6643 = vmatmul.mubr.msk.bf16.vlgmr.msra.gmra.mxu0 %vm1450_vm2, %v3989_v27 }
0x1873   : > { %6656 = vmatprep.mubr.msk.bf16.mxu0 %vm7158_vm0, %v7157_v0 }
0x18ac   : > { %v3694_v29 = vpop.f32.mrf.mxu0 }
0x18ad   : > { %v3700_v30 = vmul.f32 0.35355338, %v3694_v29 }
0x18ae   : > { %v6608_v31 = vpop.f32.mrf.mxu0 }
0x18af   : > { %v3701_v32 = vadd.f32 %v7601_v49, %v3700_v30 }
0x18b0   : > { %v3697_v34 = vpop.f32.mrf.mxu0 }
0x18b1   : > { %v3702_v35 = vsel %vm1450_vm2, %v3701_v32, -inf }
0x18b2   : > { %3703 = vmax.xlane.f32.xlu1 %v3702_v35  ;;  %v6609_v36 = vpop.f32.mrf.mxu0 }
0x191e   : > { %v3808_v37 = vpop.f32.mrf.mxu0 }
0x191f   : > { %v3814_v38 = vmul.f32 0.35355338, %v3808_v37 }
0x1920   : > { %v6620_v40 = vpop.f32.mrf.mxu0 }
0x1921   : > { %v3815_v41 = vadd.f32 %v7605_v57, %v3814_v38 }
0x1922   : > { %v3811_v42 = vpop.f32.mrf.mxu0 }
0x1923   : > { %v3816_v43 = vsel %vm1450_vm2, %v3815_v41, -inf }
0x1924   : > { %3817 = vmax.xlane.f32.xlu0 %v3816_v43  ;;  %v6621_v44 = vpop.f32.mrf.mxu0 }
0x192a   : > { %v3920_v45 = vpop.f32.mrf.mxu0 }
0x192b   : > { %v3926_v46 = vmul.f32 0.35355338, %v3920_v45 }
0x192c   : > { %v6632_v22 = vpop.f32.mrf.mxu0 }
0x192d   : > { %v3927_v47 = vadd.f32 %v7609_v4, %v3926_v46 }
0x192e   : > { %v3923_v48 = vpop.f32.mrf.mxu0 }
0x192f   : > { %v3928_v50 = vsel %vm1450_vm2, %v3927_v47, -inf }
0x1930   : > { %3929 = vmax.xlane.f32.xlu0 %v3928_v50  ;;  %v6633_v33 = vpop.f32.mrf.mxu0 }
0x1932   : > { %v4032_v52 = vpop.f32.mrf.mxu0 }
0x1933   : > { %v4038_v39 = vmul.f32 0.35355338, %v4032_v52 }
0x1934   : > { %v6644_v53 = vpop.f32.mrf.mxu0 }
0x1935   : > { %v4039_v54 = vadd.f32 %v7613_v12, %v4038_v39 }
0x1936   : > { %v4035_v55 = vpop.f32.mrf.mxu0 }
0x1937   : > { %v4040_v56 = vsel %vm1450_vm2, %v4039_v54, -inf  ;;  %v6938_v55 = vld [vmem:[%s8286_s1 + $0x10] sm:$0xff]  }
0x1938   : > { %4041 = vmax.xlane.f32.xlu1 %v4040_v56  ;;  %v6645_v58 = vpop.f32.mrf.mxu0 }
0x193b   : > { %v3704_v59 = vpop.xlane.xlu1 %3703 }
0x193c   : > { %v3705_v60 = vsub.f32 %v3701_v32, %v3704_v59 }
0x193e   : > { %v3706_v61 = vmul.f32 1.442695, %v3705_v60 }
0x1940   : > { %7017 = vpow2.f32 %v3706_v61 }
0x194d   : > { %v7018_v63 = vpop.eup %7017 }
0x194e   : > { %v3708_v1 = vsel %vm1450_vm2, %v7018_v63, 0.0 }
0x194f   : > { %3709 = vadd.xlane.f32.xlu0 %v3708_v1 }
0x19ad   : > { %v3818_v2 = vpop.xlane.xlu0 %3817 }
0x19ae   : > { %v3819_v5 = vsub.f32 %v3815_v41, %v3818_v2 }
0x19b0   : > { %v3820_v6 = vmul.f32 1.442695, %v3819_v5 }
0x19b2   : > { %7019 = vpow2.f32 %v3820_v6 }
0x19b9   : > { %v3930_v8 = vpop.xlane.xlu0 %3929 }
0x19ba   : > { %v3931_v10 = vsub.f32 %v3927_v47, %v3930_v8 }
0x19bc   : > { %v3932_v11 = vmul.f32 1.442695, %v3931_v10 }
0x19be   : > { %7021 = vpow2.f32 %v3932_v11 }
0x19bf   : > { %v7020_v3 = vpop.eup %7019 }
0x19c0   : > { %v3822_v13 = vsel %vm1450_vm2, %v7020_v3, 0.0 }
0x19c1   : > { %3823 = vadd.xlane.f32.xlu1 %v3822_v13  ;;  %v4042_v16 = vpop.xlane.xlu1 %4041 }
0x19c2   : > { %v4043_v17 = vsub.f32 %v4039_v54, %v4042_v16  ;;  %v6937_v54 = vld [vmem:[%s8286_s1 + $0x18] sm:$0xff]   ;;  %s8313_s1 = smov 48  }
0x19c3   : > { %6653 = vmatpush3.bf16.msra.mxu0 %v6937_v54 }
0x19c4   : > { %v4044_v18 = vmul.f32 1.442695, %v4043_v17  ;;  %6654 = vmatprep.subr.bf16.mxu0 %v7157_v0 }
0x19c6   : > { %7023 = vpow2.f32 %v4044_v18 }
0x19c7   : > { %6655 = vmatpush3.bf16.msra.mxu0 %v6938_v55 }
0x19c8   : > { %6668 = vmatprep.subr.bf16.mxu0 %v7157_v0 }
0x19cb   : > { %v7022_v14 = vpop.eup %7021 }
0x19cc   : > { %v3934_v15 = vsel %vm1450_vm2, %v7022_v14, 0.0 }
0x19cd   : > { %3935 = vadd.xlane.f32.xlu0 %v3934_v15 }
0x19d2   : > { %3828 = vrot.lane.b32.xlu1 %v7826_v7, %s8285_s22 }
0x19d3   : > { %v7024_v19 = vpop.eup %7023 }
0x19d4   : > { %v4046_v20 = vsel %vm1450_vm2, %v7024_v19, 0.0 }
0x19d8   : > { %v3710_v21 = vpop.xlane.xlu0 %3709 }
0x19d9   : > { %7025 = vrcp.f32 %v3710_v21 }
0x19e3   : > { %3715 = vrot.lane.b32.xlu0 %v7826_v7, %s8297_s13 }
0x19e6   : > { %v7026_v23 = vpop.eup %7025 }
0x19e7   : > { %4052 = vrot.lane.b32.xlu0 %v7826_v7, %s8301_s15  ;;  %v3712_v25 = vmul.f32 %v7026_v23, %v7018_v63 }
0x19e9   : > { %v3713_v30 = vpack.c.bf16 %v3712_v25, %v3712_v25 }
0x19f6   : > { %4047 = vadd.xlane.f32.xlu1 %v4046_v20 }
0x1a07   : > { %3940 = vrot.lane.b32.xlu1 %v7826_v7, %s8299_s21 }
0x1a4a   : > { %v3824_v9 = vpop.xlane.xlu1 %3823 }
0x1a4b   : > { %7027 = vrcp.f32 %v3824_v9 }
0x1a4e   : > { %v3829_v29 = vpop.permute.xlu1 %3828 }
0x1a4f   : > { %v3834_v32 = vsel %vm1522_vm3, %v3829_v29, 0  ;;  %v6940_v29 = vld [vmem:[%s8289_s11 + $0x10] sm:$0xff]  }
0x1a56   : > { %v3936_v24 = vpop.xlane.xlu0 %3935 }
0x1a57   : > { %7029 = vrcp.f32 %v3936_v24 }
0x1a58   : > { %v7028_v31 = vpop.eup %7027 }
0x1a59   : > { %v3826_v7 = vmul.f32 %v7028_v31, %v7020_v3 }
0x1a5a   : > { %v3716_v26 = vpop.permute.xlu0 %3715 }
0x1a5b   : > { %v3721_v27 = vsel %vm1522_vm3, %v3716_v26, 0  ;;  %v3827_v34 = vpack.c.bf16 %v3826_v7, %v3826_v7 }
0x1a5c   : > { %6611 = vmatpush3.bf16.msra.mxu1 %v3721_v27  ;;  %v6939_v27 = vld [vmem:[%s8289_s11 + $0x18] sm:$0xff]  }
0x1a5d   : > { %6622 = vmatprep.subr.bf16.mxu1 %v7157_v0 }
0x1a5e   : > { %v4053_v41 = vpop.permute.xlu0 %4052 }
0x1a5f   : > { %6613 = vmatmul.mubr.msk.bf16.vlgmr.msra.gmra.mxu1 %vm1450_vm2, %v3713_v30  ;;  %v4058_v43 = vsel %vm1522_vm3, %v4053_v41, 0  ;;  %v6942_v30 = vld [vmem:[%s8290_s28 + $0x30] sm:$0xff]  }
0x1a60   : > { %6623 = vmatpush3.bf16.msra.mxu1 %v3834_v32  ;;  %6624 = vmatprep.mubr.msk.bf16.mxu1 %vm7158_vm0, %v7157_v0 }
0x1a61   : > { %6634 = vmatprep.subr.bf16.mxu1 %v7157_v0 }
0x1a64   : > { %v7030_v35 = vpop.eup %7029 }
0x1a65   : > { %v3938_v37 = vmul.f32 %v7030_v35, %v7022_v14  ;;  %v6123_v14 = vld [vmem:[%s8287_s0 + $0x1] ss:$0 sm:$0xff]  ;;  %s8310_s0 = sld [smem:[#allocation23_spill]] }
0x1a66   : > { %v6127_v35 = vld [vmem:[%s8291_s10 + $0x1] ss:$0 sm:$0xff] }
0x1a67   : > { %6625 = vmatmul.mubr.msk.bf16.vlgmr.msra.gmra.mxu1 %vm1450_vm2, %v3827_v34  ;;  %v3939_v42 = vpack.c.bf16 %v3938_v37, %v3938_v37  ;;  %v6128_v37 = vld [vmem:[%s8292_s2 + $0x1] ss:$0 sm:$0xff]  ;;  %s8319_s2 = sld [smem:[#allocation27_spill]] }
0x1a68   : > { %6636 = vmatprep.mubr.msk.bf16.mxu1 %vm7158_vm0, %v7157_v0 }
0x1a7f   : > { %v4048_v36 = vpop.xlane.xlu1 %4047 }
0x1a80   : > { %7031 = vrcp.f32 %v4048_v36 }
0x1a83   : > { %v3941_v38 = vpop.permute.xlu1 %3940 }
0x1a84   : > { %v3946_v40 = vsel %vm1522_vm3, %v3941_v38, 0 }
0x1a85   : > { %6635 = vmatpush3.bf16.msra.mxu1 %v3946_v40 }
0x1a86   : > { %6646 = vmatprep.subr.bf16.mxu1 %v7157_v0 }
0x1a88   : > { %6637 = vmatmul.mubr.msk.bf16.vlgmr.msra.gmra.mxu1 %vm1450_vm2, %v3939_v42  ;;  %v6943_v42 = vld [vmem:[%s8290_s28 + $0x28] sm:$0xff]  }
0x1a89   : > { %6647 = vmatpush3.bf16.msra.mxu1 %v4058_v43  ;;  %6648 = vmatprep.mubr.msk.bf16.mxu1 %vm7158_vm0, %v7157_v0  ;;  %v6944_v43 = vld [vmem:[%s8290_s28 + $0x20] sm:$0xff]  }
0x1a8a   : > { %6660 = vmatprep.subr.bf16.mxu1 %v7157_v0 }
0x1a8d   : > { %v7032_v44 = vpop.eup %7031 }
0x1a8e   : > { %v4050_v45 = vmul.f32 %v7032_v44, %v7024_v19  ;;  %v6129_v44 = vld [vmem:[%s8293_s7 + $0x1] ss:$0 sm:$0xff] }
0x1a90   : > { %v4051_v46 = vpack.c.bf16 %v4050_v45, %v4050_v45 }
0x1a92   : > { %6649 = vmatmul.mubr.msk.bf16.vlgmr.msra.gmra.mxu1 %vm1450_vm2, %v4051_v46 }
0x1a93   : > { %6664 = vmatprep.mubr.msk.bf16.mxu1 %vm7158_vm0, %v7157_v0  ;;  %6661 = vmatpush3.bf16.msra.mxu1 %v6939_v27 }
0x1a94   : > { %6662 = vmatprep.subr.bf16.mxu1 %v7157_v0 }
0x1a97   : > { %6663 = vmatpush3.bf16.msra.mxu1 %v6940_v29 }
0x1a98   : > { %6680 = vmatprep.subr.bf16.mxu1 %v7157_v0 }
0x1b1f   : > { %v3757_v22 = vpop.f32.mrf.mxu1 }
0x1b21   : > { %v6614_v47 = vpop.f32.mrf.mxu1 }
0x1b23   : > { %v3760_v48 = vpop.f32.mrf.mxu1 }
0x1b25   : > { %v6615_v50 = vpop.f32.mrf.mxu1 }
0x1b27   : > { %v3870_v33 = vpop.f32.mrf.mxu1 }
0x1b28   : > { %4101 = vrot.lane.b32.xlu1 %v3870_v33, %s8307_s27 }
0x1b29   : > { %v6626_v52 = vpop.f32.mrf.mxu1 }
0x1b2a   : > { %v6133_v52 = vld [vmem:[%s8294_s4 + $0x1] ss:$0 sm:$0xff] }
0x1b2b   : > { %v3873_v39 = vpop.f32.mrf.mxu1 }
0x1b2d   : > { %v6627_v53 = vpop.f32.mrf.mxu1 }
0x1b48   : > { %v3982_v56 = vpop.f32.mrf.mxu1 }
0x1b49   : > { %4105 = vrot.lane.b32.xlu0 %v3982_v56, %s8308_s23 }
0x1b4a   : > { %v6638_v58 = vpop.f32.mrf.mxu1 }
0x1b4c   : > { %v3985_v59 = vpop.f32.mrf.mxu1 }
0x1b4e   : > { %v6639_v60 = vpop.f32.mrf.mxu1 }
0x1b52   : > { %v4094_v61 = vpop.f32.mrf.mxu1 }
0x1b53   : > { %4109 = vrot.lane.b32.xlu1 %v4094_v61, %s8288_s18 }
0x1b54   : > { %v6650_v63 = vpop.f32.mrf.mxu1 }
0x1b56   : > { %v4097_v1 = vpop.f32.mrf.mxu1 }
0x1b58   : > { %v6651_v2 = vpop.f32.mrf.mxu1 }
0x1b9a   : > { %v4102_v5 = vpop.permute.xlu1 %4101 }
0x1b9b   : > { %v4112_v8 = vsel %vm1450_vm2, %v3757_v22, %v4102_v5  ;;  %v6945_v5 = vld [vmem:[%s8309_s26 + $0x8] sm:$0xff]  }
0x1bbb   : > { %v4106_v6 = vpop.permute.xlu0 %4105 }
0x1bbc   : > { %v4113_v10 = vsel %vm1915_vm4, %v4112_v8, %v4106_v6  ;;  %v6946_v6 = vld [vmem:[%s8309_s26] sm:$0xff]  }
0x1bc5   : > { %v4110_v11 = vpop.permute.xlu1 %4109 }
0x1bc6   : > { %v4114_v3 = vsel %vm1917_vm5, %v4113_v10, %v4110_v11 }
0x1bc7   : > { %v4115_v13 = vpack.c.bf16 %v4114_v3, %v4114_v3 }
0x1bc9   : > { %6657 = vmatmul.mubr.msk.bf16.vlgmr.msra.gmra.mxu0 %vm1402_vm1, %v4115_v13  ;;  %v6139_v13 = vld [vmem:[%s8295_s5 + $0x1] ss:$0 sm:$0xff] }
0x1bca   : > { %6676 = vmatprep.mubr.msk.bf16.mxu0 %vm7158_vm0, %v7157_v0 }
0x1c89   : > { %v4171_v15 = vpop.f32.mrf.mxu0 }
0x1c8a   : > { %v4172_v16 = vadd.f32 %v6123_v14, %v4171_v15  ;;  %v6140_v15 = vld [vmem:[%s8296_s9 + $0x1] ss:$0 sm:$0xff] }
0x1c8b   : > { %v6658_v17 = vpop.f32.mrf.mxu0 }
0x1c8c   : > { %v4177_v18 = vadd.f32 %v4172_v16, %v7818_v62  ;;  %v6941_v62 = vld [vmem:[%s8290_s28 + $0x38] sm:$0xff]  }
0x1c8d   : > { %v4174_v19 = vpop.f32.mrf.mxu0  ;;  %6669 = vmatpush3.bf16.msra.mxu0 %v6941_v62 }
0x1c8e   : > { %v4178_v20 = vsel %vm1402_vm1, %v4177_v18, 0.0  ;;  %6670 = vmatprep.subr.bf16.mxu0 %v7157_v0  ;;  %v6141_v19 = vld [vmem:[%s8310_s0] ss:$0 sm:$0xff]  ;;  %s8311_s0 = sld [smem:[#allocation43_spill]] }
0x1c8f   : > { %4179 = vadd.xlane.f32.xlu0 %v4178_v20  ;;  %v6659_v21 = vpop.f32.mrf.mxu0 }
0x1c91   : > { %6671 = vmatpush3.bf16.msra.mxu0 %v6942_v30 }
0x1c92   : > { %6672 = vmatprep.subr.bf16.mxu0 %v7157_v0 }
0x1c95   : > { %6673 = vmatpush3.bf16.msra.mxu0 %v6943_v42 }
0x1c96   : > { %6674 = vmatprep.subr.bf16.mxu0 %v7157_v0 }
0x1c99   : > { %6675 = vmatpush3.bf16.msra.mxu0 %v6944_v43 }
0x1c9a   : > { %6694 = vmatprep.subr.bf16.mxu0 %v7157_v0 }
0x1d18   : > { %v4180_v9 = vpop.xlane.xlu0 %4179 }
0x1d19   : > { %v4181_v23 = vmul.f32 0.03125, %v4180_v9 }
0x1d1b   : > { %v4182_v24 = vsub.f32 %v4177_v18, %v4181_v23 }
0x1d1d   : > { %v4183_v25 = vmul.f32 %v4182_v24, %v4182_v24 }
0x1d1f   : > { %v4184_v26 = vsel %vm1402_vm1, %v4183_v25, 0.0 }
0x1d20   : > { %4185 = vadd.xlane.f32.xlu1 %v4184_v26 }
0x1da9   : > { %v4186_v31 = vpop.xlane.xlu1 %4185 }
0x1daa   : > { %v4187_v32 = vmul.f32 0.03125, %v4186_v31 }
0x1dac   : > { %v4188_v7 = vadd.f32 1e-05, %v4187_v32 }
0x1dae   : > { %7033 = vrsqrt.f32 %v4188_v7 }
0x1dbb   : > { %v7034_v34 = vpop.eup %7033 }
0x1dbc   : > { %v4190_v36 = vmul.f32 %v7034_v34, %v4182_v24 }
0x1dbe   : > { %v4197_v38 = vmul.f32 %v6127_v35, %v4190_v36 }
0x1dc0   : > { %v4204_v40 = vadd.f32 %v6128_v37, %v4197_v38 }
0x1dc2   : > { %v4205_v41 = vpack.c.bf16 %v4204_v40, %v4204_v40 }
0x1dc4   : > { %6665 = vmatmul.mubr.msk.bf16.vlgmr.msra.gmra.mxu1 %vm1402_vm1, %v4205_v41 }
0x1dc5   : > { %6684 = vmatprep.mubr.msk.bf16.mxu1 %vm7158_vm0, %v7157_v0  ;;  %6681 = vmatpush3.bf16.msra.mxu1 %v6945_v5 }
0x1dc6   : > { %6682 = vmatprep.subr.bf16.mxu1 %v7157_v0 }
0x1dc9   : > { %6683 = vmatpush3.bf16.msra.mxu1 %v6946_v6 }
0x1dca   : > { %6688 = vmatprep.subr.bf16.mxu1 %v7157_v0 }
0x1e84   : > { %v4261_v45 = vpop.f32.mrf.mxu1 }
0x1e85   : > { %v4262_v46 = vadd.f32 %v6129_v44, %v4261_v45 }
0x1e86   : > { %v6666_v22 = vpop.f32.mrf.mxu1 }
0x1e87   : > { %v4267_v47 = vmax.f32 %v4262_v46, 0.0 }
0x1e88   : > { %v4264_v48 = vpop.f32.mrf.mxu1 }
0x1e89   : > { %v4268_v50 = vpack.c.bf16 %v4267_v47, %v4267_v47 }
0x1e8a   : > { %v6667_v33 = vpop.f32.mrf.mxu1 }
0x1e8b   : > { %6677 = vmatmul.mubr.msk.bf16.vlgmr.msra.gmra.mxu0 %vm2780_vm6, %v4268_v50 }
0x1e8c   : > { %6696 = vmatprep.mubr.msk.bf16.mxu0 %vm7158_vm0, %v7157_v0 }
0x1f4b   : > { %v4336_v39 = vpop.f32.mrf.mxu0 }
0x1f4c   : > { %v4337_v53 = vadd.f32 %v6133_v52, %v4336_v39 }
0x1f4d   : > { %v6678_v54 = vpop.f32.mrf.mxu0 }
0x1f4e   : > { %v4342_v55 = vadd.f32 %v4337_v53, %v4204_v40  ;;  %v7075_v54 = vld [vmem:[%s8311_s0] ss:$0 sm:$0xff]  ;;  %s8312_s0 = smov 40  }
0x1f4f   : > { %v4339_v56 = vpop.f32.mrf.mxu0 }
0x1f50   : > { %v4343_v58 = vsel %vm1402_vm1, %v4342_v55, 0.0 }
0x1f51   : > { %4344 = vadd.xlane.f32.xlu0 %v4343_v58  ;;  %v6679_v59 = vpop.f32.mrf.mxu0 }
0x1fda   : > { %v4345_v60 = vpop.xlane.xlu0 %4344 }
0x1fdb   : > { %v4346_v61 = vmul.f32 0.03125, %v4345_v60 }
0x1fdd   : > { %v4347_v63 = vsub.f32 %v4342_v55, %v4346_v61 }
0x1fdf   : > { %v4348_v1 = vmul.f32 %v4347_v63, %v4347_v63 }
0x1fe1   : > { %v4349_v2 = vsel %vm1402_vm1, %v4348_v1, 0.0 }
0x1fe2   : > { %4350 = vadd.xlane.f32.xlu0 %v4349_v2 }
0x206b   : > { %v4351_v8 = vpop.xlane.xlu0 %4350 }
0x206c   : > { %v4352_v10 = vmul.f32 0.03125, %v4351_v8 }
0x206e   : > { %v4353_v11 = vadd.f32 1e-05, %v4352_v10 }
0x2070   : > { %7035 = vrsqrt.f32 %v4353_v11 }
0x207d   : > { %v7036_v3 = vpop.eup %7035 }
0x207e   : > { %v4355_v14 = vmul.f32 %v7036_v3, %v4347_v63 }
0x2080   : > { %v4362_v16 = vmul.f32 %v6139_v13, %v4355_v14 }
0x2082   : > { %v7946_v17 = vadd.f32 %v6140_v15, %v4362_v16 }
0x2084   : > { %v4413_v18 = vpack.c.bf16 %v7946_v17, %v7946_v17 }
0x2086   : > { %6685 = vmatmul.mubr.msk.bf16.vlgmr.msra.gmra.mxu1 %vm1402_vm1, %v4413_v18 }
0x2087   : > { %6690 = vmatprep.mubr.msk.bf16.mxu1 %vm7158_vm0, %v7157_v0 }
0x2146   : > { %v4469_v20 = vpop.f32.mrf.mxu1 }
0x2147   : > { %v4470_v21 = vadd.f32 %v6141_v19, %v4469_v20 }
0x2148   : > { %v6686_v9 = vpop.f32.mrf.mxu1 }
0x2149   : > { %v7954_v23 = vpack.c.bf16 %v4470_v21, %v4470_v21 }
0x214a   : > { %v4472_v24 = vpop.f32.mrf.mxu1 }
0x214b   : > { %4589 = vrot.lane.b32.xlu0 %v7954_v23, %s8285_s22  ;;  %4477 = vrot.lane.b32.xlu1 %v7954_v23, %s8297_s13 }
0x214c   : > { %v6687_v25 = vpop.f32.mrf.mxu1 }
0x214f   : > { %4699 = vrot.lane.b32.xlu0 %v7954_v23, %s8300_s25  ;;  %4587 = vrot.lane.b32.xlu1 %v7954_v23, %s8298_s17 }
0x2153   : > { %4811 = vrot.lane.b32.xlu0 %v7954_v23, %s8302_s12  ;;  %4701 = vrot.lane.b32.xlu1 %v7954_v23, %s8299_s21 }
0x2157   : > { %4813 = vrot.lane.b32.xlu1 %v7954_v23, %s8301_s15 }
0x21bd   : > { %v4478_v26 = vpop.permute.xlu1 %4477  ;;  %v4590_v29 = vpop.permute.xlu0 %4589 }
0x21be   : > { %v4483_v27 = vsel %vm1450_vm2, %v4478_v26, 0  ;;  %v4595_v30 = vsel %vm1450_vm2, %v4590_v29, 0 }
0x21bf   : > { %6689 = vmatpush3.bf16.xpose.msra.mxu1 %v4483_v27 }
0x21c0   : > { %6700 = vmatprep.subr.bf16.mxu1 %v7157_v0 }
0x21c1   : > { %v4588_v62 = vpop.permute.xlu1 %4587  ;;  %v4700_v34 = vpop.permute.xlu0 %4699 }
0x21c5   : > { %v4702_v31 = vpop.permute.xlu1 %4701  ;;  %v4812_v36 = vpop.permute.xlu0 %4811 }
0x21c6   : > { %6691 = vmatmul.mubr.msk.bf16.vlgmr.msra.gmra.mxu1 %vm1450_vm2, %v7954_v23  ;;  %v4707_v32 = vsel %vm1450_vm2, %v4702_v31, 0 }
0x21c7   : > { %6701 = vmatpush3.bf16.xpose.msra.mxu1 %v4595_v30  ;;  %6702 = vmatprep.mubr.msk.bf16.mxu1 %vm7158_vm0, %v7157_v0 }
0x21c8   : > { %6712 = vmatprep.subr.bf16.mxu1 %v7157_v0 }
0x21c9   : > { %v4814_v7 = vpop.permute.xlu1 %4813 }
0x21ca   : > { %v4819_v35 = vsel %vm1450_vm2, %v4814_v7, 0 }
0x21ce   : > { %6703 = vmatmul.mubr.msk.bf16.vlgmr.msra.gmra.mxu1 %vm1450_vm2, %v4588_v62 }
0x21cf   : > { %6713 = vmatpush3.bf16.xpose.msra.mxu1 %v4707_v32  ;;  %6714 = vmatprep.mubr.msk.bf16.mxu1 %vm7158_vm0, %v7157_v0 }
0x21d0   : > { %6724 = vmatprep.subr.bf16.mxu1 %v7157_v0 }
0x21d6   : > { %6715 = vmatmul.mubr.msk.bf16.vlgmr.msra.gmra.mxu1 %vm1450_vm2, %v4700_v34 }
0x21d7   : > { %6725 = vmatpush3.bf16.xpose.msra.mxu1 %v4819_v35  ;;  %6726 = vmatprep.mubr.msk.bf16.mxu1 %vm7158_vm0, %v7157_v0 }
0x21d8   : > { %6736 = vmatprep.subr.bf16.mxu1 %v7157_v0 }
0x21de   : > { %6727 = vmatmul.mubr.msk.bf16.vlgmr.msra.gmra.mxu1 %vm1450_vm2, %v4812_v36 }
0x21df   : > { %6740 = vmatprep.mubr.msk.bf16.mxu1 %vm7158_vm0, %v7157_v0 }
0x2286   : > { %v4519_v37 = vpop.f32.mrf.mxu1 }
0x2287   : > { %v4525_v38 = vmul.f32 0.35355338, %v4519_v37 }
0x2288   : > { %v6692_v40 = vpop.f32.mrf.mxu1 }
0x2289   : > { %v4526_v41 = vadd.f32 %v7742_v28, %v4525_v38 }
0x228a   : > { %v4522_v42 = vpop.f32.mrf.mxu1 }
0x228b   : > { %v4527_v43 = vsel %vm1450_vm2, %v4526_v41, -inf }
0x228c   : > { %4528 = vmax.xlane.f32.xlu1 %v4527_v43  ;;  %v6693_v44 = vpop.f32.mrf.mxu1 }
0x228e   : > { %v4631_v45 = vpop.f32.mrf.mxu1 }
0x228f   : > { %v4637_v46 = vmul.f32 0.35355338, %v4631_v45 }
0x2290   : > { %v6704_v22 = vpop.f32.mrf.mxu1 }
0x2291   : > { %v4638_v47 = vadd.f32 %v7742_v28, %v4637_v46 }
0x2292   : > { %v4634_v48 = vpop.f32.mrf.mxu1 }
0x2293   : > { %v4639_v50 = vsel %vm1450_vm2, %v4638_v47, -inf }
0x2294   : > { %4640 = vmax.xlane.f32.xlu0 %v4639_v50  ;;  %v6705_v33 = vpop.f32.mrf.mxu1 }
0x2296   : > { %v4743_v52 = vpop.f32.mrf.mxu1 }
0x2297   : > { %v4749_v39 = vmul.f32 0.35355338, %v4743_v52 }
0x2298   : > { %v6716_v53 = vpop.f32.mrf.mxu1 }
0x2299   : > { %v4750_v55 = vadd.f32 %v7075_v54, %v4749_v39 }
0x229a   : > { %v4746_v56 = vpop.f32.mrf.mxu1 }
0x229b   : > { %v4751_v58 = vsel %vm1450_vm2, %v4750_v55, -inf }
0x229c   : > { %4752 = vmax.xlane.f32.xlu0 %v4751_v58  ;;  %v6717_v59 = vpop.f32.mrf.mxu1 }
0x229e   : > { %v4855_v60 = vpop.f32.mrf.mxu1 }
0x229f   : > { %v4861_v61 = vmul.f32 0.35355338, %v4855_v60 }
0x22a0   : > { %v6728_v63 = vpop.f32.mrf.mxu1 }
0x22a1   : > { %v4862_v1 = vadd.f32 %v7075_v54, %v4861_v61 }
0x22a2   : > { %v4858_v28 = vpop.f32.mrf.mxu1 }
0x22a3   : > { %v4863_v2 = vsel %vm1450_vm2, %v4862_v1, -inf }
0x22a4   : > { %4864 = vmax.xlane.f32.xlu1 %v4863_v2  ;;  %v6729_v5 = vpop.f32.mrf.mxu1 }
0x2315   : > { %v4529_v6 = vpop.xlane.xlu1 %4528 }
0x2316   : > { %v4530_v8 = vsub.f32 %v4526_v41, %v4529_v6 }
0x2318   : > { %v4531_v10 = vmul.f32 1.442695, %v4530_v8 }
0x231a   : > { %7037 = vpow2.f32 %v4531_v10 }
0x231d   : > { %v4641_v11 = vpop.xlane.xlu0 %4640 }
0x231e   : > { %v4642_v3 = vsub.f32 %v4638_v47, %v4641_v11 }
0x2320   : > { %v4643_v13 = vmul.f32 1.442695, %v4642_v3 }
0x2322   : > { %7039 = vpow2.f32 %v4643_v13 }
0x2325   : > { %v4753_v14 = vpop.xlane.xlu0 %4752 }
0x2326   : > { %v4754_v15 = vsub.f32 %v4750_v55, %v4753_v14 }
0x2327   : > { %v7038_v16 = vpop.eup %7037 }
0x2328   : > { %v4755_v18 = vmul.f32 1.442695, %v4754_v15  ;;  %v4533_v19 = vsel %vm1450_vm2, %v7038_v16, 0.0 }
0x2329   : > { %4534 = vadd.xlane.f32.xlu0 %v4533_v19 }
0x232a   : > { %7041 = vpow2.f32 %v4755_v18 }
0x232d   : > { %v4865_v25 = vpop.xlane.xlu1 %4864 }
0x232e   : > { %v4866_v26 = vsub.f32 %v4862_v1, %v4865_v25 }
0x232f   : > { %v7040_v20 = vpop.eup %7039 }
0x2330   : > { %v4645_v21 = vsel %vm1450_vm2, %v7040_v20, 0.0  ;;  %v4867_v27 = vmul.f32 1.442695, %v4866_v26 }
0x2331   : > { %4646 = vadd.xlane.f32.xlu1 %v4645_v21 }
0x2332   : > { %7043 = vpow2.f32 %v4867_v27 }
0x2337   : > { %v7042_v9 = vpop.eup %7041 }
0x2338   : > { %v4757_v24 = vsel %vm1450_vm2, %v7042_v9, 0.0 }
0x2339   : > { %4758 = vadd.xlane.f32.xlu0 %v4757_v24 }
0x233f   : > { %v7044_v29 = vpop.eup %7043 }
0x2340   : > { %v4869_v62 = vsel %vm1450_vm2, %v7044_v29, 0.0 }
0x2342   : > { %4651 = vrot.lane.b32.xlu1 %v7954_v23, %s8304_s20  ;;  %s8314_s20 = sld [smem:[#allocation24_spill]] }
0x2348   : > { %v6947_v63 = vld [vmem:[%s8314_s20 + $0x8] sm:$0xff]   ;;  %v6948_v1 = vld [vmem:[%s8314_s20] sm:$0xff]  }
0x2349   : > { %6737 = vmatpush3.bf16.msra.mxu1 %v6947_v63 }
0x234a   : > { %6738 = vmatprep.subr.bf16.mxu1 %v7157_v0 }
0x234d   : > { %6739 = vmatpush3.bf16.msra.mxu1 %v6948_v1 }
0x234e   : > { %6752 = vmatprep.subr.bf16.mxu1 %v7157_v0 }
0x234f   : > { %4539 = vrot.lane.b32.xlu0 %v7954_v23, %s8303_s16  ;;  %s8315_s16 = sld [smem:[#allocation25_spill]] }
0x2353   : > { %4875 = vrot.lane.b32.xlu0 %v7954_v23, %s8312_s0  ;;  %s8317_s0 = sld [smem:[#allocation28_spill]] }
0x2355   : > { %v6153_v21 = vld [vmem:[%s8315_s16] ss:$0 sm:$0xff]  ;;  %s8318_s16 = sld [smem:[#allocation26_spill]] }
0x2366   : > { %4870 = vadd.xlane.f32.xlu1 %v4869_v62 }
0x2377   : > { %4763 = vrot.lane.b32.xlu1 %v7954_v23, %s8313_s1  ;;  %s8316_s1 = sld [smem:[#allocation30_spill]] }
0x23b2   : > { %v4535_v30 = vpop.xlane.xlu0 %4534 }
0x23b3   : > { %7045 = vrcp.f32 %v4535_v30 }
0x23ba   : > { %v4647_v31 = vpop.xlane.xlu1 %4646 }
0x23bb   : > { %7047 = vrcp.f32 %v4647_v31 }
0x23be   : > { %v4652_v37 = vpop.permute.xlu1 %4651 }
0x23bf   : > { %v4657_v41 = vsel %vm1522_vm3, %v4652_v37, 0  ;;  %v6952_v37 = vld [vmem:[%s8317_s0] sm:$0xff]  }
0x23c0   : > { %v7046_v32 = vpop.eup %7045 }
0x23c1   : > { %v4537_v34 = vmul.f32 %v7046_v32, %v7038_v16 }
0x23c2   : > { %v4759_v7 = vpop.xlane.xlu0 %4758 }
0x23c3   : > { %v4538_v38 = vpack.c.bf16 %v4537_v34, %v4537_v34  ;;  %7049 = vrcp.f32 %v4759_v7 }
0x23c6   : > { %v4540_v35 = vpop.permute.xlu0 %4539 }
0x23c7   : > { %v4545_v36 = vsel %vm1522_vm3, %v4540_v35, 0  ;;  %v6949_v35 = vld [vmem:[%s8316_s1 + $0x8] sm:$0xff]  }
0x23c8   : > { %6695 = vmatpush3.bf16.msra.mxu0 %v4545_v36  ;;  %v7048_v40 = vpop.eup %7047  ;;  %v6950_v36 = vld [vmem:[%s8316_s1] sm:$0xff]  }
0x23c9   : > { %6706 = vmatprep.subr.bf16.mxu0 %v7157_v0  ;;  %v4649_v23 = vmul.f32 %v7048_v40, %v7040_v20 }
0x23ca   : > { %v4876_v47 = vpop.permute.xlu0 %4875 }
0x23cb   : > { %6697 = vmatmul.mubr.msk.bf16.vlgmr.msra.gmra.mxu0 %vm1450_vm2, %v4538_v38  ;;  %v4650_v42 = vpack.c.bf16 %v4649_v23, %v4649_v23  ;;  %v4881_v50 = vsel %vm1522_vm3, %v4876_v47, 0 }
0x23cc   : > { %6707 = vmatpush3.bf16.msra.mxu0 %v4657_v41  ;;  %6708 = vmatprep.mubr.msk.bf16.mxu0 %vm7158_vm0, %v7157_v0 }
0x23cd   : > { %6718 = vmatprep.subr.bf16.mxu0 %v7157_v0 }
0x23d0   : > { %v7050_v43 = vpop.eup %7049 }
0x23d1   : > { %v4761_v45 = vmul.f32 %v7050_v43, %v7042_v9 }
0x23d3   : > { %6709 = vmatmul.mubr.msk.bf16.vlgmr.msra.gmra.mxu0 %vm1450_vm2, %v4650_v42  ;;  %v4762_v48 = vpack.c.bf16 %v4761_v45, %v4761_v45  ;;  %v6157_v42 = vld [vmem:[%s8318_s16] ss:$0 sm:$0xff] }
0x23d4   : > { %6720 = vmatprep.mubr.msk.bf16.mxu0 %vm7158_vm0, %v7157_v0 }
0x23ef   : > { %v4871_v44 = vpop.xlane.xlu1 %4870 }
0x23f0   : > { %7051 = vrcp.f32 %v4871_v44 }
0x23f3   : > { %v4764_v46 = vpop.permute.xlu1 %4763 }
0x23f4   : > { %v4769_v22 = vsel %vm1522_vm3, %v4764_v46, 0 }
0x23f5   : > { %6719 = vmatpush3.bf16.msra.mxu0 %v4769_v22  ;;  %v6163_v22 = vld [vmem:[%s8320_s3] ss:$0 sm:$0xff]  ;;  %s8326_s3 = sld [smem:[#allocation34_spill]] }
0x23f6   : > { %6730 = vmatprep.subr.bf16.mxu0 %v7157_v0 }
0x23f8   : > { %6721 = vmatmul.mubr.msk.bf16.vlgmr.msra.gmra.mxu0 %vm1450_vm2, %v4762_v48 }
0x23f9   : > { %6731 = vmatpush3.bf16.msra.mxu0 %v4881_v50  ;;  %6732 = vmatprep.mubr.msk.bf16.mxu0 %vm7158_vm0, %v7157_v0 }
0x23fa   : > { %6744 = vmatprep.subr.bf16.mxu0 %v7157_v0 }
0x23fd   : > { %v7052_v33 = vpop.eup %7051 }
0x23fe   : > { %v4873_v52 = vmul.f32 %v7052_v33, %v7044_v29 }
0x2400   : > { %v4874_v39 = vpack.c.bf16 %v4873_v52, %v4873_v52 }
0x2402   : > { %6733 = vmatmul.mubr.msk.bf16.vlgmr.msra.gmra.mxu0 %vm1450_vm2, %v4874_v39 }
0x2403   : > { %6748 = vmatprep.mubr.msk.bf16.mxu0 %vm7158_vm0, %v7157_v0 }
0x248b   : > { %v4581_v53 = vpop.f32.mrf.mxu0 }
0x248d   : > { %v6698_v54 = vpop.f32.mrf.mxu0 }
0x248f   : > { %v4584_v55 = vpop.f32.mrf.mxu0 }
0x2491   : > { %v6699_v56 = vpop.f32.mrf.mxu0 }
0x2493   : > { %v4693_v58 = vpop.f32.mrf.mxu0 }
0x2494   : > { %4924 = vrot.lane.b32.xlu1 %v4693_v58, %s8307_s27 }
0x2495   : > { %v6710_v59 = vpop.f32.mrf.mxu0 }
0x2497   : > { %v4696_v60 = vpop.f32.mrf.mxu0 }
0x2499   : > { %v6711_v61 = vpop.f32.mrf.mxu0 }
0x24b8   : > { %v4805_v28 = vpop.f32.mrf.mxu0 }
0x24b9   : > { %4928 = vrot.lane.b32.xlu0 %v4805_v28, %s8308_s23 }
0x24ba   : > { %v6722_v2 = vpop.f32.mrf.mxu0 }
0x24bc   : > { %v4808_v5 = vpop.f32.mrf.mxu0 }
0x24be   : > { %v6723_v6 = vpop.f32.mrf.mxu0 }
0x24c2   : > { %v4917_v8 = vpop.f32.mrf.mxu0 }
0x24c3   : > { %4932 = vrot.lane.b32.xlu1 %v4917_v8, %s8288_s18 }
0x24c4   : > { %v6734_v10 = vpop.f32.mrf.mxu0 }
0x24c6   : > { %v4920_v11 = vpop.f32.mrf.mxu0 }
0x24c8   : > { %v6735_v3 = vpop.f32.mrf.mxu0 }
0x2506   : > { %v4925_v13 = vpop.permute.xlu1 %4924 }
0x2507   : > { %v4935_v15 = vsel %vm1450_vm2, %v4581_v53, %v4925_v13 }
0x252b   : > { %v4929_v14 = vpop.permute.xlu0 %4928 }
0x252c   : > { %v4936_v16 = vsel %vm1915_vm4, %v4935_v15, %v4929_v14 }
0x2535   : > { %v4933_v18 = vpop.permute.xlu1 %4932 }
0x2536   : > { %v4937_v19 = vsel %vm1917_vm5, %v4936_v16, %v4933_v18 }
0x2537   : > { %v4938_v20 = vpack.c.bf16 %v4937_v19, %v4937_v19 }
0x2539   : > { %6741 = vmatmul.mubr.msk.bf16.vlgmr.msra.gmra.mxu1 %vm1402_vm1, %v4938_v20 }
0x253a   : > { %6756 = vmatprep.mubr.msk.bf16.mxu1 %vm7158_vm0, %v7157_v0  ;;  %6753 = vmatpush3.bf16.msra.mxu1 %v6949_v35 }
0x253b   : > { %6754 = vmatprep.subr.bf16.mxu1 %v7157_v0 }
0x253e   : > { %6755 = vmatpush3.bf16.msra.mxu1 %v6950_v36 }
0x253f   : > { %6766 = vmatprep.subr.bf16.mxu1 %v7157_v0 }
0x2541   : > { %6757 = vmatmul.mubr.msk.bf16.vlgmr.msra.gmra.mxu1 %vm1402_vm1, %v7806_v51  ;;  %v6158_v51 = vld [vmem:[%s8319_s2] ss:$0 sm:$0xff]  ;;  %s8330_s2 = sld [smem:[#allocation40_spill]] }
0x2542   : > { %6768 = vmatprep.mubr.msk.bf16.mxu1 %vm7158_vm0, %v7157_v0 }
0x25f9   : > { %v4994_v9 = vpop.f32.mrf.mxu1 }
0x25fa   : > { %v4995_v24 = vadd.f32 %v6153_v21, %v4994_v9 }
0x25fb   : > { %v6742_v25 = vpop.f32.mrf.mxu1 }
0x25fc   : > { %v5000_v26 = vadd.f32 %v4995_v24, %v7946_v17  ;;  %v6951_v17 = vld [vmem:[%s8317_s0 + $0x8] sm:$0xff]   ;;  %s8321_s0 = sld [smem:[#allocation29_spill]] }
0x25fd   : > { %v4997_v27 = vpop.f32.mrf.mxu1  ;;  %6745 = vmatpush3.bf16.msra.mxu0 %v6951_v17 }
0x25fe   : > { %v5001_v29 = vsel %vm1402_vm1, %v5000_v26, 0.0  ;;  %6746 = vmatprep.subr.bf16.mxu0 %v7157_v0 }
0x25ff   : > { %5002 = vadd.xlane.f32.xlu0 %v5001_v29  ;;  %v6743_v62 = vpop.f32.mrf.mxu1 }
0x2601   : > { %6747 = vmatpush3.bf16.msra.mxu0 %v6952_v37  ;;  %v5142_v47 = vpop.f32.mrf.mxu1 }
0x2602   : > { %6760 = vmatprep.subr.bf16.mxu0 %v7157_v0  ;;  %v5143_v48 = vadd.f32 %v6163_v22, %v5142_v47  ;;  %v6159_v54 = vld [vmem:[%s8321_s0] ss:$0 sm:$0xff] }
0x2603   : > { %v6758_v50 = vpop.f32.mrf.mxu1 }
0x2604   : > { %v8069_v33 = vpack.c.bf16 %v5143_v48, %v5143_v48 }
0x2605   : > { %v5145_v52 = vpop.f32.mrf.mxu1 }
0x2606   : > { %v5154_v39 = vsel %vm1450_vm2, %v8069_v33, 0 }
0x2607   : > { %v6759_v53 = vpop.f32.mrf.mxu1 }
0x2615   : > { %5262 = vrot.lane.b32.xlu0 %v8069_v33, %s8298_s17 }
0x2619   : > { %5374 = vrot.lane.b32.xlu0 %v8069_v33, %s8300_s25 }
0x261d   : > { %5486 = vrot.lane.b32.xlu0 %v8069_v33, %s8302_s12 }
0x2688   : > { %v5003_v30 = vpop.xlane.xlu0 %5002 }
0x2689   : > { %v5004_v31 = vmul.f32 0.03125, %v5003_v30 }
0x268b   : > { %v5005_v32 = vsub.f32 %v5000_v26, %v5004_v31 }
0x268c   : > { %v5263_v59 = vpop.permute.xlu0 %5262 }
0x268d   : > { %v5006_v7 = vmul.f32 %v5005_v32, %v5005_v32  ;;  %v5268_v61 = vsel %vm1450_vm2, %v5263_v59, 0 }
0x268f   : > { %v5007_v34 = vsel %vm1402_vm1, %v5006_v7, 0.0 }
0x2690   : > { %5008 = vadd.xlane.f32.xlu1 %v5007_v34  ;;  %v5375_v28 = vpop.permute.xlu0 %5374 }
0x2691   : > { %v5380_v5 = vsel %vm1450_vm2, %v5375_v28, 0 }
0x2694   : > { %v5487_v6 = vpop.permute.xlu0 %5486 }
0x2695   : > { %v5492_v10 = vsel %vm1450_vm2, %v5487_v6, 0 }
0x2719   : > { %v5009_v38 = vpop.xlane.xlu1 %5008 }
0x271a   : > { %v5010_v40 = vmul.f32 0.03125, %v5009_v38 }
0x271c   : > { %v5011_v41 = vadd.f32 1e-05, %v5010_v40 }
0x271e   : > { %7053 = vrsqrt.f32 %v5011_v41 }
0x272b   : > { %v7054_v23 = vpop.eup %7053 }
0x272c   : > { %v5013_v43 = vmul.f32 %v7054_v23, %v5005_v32 }
0x272e   : > { %v5020_v44 = vmul.f32 %v6157_v42, %v5013_v43 }
0x2730   : > { %v8061_v45 = vadd.f32 %v6158_v51, %v5020_v44 }
0x2732   : > { %v5028_v46 = vpack.c.bf16 %v8061_v45, %v8061_v45 }
0x2734   : > { %6749 = vmatmul.mubr.msk.bf16.vlgmr.msra.gmra.mxu0 %vm1402_vm1, %v5028_v46 }
0x2735   : > { %6762 = vmatprep.mubr.msk.bf16.mxu0 %vm7158_vm0, %v7157_v0  ;;  %6761 = vmatpush3.bf16.xpose.msra.mxu0 %v5154_v39 }
0x2736   : > { %6772 = vmatprep.subr.bf16.mxu0 %v7157_v0 }
0x27f4   : > { %v5084_v55 = vpop.f32.mrf.mxu0 }
0x27f5   : > { %v5085_v56 = vadd.f32 %v6159_v54, %v5084_v55 }
0x27f6   : > { %v6750_v58 = vpop.f32.mrf.mxu0 }
0x27f7   : > { %v5148_v60 = vpack.c.bf16 %v5085_v56, %v5085_v56 }
0x27f8   : > { %v5087_v63 = vpop.f32.mrf.mxu0 }
0x27f9   : > { %5260 = vrot.lane.b32.xlu1 %v5148_v60, %s8298_s17  ;;  %6763 = vmatmul.mubr.msk.bf16.vlgmr.msra.gmra.mxu0 %vm1450_vm2, %v5148_v60  ;;  %s8323_s17 = sld [smem:[#allocation33_spill]] }
0x27fa   : > { %v6751_v1 = vpop.f32.mrf.mxu0  ;;  %6773 = vmatpush3.bf16.xpose.msra.mxu0 %v5268_v61  ;;  %6774 = vmatprep.mubr.msk.bf16.mxu0 %vm7158_vm0, %v7157_v0 }
0x27fb   : > { %6784 = vmatprep.subr.bf16.mxu0 %v7157_v0 }
0x27fd   : > { %5372 = vrot.lane.b32.xlu1 %v5148_v60, %s8300_s25  ;;  %s8325_s25 = sld [smem:[#allocation38_spill]] }
0x2801   : > { %5484 = vrot.lane.b32.xlu1 %v5148_v60, %s8302_s12  ;;  %s8327_s12 = sld [smem:[#allocation35_spill]] }
0x286b   : > { %v5261_v2 = vpop.permute.xlu1 %5260 }
0x286c   : > { %6775 = vmatmul.mubr.msk.bf16.vlgmr.msra.gmra.mxu0 %vm1450_vm2, %v5261_v2 }
0x286d   : > { %6785 = vmatpush3.bf16.xpose.msra.mxu0 %v5380_v5  ;;  %6786 = vmatprep.mubr.msk.bf16.mxu0 %vm7158_vm0, %v7157_v0 }
0x286e   : > { %6796 = vmatprep.subr.bf16.mxu0 %v7157_v0 }
0x286f   : > { %v5373_v8 = vpop.permute.xlu1 %5372 }
0x2873   : > { %v5485_v11 = vpop.permute.xlu1 %5484 }
0x2874   : > { %6787 = vmatmul.mubr.msk.bf16.vlgmr.msra.gmra.mxu0 %vm1450_vm2, %v5373_v8 }
0x2875   : > { %6797 = vmatpush3.bf16.xpose.msra.mxu0 %v5492_v10  ;;  %6798 = vmatprep.mubr.msk.bf16.mxu0 %vm7158_vm0, %v7157_v0 }
0x2876   : > { %6808 = vmatprep.subr.bf16.mxu0 %v7157_v0 }
0x287c   : > { %6799 = vmatmul.mubr.msk.bf16.vlgmr.msra.gmra.mxu0 %vm1450_vm2, %v5485_v11 }
0x287d   : > { %6812 = vmatprep.mubr.msk.bf16.mxu0 %vm7158_vm0, %v7157_v0 }
0x28b9   : > { %v5190_v3 = vpop.f32.mrf.mxu0 }
0x28ba   : > { %v5196_v13 = vmul.f32 0.35355338, %v5190_v3 }
0x28bb   : > { %v6764_v14 = vpop.f32.mrf.mxu0 }
0x28bc   : > { %v5197_v15 = vadd.f32 %v7601_v49, %v5196_v13 }
0x28bd   : > { %v5193_v16 = vpop.f32.mrf.mxu0 }
0x28be   : > { %v5198_v18 = vsel %vm1450_vm2, %v5197_v15, -inf }
0x28bf   : > { %5199 = vmax.xlane.f32.xlu0 %v5198_v18  ;;  %v6765_v19 = vpop.f32.mrf.mxu0 }
0x292c   : > { %v5304_v20 = vpop.f32.mrf.mxu0 }
0x292d   : > { %v5310_v21 = vmul.f32 0.35355338, %v5304_v20 }
0x292e   : > { %v6776_v9 = vpop.f32.mrf.mxu0 }
0x292f   : > { %v5311_v24 = vadd.f32 %v7605_v57, %v5310_v21 }
0x2930   : > { %v5307_v25 = vpop.f32.mrf.mxu0 }
0x2931   : > { %v5312_v26 = vsel %vm1450_vm2, %v5311_v24, -inf }
0x2932   : > { %5313 = vmax.xlane.f32.xlu1 %v5312_v26  ;;  %v6777_v27 = vpop.f32.mrf.mxu0 }
0x2934   : > { %v5416_v29 = vpop.f32.mrf.mxu0 }
0x2935   : > { %v5422_v62 = vmul.f32 0.35355338, %v5416_v29 }
0x2936   : > { %v6788_v30 = vpop.f32.mrf.mxu0 }
0x2937   : > { %v5423_v49 = vadd.f32 %v7609_v4, %v5422_v62 }
0x2938   : > { %v5419_v31 = vpop.f32.mrf.mxu0 }
0x2939   : > { %v5424_v32 = vsel %vm1450_vm2, %v5423_v49, -inf }
0x293a   : > { %5425 = vmax.xlane.f32.xlu0 %v5424_v32  ;;  %v6789_v7 = vpop.f32.mrf.mxu0 }
0x293c   : > { %v5528_v34 = vpop.f32.mrf.mxu0 }
0x293d   : > { %v5534_v35 = vmul.f32 0.35355338, %v5528_v34 }
0x293e   : > { %v6800_v36 = vpop.f32.mrf.mxu0 }
0x293f   : > { %v5535_v57 = vadd.f32 %v7613_v12, %v5534_v35 }
0x2940   : > { %v5531_v17 = vpop.f32.mrf.mxu0 }
0x2941   : > { %v5536_v37 = vsel %vm1450_vm2, %v5535_v57, -inf }
0x2942   : > { %5537 = vmax.xlane.f32.xlu0 %v5536_v37  ;;  %v6801_v38 = vpop.f32.mrf.mxu0 }
0x2948   : > { %v5200_v40 = vpop.xlane.xlu0 %5199 }
0x2949   : > { %v5201_v41 = vsub.f32 %v5197_v15, %v5200_v40 }
0x294b   : > { %v5202_v23 = vmul.f32 1.442695, %v5201_v41 }
0x294d   : > { %7055 = vpow2.f32 %v5202_v23 }
0x295a   : > { %v7056_v4 = vpop.eup %7055 }
0x295b   : > { %v5204_v42 = vsel %vm1450_vm2, %v7056_v4, 0.0 }
0x295c   : > { %5205 = vadd.xlane.f32.xlu1 %v5204_v42 }
0x296d   : > { %5211 = vrot.lane.b32.xlu1 %v8069_v33, %s8297_s13  ;;  %s8322_s13 = sld [smem:[#allocation32_spill]] }
0x2973   : > { %v6953_v29 = vld [vmem:[%s8322_s13 + $0x8] sm:$0xff]  }
0x2974   : > { %6809 = vmatpush3.bf16.msra.mxu0 %v6953_v29 }
0x2975   : > { %6810 = vmatprep.subr.bf16.mxu0 %v7157_v0 }
0x29bb   : > { %v5314_v43 = vpop.xlane.xlu1 %5313 }
0x29bc   : > { %v5315_v51 = vsub.f32 %v5311_v24, %v5314_v43 }
0x29be   : > { %v5316_v44 = vmul.f32 1.442695, %v5315_v51 }
0x29c0   : > { %7057 = vpow2.f32 %v5316_v44  ;;  %v6175_v44 = vld [vmem:[%s8323_s17] ss:$0 sm:$0xff] }
0x29c3   : > { %v5426_v12 = vpop.xlane.xlu0 %5425 }
0x29c4   : > { %v5427_v46 = vsub.f32 %v5423_v49, %v5426_v12  ;;  %v6954_v49 = vld [vmem:[%s8322_s13] sm:$0xff]  }
0x29c5   : > { %6811 = vmatpush3.bf16.msra.mxu0 %v6954_v49 }
0x29c6   : > { %v5428_v22 = vmul.f32 1.442695, %v5427_v46  ;;  %6824 = vmatprep.subr.bf16.mxu0 %v7157_v0 }
0x29c8   : > { %7059 = vpow2.f32 %v5428_v22 }
0x29cb   : > { %v5538_v47 = vpop.xlane.xlu0 %5537 }
0x29cc   : > { %v5539_v48 = vsub.f32 %v5535_v57, %v5538_v47 }
0x29cd   : > { %v7058_v50 = vpop.eup %7057 }
0x29ce   : > { %v5540_v52 = vmul.f32 1.442695, %v5539_v48  ;;  %v5318_v39 = vsel %vm1450_vm2, %v7058_v50, 0.0 }
0x29cf   : > { %5319 = vadd.xlane.f32.xlu0 %v5318_v39 }
0x29d0   : > { %7061 = vpow2.f32 %v5540_v52 }
0x29d5   : > { %v7060_v53 = vpop.eup %7059 }
0x29d6   : > { %v5430_v54 = vsel %vm1450_vm2, %v7060_v53, 0.0 }
0x29d7   : > { %5431 = vadd.xlane.f32.xlu1 %v5430_v54 }
0x29dd   : > { %v7062_v55 = vpop.eup %7061 }
0x29de   : > { %v5542_v56 = vsel %vm1450_vm2, %v7062_v55, 0.0 }
0x29df   : > { %5543 = vadd.xlane.f32.xlu0 %v5542_v56 }
0x29e5   : > { %v5206_v58 = vpop.xlane.xlu1 %5205 }
0x29e6   : > { %7063 = vrcp.f32 %v5206_v58 }
0x29e8   : > { %5436 = vrot.lane.b32.xlu1 %v8069_v33, %s8299_s21  ;;  %s8324_s21 = sld [smem:[#allocation36_spill]] }
0x29e9   : > { %v5212_v59 = vpop.permute.xlu1 %5211 }
0x29ea   : > { %v5217_v60 = vsel %vm1522_vm3, %v5212_v59, 0 }
0x29eb   : > { %6767 = vmatpush3.bf16.msra.mxu1 %v5217_v60  ;;  %v6958_v60 = vld [vmem:[%s8325_s25 + $0x10] sm:$0xff]  }
0x29ec   : > { %5548 = vrot.lane.b32.xlu1 %v8069_v33, %s8301_s15  ;;  %6778 = vmatprep.subr.bf16.mxu1 %v7157_v0  ;;  %s8329_s15 = sld [smem:[#allocation42_spill]] }
0x29ee   : > { %v6955_v58 = vld [vmem:[%s8324_s21 + $0x8] sm:$0xff]   ;;  %v6956_v59 = vld [vmem:[%s8324_s21] sm:$0xff]  }
0x29f3   : > { %v7064_v61 = vpop.eup %7063 }
0x29f4   : > { %v5208_v63 = vmul.f32 %v7064_v61, %v7056_v4 }
0x29f5   : > { %5324 = vrot.lane.b32.xlu0 %v8069_v33, %s8285_s22 }
0x29f6   : > { %v5209_v1 = vpack.c.bf16 %v5208_v63, %v5208_v63 }
0x29f8   : > { %6769 = vmatmul.mubr.msk.bf16.vlgmr.msra.gmra.mxu1 %vm1450_vm2, %v5209_v1 }
0x29f9   : > { %6780 = vmatprep.mubr.msk.bf16.mxu1 %vm7158_vm0, %v7157_v0 }
0x2a58   : > { %v5320_v28 = vpop.xlane.xlu0 %5319 }
0x2a59   : > { %7065 = vrcp.f32 %v5320_v28 }
0x2a60   : > { %v5432_v2 = vpop.xlane.xlu1 %5431 }
0x2a61   : > { %7067 = vrcp.f32 %v5432_v2  ;;  %v6179_v2 = vld [vmem:[%s8326_s3] ss:$0 sm:$0xff] }
0x2a64   : > { %v5437_v3 = vpop.permute.xlu1 %5436 }
0x2a65   : > { %v5442_v14 = vsel %vm1522_vm3, %v5437_v3, 0  ;;  %v6959_v3 = vld [vmem:[%s8325_s25 + $0x8] sm:$0xff]  }
0x2a66   : > { %v7066_v5 = vpop.eup %7065 }
0x2a67   : > { %v5322_v8 = vmul.f32 %v7066_v5, %v7058_v50 }
0x2a68   : > { %v5544_v6 = vpop.xlane.xlu0 %5543  ;;  %v5549_v16 = vpop.permute.xlu1 %5548 }
0x2a69   : > { %7069 = vrcp.f32 %v5544_v6  ;;  %v5323_v33 = vpack.c.bf16 %v5322_v8, %v5322_v8  ;;  %v5554_v20 = vsel %vm1522_vm3, %v5549_v16, 0  ;;  %v6180_v6 = vld [vmem:[%s8327_s12] ss:$0 sm:$0xff] }
0x2a6c   : > { %v5325_v10 = vpop.permute.xlu0 %5324 }
0x2a6d   : > { %v5330_v11 = vsel %vm1522_vm3, %v5325_v10, 0 }
0x2a6e   : > { %6779 = vmatpush3.bf16.msra.mxu1 %v5330_v11  ;;  %v7068_v13 = vpop.eup %7067 }
0x2a6f   : > { %6790 = vmatprep.subr.bf16.mxu1 %v7157_v0  ;;  %v5434_v15 = vmul.f32 %v7068_v13, %v7060_v53 }
0x2a71   : > { %6781 = vmatmul.mubr.msk.bf16.vlgmr.msra.gmra.mxu1 %vm1450_vm2, %v5323_v33  ;;  %v5435_v18 = vpack.c.bf16 %v5434_v15, %v5434_v15  ;;  %v6960_v33 = vld [vmem:[%s8325_s25] sm:$0xff]  }
0x2a72   : > { %6791 = vmatpush3.bf16.msra.mxu1 %v5442_v14  ;;  %6792 = vmatprep.mubr.msk.bf16.mxu1 %vm7158_vm0, %v7157_v0 }
0x2a73   : > { %6802 = vmatprep.subr.bf16.mxu1 %v7157_v0 }
0x2a76   : > { %v7070_v19 = vpop.eup %7069 }
0x2a77   : > { %v5546_v21 = vmul.f32 %v7070_v19, %v7062_v55 }
0x2a79   : > { %6793 = vmatmul.mubr.msk.bf16.vlgmr.msra.gmra.mxu1 %vm1450_vm2, %v5435_v18  ;;  %v5547_v9 = vpack.c.bf16 %v5546_v21, %v5546_v21 }
0x2a7a   : > { %6803 = vmatpush3.bf16.msra.mxu1 %v5554_v20  ;;  %6804 = vmatprep.mubr.msk.bf16.mxu1 %vm7158_vm0, %v7157_v0 }
0x2a7b   : > { %6816 = vmatprep.subr.bf16.mxu1 %v7157_v0 }
0x2a81   : > { %6805 = vmatmul.mubr.msk.bf16.vlgmr.msra.gmra.mxu1 %vm1450_vm2, %v5547_v9  ;;  %v6185_v9 = vld [vmem:[#allocation2] ss:$0 sm:$0xff] }
0x2a82   : > { %6820 = vmatprep.mubr.msk.bf16.mxu1 %vm7158_vm0, %v7157_v0  ;;  %6817 = vmatpush3.bf16.msra.mxu1 %v6955_v58 }
0x2a83   : > { %6818 = vmatprep.subr.bf16.mxu1 %v7157_v0 }
0x2a86   : > { %6819 = vmatpush3.bf16.msra.mxu1 %v6956_v59 }
0x2ab8   : > { %v5253_v24 = vpop.f32.mrf.mxu1 }
0x2aba   : > { %v6770_v25 = vpop.f32.mrf.mxu1 }
0x2abc   : > { %v5256_v26 = vpop.f32.mrf.mxu1 }
0x2abe   : > { %v6771_v27 = vpop.f32.mrf.mxu1 }
0x2b31   : > { %v5366_v62 = vpop.f32.mrf.mxu1 }
0x2b32   : > { %5597 = vrot.lane.b32.xlu0 %v5366_v62, %s8307_s27  ;;  %s8328_s27 = sld [smem:[#allocation37_spill]] }
0x2b33   : > { %v6782_v30 = vpop.f32.mrf.mxu1 }
0x2b35   : > { %v5369_v31 = vpop.f32.mrf.mxu1 }
0x2b37   : > { %v6783_v32 = vpop.f32.mrf.mxu1 }
0x2b38   : > { %v6181_v13 = vld [vmem:[%s8328_s27] ss:$0 sm:$0xff] }
0x2b39   : > { %v5478_v7 = vpop.f32.mrf.mxu1 }
0x2b3a   : > { %5601 = vrot.lane.b32.xlu1 %v5478_v7, %s8308_s23 }
0x2b3b   : > { %v6794_v34 = vpop.f32.mrf.mxu1 }
0x2b3d   : > { %v5481_v35 = vpop.f32.mrf.mxu1 }
0x2b3f   : > { %v6795_v36 = vpop.f32.mrf.mxu1 }
0x2b41   : > { %v5590_v57 = vpop.f32.mrf.mxu1 }
0x2b42   : > { %5605 = vrot.lane.b32.xlu0 %v5590_v57, %s8288_s18  ;;  %s8331_s18 = sshll.u32 %s8329_s15, 3 }
0x2b43   : > { %v6806_v17 = vpop.f32.mrf.mxu1  ;;  %s1325_s23 = scalar_lea.vmem %s8330_s2, %s8331_s18 }
0x2b45   : > { %v5593_v37 = vpop.f32.mrf.mxu1 }
0x2b47   : > { %v6807_v38 = vpop.f32.mrf.mxu1 }
0x2ba4   : > { %v5598_v40 = vpop.permute.xlu0 %5597 }
0x2ba5   : > { %v5608_v23 = vsel %vm1450_vm2, %v5253_v24, %v5598_v40 }
0x2bac   : > { %v5602_v41 = vpop.permute.xlu1 %5601 }
0x2bad   : > { %v5609_v4 = vsel %vm1915_vm4, %v5608_v23, %v5602_v41 }
0x2bb4   : > { %v5606_v42 = vpop.permute.xlu0 %5605 }
0x2bb5   : > { %v5610_v43 = vsel %vm1917_vm5, %v5609_v4, %v5606_v42 }
0x2bb6   : > { %v5611_v51 = vpack.c.bf16 %v5610_v43, %v5610_v43 }
0x2bb8   : > { %6813 = vmatmul.mubr.msk.bf16.vlgmr.msra.gmra.mxu0 %vm1402_vm1, %v5611_v51 }
0x2bb9   : > { %6832 = vmatprep.mubr.msk.bf16.mxu0 %vm7158_vm0, %v7157_v0 }
0x2c78   : > { %v5667_v12 = vpop.f32.mrf.mxu0 }
0x2c79   : > { %v5668_v46 = vadd.f32 %v6175_v44, %v5667_v12 }
0x2c7a   : > { %v6814_v22 = vpop.f32.mrf.mxu0 }
0x2c7b   : > { %v5673_v47 = vadd.f32 %v5668_v46, %v8061_v45  ;;  %v6957_v45 = vld [vmem:[%s8325_s25 + $0x18] sm:$0xff]  }
0x2c7c   : > { %v5670_v48 = vpop.f32.mrf.mxu0  ;;  %6825 = vmatpush3.bf16.msra.mxu0 %v6957_v45 }
0x2c7d   : > { %v5674_v50 = vsel %vm1402_vm1, %v5673_v47, 0.0  ;;  %6826 = vmatprep.subr.bf16.mxu0 %v7157_v0 }
0x2c7e   : > { %5675 = vadd.xlane.f32.xlu1 %v5674_v50  ;;  %v6815_v52 = vpop.f32.mrf.mxu0 }
0x2c80   : > { %6827 = vmatpush3.bf16.msra.mxu0 %v6958_v60 }
0x2c81   : > { %6828 = vmatprep.subr.bf16.mxu0 %v7157_v0 }
0x2c84   : > { %6829 = vmatpush3.bf16.msra.mxu0 %v6959_v3 }
0x2c85   : > { %6830 = vmatprep.subr.bf16.mxu0 %v7157_v0 }
0x2c88   : > { %6831 = vmatpush3.bf16.msra.mxu0 %v6960_v33 }
0x2d07   : > { %v5676_v39 = vpop.xlane.xlu1 %5675 }
0x2d08   : > { %v5677_v53 = vmul.f32 0.03125, %v5676_v39 }
0x2d0a   : > { %v5678_v54 = vsub.f32 %v5673_v47, %v5677_v53 }
0x2d0c   : > { %v5679_v55 = vmul.f32 %v5678_v54, %v5678_v54 }
0x2d0e   : > { %v5680_v56 = vsel %vm1402_vm1, %v5679_v55, 0.0 }
0x2d0f   : > { %5681 = vadd.xlane.f32.xlu0 %v5680_v56 }
0x2d98   : > { %v5682_v61 = vpop.xlane.xlu0 %5681 }
0x2d99   : > { %v5683_v63 = vmul.f32 0.03125, %v5682_v61 }
0x2d9b   : > { %v5684_v1 = vadd.f32 1e-05, %v5683_v63 }
0x2d9d   : > { %7071 = vrsqrt.f32 %v5684_v1 }
0x2daa   : > { %v7072_v28 = vpop.eup %7071 }
0x2dab   : > { %v5686_v5 = vmul.f32 %v7072_v28, %v5678_v54 }
0x2dad   : > { %v5693_v8 = vmul.f32 %v6179_v2, %v5686_v5 }
0x2daf   : > { %v5700_v10 = vadd.f32 %v6180_v6, %v5693_v8 }
0x2db1   : > { %v5701_v11 = vpack.c.bf16 %v5700_v10, %v5700_v10 }
0x2db3   : > { %6821 = vmatmul.mubr.msk.bf16.vlgmr.msra.gmra.mxu1 %vm1402_vm1, %v5701_v11 }
0x2e73   : > { %v5757_v14 = vpop.f32.mrf.mxu1 }
0x2e74   : > { %v5758_v15 = vadd.f32 %v6181_v13, %v5757_v14 }
0x2e75   : > { %v6822_v16 = vpop.f32.mrf.mxu1 }
0x2e76   : > { %v5763_v18 = vmax.f32 %v5758_v15, 0.0 }
0x2e77   : > { %v5760_v19 = vpop.f32.mrf.mxu1 }
0x2e78   : > { %v5764_v20 = vpack.c.bf16 %v5763_v18, %v5763_v18 }
0x2e79   : > { %v6823_v21 = vpop.f32.mrf.mxu1 }
0x2e7a   : > { %6833 = vmatmul.mubr.msk.bf16.vlgmr.msra.gmra.mxu0 %vm2780_vm6, %v5764_v20 }
0x2f3a   : > { %v5832_v24 = vpop.f32.mrf.mxu0 }
0x2f3b   : > { %v5833_v25 = vadd.f32 %v6185_v9, %v5832_v24 }
0x2f3c   : > { %v6834_v26 = vpop.f32.mrf.mxu0 }
0x2f3d   : > { %5838 = vst [vmem:[%s1325_s23] sm:$0xff] %v5833_v25 }
0x2f3e   : > { %v5835_v0 = vpop.f32.mrf.mxu0 }
0x2f40   : > { %v6835_v27 = vpop.f32.mrf.mxu0 }
0x2f41 PF: > { %s8332_s22 = sld [smem:[#allocation41_spill]] }
0x2f47   : > { %s96_s15 = sadd.s32 1, %s8332_s22  }
0x2f48   : > { %p93_p1 = scmp.ge.s32.totalorder %s96_s15, 4  }
0x2f4a   :  { %95 = sbr.rel (!%p93_p1) target bundleno = 100 (0x64), region = 294 }
0x2f4f   :  { %5858 = vsyncpa [#allocation3], 1 }
0x2f50   :  { %5860 = vsyncpa [#allocation3 + $0x1], 1 }

</bundles_post_ra>
